<compile_context>
chip_gen: v7x
topology: tpu7x:2x2x1
jax: 0.10.0
libtpu: 0.0.40
codegen_flags: <defaults>
</compile_context>

<pallas_src>
import jax
import jax.numpy as jnp
from jax import lax
from jax.experimental import pallas as pl
from jax.experimental.pallas import tpu as pltpu

OUT_CHANNELS = 128
KH = KW = 3
GROUP = 4          # conv positions folded into one block-diagonal matmul
                   # (RHS lanes = GROUP * h1 = 128 -> one lane-dense weight tile)


def _pick_n_chunks(n_groups, target=7):
    """Divisor of n_groups closest to `target` (w1 DMA chunk count)."""
    best = 1
    for d in range(1, n_groups + 1):
        if n_groups % d == 0 and abs(d - target) < abs(best - target):
            best = d
    return best


# ----------------------------- fused Pallas kernel --------------------------

def _make_fused_kernel(nb, n_chunks, gpc, h1):
    rows = GROUP * nb                      # conv-output rows per group (8 for nb=2)

    def kernel(pat_hbm, wc_ref, bc_ref, w1_hbm, b1_ref, w2_ref, b2_ref,
               o_ref, pat_buf, w1_buf, sems):
        # Issue every HBM->VMEM stream up front: patches first (needed first),
        # then the w1 chunks (consumed later, overlapped with the conv GEMM).
        pat_cp = pltpu.make_async_copy(pat_hbm, pat_buf, sems.at[n_chunks])
        pat_cp.start()
        w1_cps = [pltpu.make_async_copy(w1_hbm.at[c], w1_buf.at[c], sems.at[c])
                  for c in range(n_chunks)]
        for cp in w1_cps:
            cp.start()

        # ---- conv as one GEMM (runs while the w1 chunk DMAs are in flight) --
        pat_cp.wait()
        conv = jnp.dot(pat_buf[...], wc_ref[...],
                       preferred_element_type=jnp.float32)      # (P*nb, OC) f32
        act = jnp.maximum(conv + bc_ref[...], 0.0).astype(jnp.bfloat16)

        # ---- flatten + Linear(25088->32): grouped block-diagonal GEMM -------
        # Per group g (GROUP consecutive conv positions):
        #   acc += act[g-th (GROUP*nb, OC) slab] @ W_g (OC, GROUP*h1)
        # where W_g[oc, q*h1+t] = w1_torch[t, oc*P + g*GROUP + q].  Only the
        # block diagonal of acc (position block q x h1 block q) is the real
        # result; the off-diagonal 3/4 is cheap MXU waste that buys a natural,
        # transpose-free, relayout-free contraction.
        acc = jnp.zeros((rows, GROUP * h1), jnp.float32)
        for c in range(n_chunks):
            w1_cps[c].wait()
            for gl in range(gpc):
                g = c * gpc + gl
                lhs = act[g * rows:(g + 1) * rows, :]           # (GROUP*nb, OC)
                acc = acc + jnp.dot(lhs, w1_buf[c, gl],
                                    preferred_element_type=jnp.float32)

        # block-diagonal extraction: h_pre[n, t] = sum_q acc[q*nb+n, q*h1+t]
        hpre = acc[0:nb, 0:h1]
        for q in range(1, GROUP):
            hpre = hpre + acc[q * nb:(q + 1) * nb, q * h1:(q + 1) * h1]

        h = jnp.maximum(hpre + b1_ref[...], 0.0)                # (nb, h1)
        out = jnp.dot(h, w2_ref[...], preferred_element_type=jnp.float32)
        o_ref[...] = (out + b2_ref[...]).astype(o_ref.dtype)

    return kernel


# ------------------------------- JAX glue -----------------------------------

def _im2col(x, nb):
    """x: (N,C,H,W) f32 -> bf16 patches (Ho*Wo*nb, C*KH*KW), rows ordered (i,j,n)."""
    n, c, h, w = x.shape
    ho, wo = h - KH + 1, w - KW + 1
    if nb != n:
        x = jnp.concatenate(
            [x, jnp.zeros((nb - n,) + x.shape[1:], x.dtype)], axis=0)
    taps = []
    for i in range(KH):
        for j in range(KW):
            taps.append(x[:, :, i:i + ho, j:j + wo])            # (nb, C, Ho, Wo)
    p = jnp.stack(taps, axis=-1)                                # (nb, C, Ho, Wo, 9)
    p = p.transpose(2, 3, 0, 1, 4)                              # (Ho, Wo, nb, C, 9)
    return p.reshape(ho * wo * nb, c * KH * KW).astype(jnp.bfloat16), ho, wo


def prepare_params(params):
    """One-time (outside jit) weight re-layout for the fused kernel."""
    oc, c, kh, kw = params["wc"].shape
    h1, flat = params["w1"].shape
    p_total = flat // oc                                        # Ho*Wo
    assert p_total % GROUP == 0, "spatial positions must be divisible by GROUP"
    n_groups = p_total // GROUP
    n_chunks = _pick_n_chunks(n_groups)
    gpc = n_groups // n_chunks

    wc_t = params["wc"].reshape(oc, c * kh * kw).T.astype(jnp.bfloat16)  # (36, OC)
    bc_row = params["bc"].reshape(1, oc)
    # torch flat col = oc*P + p  ->  W[g, oc, q*h1 + t] = w1[t, oc*P + g*GROUP + q]
    w1g = (params["w1"].reshape(h1, oc, p_total)                # (h1, oc, p)
           .transpose(1, 2, 0)                                  # (oc, p, h1)
           .reshape(oc, n_groups, GROUP, h1)                    # (oc, g, q, h1)
           .transpose(1, 0, 2, 3)                               # (g, oc, q, h1)
           .reshape(n_groups, oc, GROUP * h1)
           .reshape(n_chunks, gpc, oc, GROUP * h1)
           .astype(jnp.bfloat16))
    b1_row = params["b1"].reshape(1, h1)
    w2_t = params["w2"].T                                       # (h1, out_dim) f32
    b2_row = params["b2"].reshape(1, -1)
    return {"wc_t": wc_t, "bc_row": bc_row, "w1g": w1g,
            "b1_row": b1_row, "w2_t": w2_t, "b2_row": b2_row}


@jax.jit
def fcq_forward(x, prep):
    n = x.shape[0]
    nb = n + (n % 2)                       # pad batch to even => GROUP*nb % 8 == 0
    patches, ho, wo = _im2col(x, nb)

    n_chunks, gpc, oc, glanes = prep["w1g"].shape
    h1 = glanes // GROUP
    out_dim = prep["w2_t"].shape[1]
    assert n_chunks * gpc * GROUP == ho * wo

    kernel = _make_fused_kernel(nb, n_chunks, gpc, h1)
    vmem = pl.BlockSpec(memory_space=pltpu.MemorySpace.VMEM)

    flops = (2 * patches.shape[0] * patches.shape[1] * oc               # conv GEMM
             + 2 * (GROUP * nb) * oc * glanes * (n_chunks * gpc)        # grouped GEMM
             + 2 * nb * h1 * out_dim)                                   # output GEMM
    bytes_accessed = (prep["w1g"].size * 2 + patches.size * 2
                      + prep["wc_t"].size * 2
                      + 4 * (oc + h1 + out_dim + h1 * out_dim + nb * out_dim))

    out = pl.pallas_call(
        kernel,
        out_shape=jax.ShapeDtypeStruct((nb, out_dim), jnp.float32),
        in_specs=[pl.BlockSpec(memory_space=pl.ANY),   # patches: manual DMA (overlapped)
                  vmem, vmem,
                  pl.BlockSpec(memory_space=pl.ANY),   # w1g: manual chunked DMA stream
                  vmem, vmem, vmem],
        out_specs=vmem,
        scratch_shapes=[
            pltpu.VMEM(patches.shape, jnp.bfloat16),                 # patches landing buf
            pltpu.VMEM((n_chunks, gpc, oc, glanes), jnp.bfloat16),   # w1 landing buf
            pltpu.SemaphoreType.DMA((n_chunks + 1,)),
        ],
        cost_estimate=pl.CostEstimate(flops=int(flops), transcendentals=0,
                                      bytes_accessed=int(bytes_accessed)),
    )(patches, prep["wc_t"], prep["bc_row"], prep["w1g"],
      prep["b1_row"], prep["w2_t"], prep["b2_row"])
    return out[:n]


# ------------------------------ init & reference ----------------------------

def init_fcq_params(key, input_dim, output_dim, hidden_dims=(32, 32)):
    """Deterministic PyTorch-style uniform init (synthetic, not a checkpoint)."""
    c, h, w = input_dim
    hidden_dims = list(hidden_dims)
    hidden_dims[0] = (h - 2) * (w - 2) * OUT_CHANNELS          # as in FCQ.__init__
    ks = jax.random.split(key, 6)

    def uni(k, shape, fan_in):
        bound = 1.0 / float(fan_in) ** 0.5
        return jax.random.uniform(k, shape, jnp.float32, -bound, bound)

    fan_c = c * KH * KW
    return {
        "wc": uni(ks[0], (OUT_CHANNELS, c, KH, KW), fan_c),
        "bc": uni(ks[1], (OUT_CHANNELS,), fan_c),
        "w1": uni(ks[2], (hidden_dims[1], hidden_dims[0]), hidden_dims[0]),
        "b1": uni(ks[3], (hidden_dims[1],), hidden_dims[0]),
        "w2": uni(ks[4], (output_dim, hidden_dims[1]), hidden_dims[1]),
        "b2": uni(ks[5], (output_dim,), hidden_dims[1]),
    }
    # NOTE: only the default hidden_dims=[32, 32] (one hidden Linear) is built,
    # matching the module's default constructor arguments.


def fcq_forward_reference(x, params):
    """Pure-JAX reference mirroring the PyTorch forward exactly (f32 weights)."""
    out = lax.conv_general_dilated(
        x, params["wc"], window_strides=(1, 1), padding="VALID",
        dimension_numbers=("NCHW", "OIHW", "NCHW"))
    out = out + params["bc"][None, :, None, None]
    out = out.reshape(x.shape[0], -1)
    out = jnp.maximum(out, 0.0)
    h = jnp.maximum(out @ params["w1"].T + params["b1"], 0.0)
    return h @ params["w2"].T + params["b2"]


# --------------------------------- main --------------------------------------

if __name__ == "__main__":
    input_dim = (4, 16, 16)    # (C, H, W) as expected by FCQ
    output_dim = 4
    batch = 2

    key = jax.random.PRNGKey(0)
    kx, kp = jax.random.split(key)
    x = jax.random.normal(kx, (batch,) + input_dim, dtype=jnp.float32)
    params = init_fcq_params(kp, input_dim, output_dim)
    prep = prepare_params(params)          # one-time weight re-layout (not jitted)

    out = jax.block_until_ready(fcq_forward(x, prep))
    ref = jax.block_until_ready(fcq_forward_reference(x, params))

    assert out.shape == (batch, output_dim), out.shape
    if not jnp.allclose(out, ref, rtol=1e-2, atol=1e-2):
        raise AssertionError(f"mismatch: max abs err "
                             f"{float(jnp.max(jnp.abs(out - ref)))}")
    print("KERNEL_OK")
</pallas_src>

<mosaic_0001>
module attributes {stable_mosaic.version = 11 : i64} {
  func.func @kernel(%arg0: memref<392x36xbf16, #tpu.memory_space<any>>, %arg1: memref<36x128xbf16, #tpu.memory_space<vmem>>, %arg2: memref<1x128xf32, #tpu.memory_space<vmem>>, %arg3: memref<7x7x128x128xbf16, #tpu.memory_space<any>>, %arg4: memref<1x32xf32, #tpu.memory_space<vmem>>, %arg5: memref<32x4xf32, #tpu.memory_space<vmem>>, %arg6: memref<1x4xf32, #tpu.memory_space<vmem>>, %arg7: memref<2x4xf32, #tpu.memory_space<vmem>>, %arg8: memref<392x36xbf16, #tpu.memory_space<vmem>>, %arg9: memref<7x7x128x128xbf16, #tpu.memory_space<vmem>>, %arg10: memref<8x!tpu.dma_semaphore, #tpu.memory_space<semaphore_mem>>) attributes {dimension_semantics = [], scalar_prefetch = 0 : i64, scratch_operands = 3 : i64, tpu.core_type = #tpu.core_type<tc>} {
    %c7_i32 = arith.constant 7 : i32
    %0 = tpu.memref_slice %arg10[%c7_i32] : memref<8x!tpu.dma_semaphore, #tpu.memory_space<semaphore_mem>> -> memref<1x!tpu.dma_semaphore, #tpu.memory_space<semaphore_mem>>
    %1 = tpu.memref_squeeze %0 : memref<1x!tpu.dma_semaphore, #tpu.memory_space<semaphore_mem>> -> memref<!tpu.dma_semaphore, #tpu.memory_space<semaphore_mem>>
    tpu.enqueue_dma source(%arg0 : memref<392x36xbf16, #tpu.memory_space<any>>) target(%arg8 : memref<392x36xbf16, #tpu.memory_space<vmem>>) target_semaphore(%1 : memref<!tpu.dma_semaphore, #tpu.memory_space<semaphore_mem>>)
    %c0_i32 = arith.constant 0 : i32
    %c0_i32_0 = arith.constant 0 : i32
    %c0_i32_1 = arith.constant 0 : i32
    %c0_i32_2 = arith.constant 0 : i32
    %c0_i32_3 = arith.constant 0 : i32
    %c0_i32_4 = arith.constant 0 : i32
    %2 = tpu.memref_slice %arg3[%c0_i32, %c0_i32_2, %c0_i32_3, %c0_i32_4] : memref<7x7x128x128xbf16, #tpu.memory_space<any>> -> memref<1x7x128x128xbf16, #tpu.memory_space<any>>
    %3 = tpu.memref_squeeze %2 : memref<1x7x128x128xbf16, #tpu.memory_space<any>> -> memref<7x128x128xbf16, #tpu.memory_space<any>>
    %c0_i32_5 = arith.constant 0 : i32
    %c0_i32_6 = arith.constant 0 : i32
    %c0_i32_7 = arith.constant 0 : i32
    %4 = tpu.memref_slice %arg9[%c0_i32_0, %c0_i32_5, %c0_i32_6, %c0_i32_7] : memref<7x7x128x128xbf16, #tpu.memory_space<vmem>> -> memref<1x7x128x128xbf16, #tpu.memory_space<vmem>>
    %5 = tpu.memref_squeeze %4 : memref<1x7x128x128xbf16, #tpu.memory_space<vmem>> -> memref<7x128x128xbf16, #tpu.memory_space<vmem>>
    %6 = tpu.memref_slice %arg10[%c0_i32_1] : memref<8x!tpu.dma_semaphore, #tpu.memory_space<semaphore_mem>> -> memref<1x!tpu.dma_semaphore, #tpu.memory_space<semaphore_mem>>
    %7 = tpu.memref_squeeze %6 : memref<1x!tpu.dma_semaphore, #tpu.memory_space<semaphore_mem>> -> memref<!tpu.dma_semaphore, #tpu.memory_space<semaphore_mem>>
    tpu.enqueue_dma source(%3 : memref<7x128x128xbf16, #tpu.memory_space<any>>) target(%5 : memref<7x128x128xbf16, #tpu.memory_space<vmem>>) target_semaphore(%7 : memref<!tpu.dma_semaphore, #tpu.memory_space<semaphore_mem>>)
    %c1_i32 = arith.constant 1 : i32
    %c1_i32_8 = arith.constant 1 : i32
    %c1_i32_9 = arith.constant 1 : i32
    %c0_i32_10 = arith.constant 0 : i32
    %c0_i32_11 = arith.constant 0 : i32
    %c0_i32_12 = arith.constant 0 : i32
    %8 = tpu.memref_slice %arg3[%c1_i32, %c0_i32_10, %c0_i32_11, %c0_i32_12] : memref<7x7x128x128xbf16, #tpu.memory_space<any>> -> memref<1x7x128x128xbf16, #tpu.memory_space<any>>
    %9 = tpu.memref_squeeze %8 : memref<1x7x128x128xbf16, #tpu.memory_space<any>> -> memref<7x128x128xbf16, #tpu.memory_space<any>>
    %c0_i32_13 = arith.constant 0 : i32
    %c0_i32_14 = arith.constant 0 : i32
    %c0_i32_15 = arith.constant 0 : i32
    %10 = tpu.memref_slice %arg9[%c1_i32_8, %c0_i32_13, %c0_i32_14, %c0_i32_15] : memref<7x7x128x128xbf16, #tpu.memory_space<vmem>> -> memref<1x7x128x128xbf16, #tpu.memory_space<vmem>>
    %11 = tpu.memref_squeeze %10 : memref<1x7x128x128xbf16, #tpu.memory_space<vmem>> -> memref<7x128x128xbf16, #tpu.memory_space<vmem>>
    %12 = tpu.memref_slice %arg10[%c1_i32_9] : memref<8x!tpu.dma_semaphore, #tpu.memory_space<semaphore_mem>> -> memref<1x!tpu.dma_semaphore, #tpu.memory_space<semaphore_mem>>
    %13 = tpu.memref_squeeze %12 : memref<1x!tpu.dma_semaphore, #tpu.memory_space<semaphore_mem>> -> memref<!tpu.dma_semaphore, #tpu.memory_space<semaphore_mem>>
    tpu.enqueue_dma source(%9 : memref<7x128x128xbf16, #tpu.memory_space<any>>) target(%11 : memref<7x128x128xbf16, #tpu.memory_space<vmem>>) target_semaphore(%13 : memref<!tpu.dma_semaphore, #tpu.memory_space<semaphore_mem>>)
    %c2_i32 = arith.constant 2 : i32
    %c2_i32_16 = arith.constant 2 : i32
    %c2_i32_17 = arith.constant 2 : i32
    %c0_i32_18 = arith.constant 0 : i32
    %c0_i32_19 = arith.constant 0 : i32
    %c0_i32_20 = arith.constant 0 : i32
    %14 = tpu.memref_slice %arg3[%c2_i32, %c0_i32_18, %c0_i32_19, %c0_i32_20] : memref<7x7x128x128xbf16, #tpu.memory_space<any>> -> memref<1x7x128x128xbf16, #tpu.memory_space<any>>
    %15 = tpu.memref_squeeze %14 : memref<1x7x128x128xbf16, #tpu.memory_space<any>> -> memref<7x128x128xbf16, #tpu.memory_space<any>>
    %c0_i32_21 = arith.constant 0 : i32
    %c0_i32_22 = arith.constant 0 : i32
    %c0_i32_23 = arith.constant 0 : i32
    %16 = tpu.memref_slice %arg9[%c2_i32_16, %c0_i32_21, %c0_i32_22, %c0_i32_23] : memref<7x7x128x128xbf16, #tpu.memory_space<vmem>> -> memref<1x7x128x128xbf16, #tpu.memory_space<vmem>>
    %17 = tpu.memref_squeeze %16 : memref<1x7x128x128xbf16, #tpu.memory_space<vmem>> -> memref<7x128x128xbf16, #tpu.memory_space<vmem>>
    %18 = tpu.memref_slice %arg10[%c2_i32_17] : memref<8x!tpu.dma_semaphore, #tpu.memory_space<semaphore_mem>> -> memref<1x!tpu.dma_semaphore, #tpu.memory_space<semaphore_mem>>
    %19 = tpu.memref_squeeze %18 : memref<1x!tpu.dma_semaphore, #tpu.memory_space<semaphore_mem>> -> memref<!tpu.dma_semaphore, #tpu.memory_space<semaphore_mem>>
    tpu.enqueue_dma source(%15 : memref<7x128x128xbf16, #tpu.memory_space<any>>) target(%17 : memref<7x128x128xbf16, #tpu.memory_space<vmem>>) target_semaphore(%19 : memref<!tpu.dma_semaphore, #tpu.memory_space<semaphore_mem>>)
    %c3_i32 = arith.constant 3 : i32
    %c3_i32_24 = arith.constant 3 : i32
    %c3_i32_25 = arith.constant 3 : i32
    %c0_i32_26 = arith.constant 0 : i32
    %c0_i32_27 = arith.constant 0 : i32
    %c0_i32_28 = arith.constant 0 : i32
    %20 = tpu.memref_slice %arg3[%c3_i32, %c0_i32_26, %c0_i32_27, %c0_i32_28] : memref<7x7x128x128xbf16, #tpu.memory_space<any>> -> memref<1x7x128x128xbf16, #tpu.memory_space<any>>
    %21 = tpu.memref_squeeze %20 : memref<1x7x128x128xbf16, #tpu.memory_space<any>> -> memref<7x128x128xbf16, #tpu.memory_space<any>>
    %c0_i32_29 = arith.constant 0 : i32
    %c0_i32_30 = arith.constant 0 : i32
    %c0_i32_31 = arith.constant 0 : i32
    %22 = tpu.memref_slice %arg9[%c3_i32_24, %c0_i32_29, %c0_i32_30, %c0_i32_31] : memref<7x7x128x128xbf16, #tpu.memory_space<vmem>> -> memref<1x7x128x128xbf16, #tpu.memory_space<vmem>>
    %23 = tpu.memref_squeeze %22 : memref<1x7x128x128xbf16, #tpu.memory_space<vmem>> -> memref<7x128x128xbf16, #tpu.memory_space<vmem>>
    %24 = tpu.memref_slice %arg10[%c3_i32_25] : memref<8x!tpu.dma_semaphore, #tpu.memory_space<semaphore_mem>> -> memref<1x!tpu.dma_semaphore, #tpu.memory_space<semaphore_mem>>
    %25 = tpu.memref_squeeze %24 : memref<1x!tpu.dma_semaphore, #tpu.memory_space<semaphore_mem>> -> memref<!tpu.dma_semaphore, #tpu.memory_space<semaphore_mem>>
    tpu.enqueue_dma source(%21 : memref<7x128x128xbf16, #tpu.memory_space<any>>) target(%23 : memref<7x128x128xbf16, #tpu.memory_space<vmem>>) target_semaphore(%25 : memref<!tpu.dma_semaphore, #tpu.memory_space<semaphore_mem>>)
    %c4_i32 = arith.constant 4 : i32
    %c4_i32_32 = arith.constant 4 : i32
    %c4_i32_33 = arith.constant 4 : i32
    %c0_i32_34 = arith.constant 0 : i32
    %c0_i32_35 = arith.constant 0 : i32
    %c0_i32_36 = arith.constant 0 : i32
    %26 = tpu.memref_slice %arg3[%c4_i32, %c0_i32_34, %c0_i32_35, %c0_i32_36] : memref<7x7x128x128xbf16, #tpu.memory_space<any>> -> memref<1x7x128x128xbf16, #tpu.memory_space<any>>
    %27 = tpu.memref_squeeze %26 : memref<1x7x128x128xbf16, #tpu.memory_space<any>> -> memref<7x128x128xbf16, #tpu.memory_space<any>>
    %c0_i32_37 = arith.constant 0 : i32
    %c0_i32_38 = arith.constant 0 : i32
    %c0_i32_39 = arith.constant 0 : i32
    %28 = tpu.memref_slice %arg9[%c4_i32_32, %c0_i32_37, %c0_i32_38, %c0_i32_39] : memref<7x7x128x128xbf16, #tpu.memory_space<vmem>> -> memref<1x7x128x128xbf16, #tpu.memory_space<vmem>>
    %29 = tpu.memref_squeeze %28 : memref<1x7x128x128xbf16, #tpu.memory_space<vmem>> -> memref<7x128x128xbf16, #tpu.memory_space<vmem>>
    %30 = tpu.memref_slice %arg10[%c4_i32_33] : memref<8x!tpu.dma_semaphore, #tpu.memory_space<semaphore_mem>> -> memref<1x!tpu.dma_semaphore, #tpu.memory_space<semaphore_mem>>
    %31 = tpu.memref_squeeze %30 : memref<1x!tpu.dma_semaphore, #tpu.memory_space<semaphore_mem>> -> memref<!tpu.dma_semaphore, #tpu.memory_space<semaphore_mem>>
    tpu.enqueue_dma source(%27 : memref<7x128x128xbf16, #tpu.memory_space<any>>) target(%29 : memref<7x128x128xbf16, #tpu.memory_space<vmem>>) target_semaphore(%31 : memref<!tpu.dma_semaphore, #tpu.memory_space<semaphore_mem>>)
    %c5_i32 = arith.constant 5 : i32
    %c5_i32_40 = arith.constant 5 : i32
    %c5_i32_41 = arith.constant 5 : i32
    %c0_i32_42 = arith.constant 0 : i32
    %c0_i32_43 = arith.constant 0 : i32
    %c0_i32_44 = arith.constant 0 : i32
    %32 = tpu.memref_slice %arg3[%c5_i32, %c0_i32_42, %c0_i32_43, %c0_i32_44] : memref<7x7x128x128xbf16, #tpu.memory_space<any>> -> memref<1x7x128x128xbf16, #tpu.memory_space<any>>
    %33 = tpu.memref_squeeze %32 : memref<1x7x128x128xbf16, #tpu.memory_space<any>> -> memref<7x128x128xbf16, #tpu.memory_space<any>>
    %c0_i32_45 = arith.constant 0 : i32
    %c0_i32_46 = arith.constant 0 : i32
    %c0_i32_47 = arith.constant 0 : i32
    %34 = tpu.memref_slice %arg9[%c5_i32_40, %c0_i32_45, %c0_i32_46, %c0_i32_47] : memref<7x7x128x128xbf16, #tpu.memory_space<vmem>> -> memref<1x7x128x128xbf16, #tpu.memory_space<vmem>>
    %35 = tpu.memref_squeeze %34 : memref<1x7x128x128xbf16, #tpu.memory_space<vmem>> -> memref<7x128x128xbf16, #tpu.memory_space<vmem>>
    %36 = tpu.memref_slice %arg10[%c5_i32_41] : memref<8x!tpu.dma_semaphore, #tpu.memory_space<semaphore_mem>> -> memref<1x!tpu.dma_semaphore, #tpu.memory_space<semaphore_mem>>
    %37 = tpu.memref_squeeze %36 : memref<1x!tpu.dma_semaphore, #tpu.memory_space<semaphore_mem>> -> memref<!tpu.dma_semaphore, #tpu.memory_space<semaphore_mem>>
    tpu.enqueue_dma source(%33 : memref<7x128x128xbf16, #tpu.memory_space<any>>) target(%35 : memref<7x128x128xbf16, #tpu.memory_space<vmem>>) target_semaphore(%37 : memref<!tpu.dma_semaphore, #tpu.memory_space<semaphore_mem>>)
    %c6_i32 = arith.constant 6 : i32
    %c6_i32_48 = arith.constant 6 : i32
    %c6_i32_49 = arith.constant 6 : i32
    %c0_i32_50 = arith.constant 0 : i32
    %c0_i32_51 = arith.constant 0 : i32
    %c0_i32_52 = arith.constant 0 : i32
    %38 = tpu.memref_slice %arg3[%c6_i32, %c0_i32_50, %c0_i32_51, %c0_i32_52] : memref<7x7x128x128xbf16, #tpu.memory_space<any>> -> memref<1x7x128x128xbf16, #tpu.memory_space<any>>
    %39 = tpu.memref_squeeze %38 : memref<1x7x128x128xbf16, #tpu.memory_space<any>> -> memref<7x128x128xbf16, #tpu.memory_space<any>>
    %c0_i32_53 = arith.constant 0 : i32
    %c0_i32_54 = arith.constant 0 : i32
    %c0_i32_55 = arith.constant 0 : i32
    %40 = tpu.memref_slice %arg9[%c6_i32_48, %c0_i32_53, %c0_i32_54, %c0_i32_55] : memref<7x7x128x128xbf16, #tpu.memory_space<vmem>> -> memref<1x7x128x128xbf16, #tpu.memory_space<vmem>>
    %41 = tpu.memref_squeeze %40 : memref<1x7x128x128xbf16, #tpu.memory_space<vmem>> -> memref<7x128x128xbf16, #tpu.memory_space<vmem>>
    %42 = tpu.memref_slice %arg10[%c6_i32_49] : memref<8x!tpu.dma_semaphore, #tpu.memory_space<semaphore_mem>> -> memref<1x!tpu.dma_semaphore, #tpu.memory_space<semaphore_mem>>
    %43 = tpu.memref_squeeze %42 : memref<1x!tpu.dma_semaphore, #tpu.memory_space<semaphore_mem>> -> memref<!tpu.dma_semaphore, #tpu.memory_space<semaphore_mem>>
    tpu.enqueue_dma source(%39 : memref<7x128x128xbf16, #tpu.memory_space<any>>) target(%41 : memref<7x128x128xbf16, #tpu.memory_space<vmem>>) target_semaphore(%43 : memref<!tpu.dma_semaphore, #tpu.memory_space<semaphore_mem>>)
    %c7_i32_56 = arith.constant 7 : i32
    %44 = tpu.memref_slice %arg10[%c7_i32_56] : memref<8x!tpu.dma_semaphore, #tpu.memory_space<semaphore_mem>> -> memref<1x!tpu.dma_semaphore, #tpu.memory_space<semaphore_mem>>
    %45 = tpu.memref_squeeze %44 : memref<1x!tpu.dma_semaphore, #tpu.memory_space<semaphore_mem>> -> memref<!tpu.dma_semaphore, #tpu.memory_space<semaphore_mem>>
    tpu.wait_dma2 semaphore(%45 : memref<!tpu.dma_semaphore, #tpu.memory_space<semaphore_mem>>) src(%arg0 : memref<392x36xbf16, #tpu.memory_space<any>>) dst(%arg8 : memref<392x36xbf16, #tpu.memory_space<vmem>>)
    %c0 = arith.constant 0 : index
    %c0_57 = arith.constant 0 : index
    %46 = vector.load %arg8[%c0, %c0_57] : memref<392x36xbf16, #tpu.memory_space<vmem>>, vector<392x36xbf16>
    %c0_58 = arith.constant 0 : index
    %c0_59 = arith.constant 0 : index
    %47 = vector.load %arg1[%c0_58, %c0_59] : memref<36x128xbf16, #tpu.memory_space<vmem>>, vector<36x128xbf16>
    %cst = arith.constant dense<0.000000e+00> : vector<392x128xf32>
    %48 = tpu.matmul %46, %47, %cst {dimension_numbers = #tpu.dot_dimension_numbers<[1], [0], [0], [1], [0, 0, 1, 1], [], []>} : vector<392x36xbf16>, vector<36x128xbf16>, vector<392x128xf32> -> vector<392x128xf32>
    %c0_60 = arith.constant 0 : index
    %c0_61 = arith.constant 0 : index
    %49 = vector.load %arg2[%c0_60, %c0_61] : memref<1x128xf32, #tpu.memory_space<vmem>>, vector<1x128xf32>
    %50 = vector.broadcast %49 : vector<1x128xf32> to vector<392x128xf32>
    %51 = arith.addf %48, %50 : vector<392x128xf32>
    %cst_62 = arith.constant 0.000000e+00 : f32
    %52 = vector.broadcast %cst_62 : f32 to vector<392x128xf32>
    %53 = arith.maximumf %51, %52 : vector<392x128xf32>
    %54 = arith.truncf %53 : vector<392x128xf32> to vector<392x128xbf16>
    %cst_63 = arith.constant 0.000000e+00 : f32
    %55 = vector.broadcast %cst_63 : f32 to vector<8x128xf32>
    %c0_i32_64 = arith.constant 0 : i32
    %c0_i32_65 = arith.constant 0 : i32
    %c0_i32_66 = arith.constant 0 : i32
    %c0_i32_67 = arith.constant 0 : i32
    %c0_i32_68 = arith.constant 0 : i32
    %c0_i32_69 = arith.constant 0 : i32
    %56 = tpu.memref_slice %arg3[%c0_i32_64, %c0_i32_67, %c0_i32_68, %c0_i32_69] : memref<7x7x128x128xbf16, #tpu.memory_space<any>> -> memref<1x7x128x128xbf16, #tpu.memory_space<any>>
    %57 = tpu.memref_squeeze %56 : memref<1x7x128x128xbf16, #tpu.memory_space<any>> -> memref<7x128x128xbf16, #tpu.memory_space<any>>
    %c0_i32_70 = arith.constant 0 : i32
    %c0_i32_71 = arith.constant 0 : i32
    %c0_i32_72 = arith.constant 0 : i32
    %58 = tpu.memref_slice %arg9[%c0_i32_65, %c0_i32_70, %c0_i32_71, %c0_i32_72] : memref<7x7x128x128xbf16, #tpu.memory_space<vmem>> -> memref<1x7x128x128xbf16, #tpu.memory_space<vmem>>
    %59 = tpu.memref_squeeze %58 : memref<1x7x128x128xbf16, #tpu.memory_space<vmem>> -> memref<7x128x128xbf16, #tpu.memory_space<vmem>>
    %60 = tpu.memref_slice %arg10[%c0_i32_66] : memref<8x!tpu.dma_semaphore, #tpu.memory_space<semaphore_mem>> -> memref<1x!tpu.dma_semaphore, #tpu.memory_space<semaphore_mem>>
    %61 = tpu.memref_squeeze %60 : memref<1x!tpu.dma_semaphore, #tpu.memory_space<semaphore_mem>> -> memref<!tpu.dma_semaphore, #tpu.memory_space<semaphore_mem>>
    tpu.wait_dma2 semaphore(%61 : memref<!tpu.dma_semaphore, #tpu.memory_space<semaphore_mem>>) src(%57 : memref<7x128x128xbf16, #tpu.memory_space<any>>) dst(%59 : memref<7x128x128xbf16, #tpu.memory_space<vmem>>)
    %62 = vector.extract_strided_slice %54 {offsets = [0, 0], sizes = [8, 128], strides = [1, 1]} : vector<392x128xbf16> to vector<8x128xbf16>
    %c0_73 = arith.constant 0 : index
    %c0_74 = arith.constant 0 : index
    %c0_75 = arith.constant 0 : index
    %c0_76 = arith.constant 0 : index
    %63 = vector.load %arg9[%c0_73, %c0_74, %c0_75, %c0_76] : memref<7x7x128x128xbf16, #tpu.memory_space<vmem>>, vector<1x1x128x128xbf16>
    %64 = vector.shape_cast %63 : vector<1x1x128x128xbf16> to vector<128x128xbf16>
    %cst_77 = arith.constant dense<0.000000e+00> : vector<8x128xf32>
    %65 = tpu.matmul %62, %64, %cst_77 {dimension_numbers = #tpu.dot_dimension_numbers<[1], [0], [0], [1], [0, 0, 1, 1], [], []>} : vector<8x128xbf16>, vector<128x128xbf16>, vector<8x128xf32> -> vector<8x128xf32>
    %66 = arith.addf %55, %65 : vector<8x128xf32>
    %67 = vector.extract_strided_slice %54 {offsets = [8, 0], sizes = [8, 128], strides = [1, 1]} : vector<392x128xbf16> to vector<8x128xbf16>
    %c0_78 = arith.constant 0 : index
    %c1 = arith.constant 1 : index
    %c0_79 = arith.constant 0 : index
    %c0_80 = arith.constant 0 : index
    %68 = vector.load %arg9[%c0_78, %c1, %c0_79, %c0_80] : memref<7x7x128x128xbf16, #tpu.memory_space<vmem>>, vector<1x1x128x128xbf16>
    %69 = vector.shape_cast %68 : vector<1x1x128x128xbf16> to vector<128x128xbf16>
    %cst_81 = arith.constant dense<0.000000e+00> : vector<8x128xf32>
    %70 = tpu.matmul %67, %69, %cst_81 {dimension_numbers = #tpu.dot_dimension_numbers<[1], [0], [0], [1], [0, 0, 1, 1], [], []>} : vector<8x128xbf16>, vector<128x128xbf16>, vector<8x128xf32> -> vector<8x128xf32>
    %71 = arith.addf %66, %70 : vector<8x128xf32>
    %72 = vector.extract_strided_slice %54 {offsets = [16, 0], sizes = [8, 128], strides = [1, 1]} : vector<392x128xbf16> to vector<8x128xbf16>
    %c0_82 = arith.constant 0 : index
    %c2 = arith.constant 2 : index
    %c0_83 = arith.constant 0 : index
    %c0_84 = arith.constant 0 : index
    %73 = vector.load %arg9[%c0_82, %c2, %c0_83, %c0_84] : memref<7x7x128x128xbf16, #tpu.memory_space<vmem>>, vector<1x1x128x128xbf16>
    %74 = vector.shape_cast %73 : vector<1x1x128x128xbf16> to vector<128x128xbf16>
    %cst_85 = arith.constant dense<0.000000e+00> : vector<8x128xf32>
    %75 = tpu.matmul %72, %74, %cst_85 {dimension_numbers = #tpu.dot_dimension_numbers<[1], [0], [0], [1], [0, 0, 1, 1], [], []>} : vector<8x128xbf16>, vector<128x128xbf16>, vector<8x128xf32> -> vector<8x128xf32>
    %76 = arith.addf %71, %75 : vector<8x128xf32>
    %77 = vector.extract_strided_slice %54 {offsets = [24, 0], sizes = [8, 128], strides = [1, 1]} : vector<392x128xbf16> to vector<8x128xbf16>
    %c0_86 = arith.constant 0 : index
    %c3 = arith.constant 3 : index
    %c0_87 = arith.constant 0 : index
    %c0_88 = arith.constant 0 : index
    %78 = vector.load %arg9[%c0_86, %c3, %c0_87, %c0_88] : memref<7x7x128x128xbf16, #tpu.memory_space<vmem>>, vector<1x1x128x128xbf16>
    %79 = vector.shape_cast %78 : vector<1x1x128x128xbf16> to vector<128x128xbf16>
    %cst_89 = arith.constant dense<0.000000e+00> : vector<8x128xf32>
    %80 = tpu.matmul %77, %79, %cst_89 {dimension_numbers = #tpu.dot_dimension_numbers<[1], [0], [0], [1], [0, 0, 1, 1], [], []>} : vector<8x128xbf16>, vector<128x128xbf16>, vector<8x128xf32> -> vector<8x128xf32>
    %81 = arith.addf %76, %80 : vector<8x128xf32>
    %82 = vector.extract_strided_slice %54 {offsets = [32, 0], sizes = [8, 128], strides = [1, 1]} : vector<392x128xbf16> to vector<8x128xbf16>
    %c0_90 = arith.constant 0 : index
    %c4 = arith.constant 4 : index
    %c0_91 = arith.constant 0 : index
    %c0_92 = arith.constant 0 : index
    %83 = vector.load %arg9[%c0_90, %c4, %c0_91, %c0_92] : memref<7x7x128x128xbf16, #tpu.memory_space<vmem>>, vector<1x1x128x128xbf16>
    %84 = vector.shape_cast %83 : vector<1x1x128x128xbf16> to vector<128x128xbf16>
    %cst_93 = arith.constant dense<0.000000e+00> : vector<8x128xf32>
    %85 = tpu.matmul %82, %84, %cst_93 {dimension_numbers = #tpu.dot_dimension_numbers<[1], [0], [0], [1], [0, 0, 1, 1], [], []>} : vector<8x128xbf16>, vector<128x128xbf16>, vector<8x128xf32> -> vector<8x128xf32>
    %86 = arith.addf %81, %85 : vector<8x128xf32>
    %87 = vector.extract_strided_slice %54 {offsets = [40, 0], sizes = [8, 128], strides = [1, 1]} : vector<392x128xbf16> to vector<8x128xbf16>
    %c0_94 = arith.constant 0 : index
    %c5 = arith.constant 5 : index
    %c0_95 = arith.constant 0 : index
    %c0_96 = arith.constant 0 : index
    %88 = vector.load %arg9[%c0_94, %c5, %c0_95, %c0_96] : memref<7x7x128x128xbf16, #tpu.memory_space<vmem>>, vector<1x1x128x128xbf16>
    %89 = vector.shape_cast %88 : vector<1x1x128x128xbf16> to vector<128x128xbf16>
    %cst_97 = arith.constant dense<0.000000e+00> : vector<8x128xf32>
    %90 = tpu.matmul %87, %89, %cst_97 {dimension_numbers = #tpu.dot_dimension_numbers<[1], [0], [0], [1], [0, 0, 1, 1], [], []>} : vector<8x128xbf16>, vector<128x128xbf16>, vector<8x128xf32> -> vector<8x128xf32>
    %91 = arith.addf %86, %90 : vector<8x128xf32>
    %92 = vector.extract_strided_slice %54 {offsets = [48, 0], sizes = [8, 128], strides = [1, 1]} : vector<392x128xbf16> to vector<8x128xbf16>
    %c0_98 = arith.constant 0 : index
    %c6 = arith.constant 6 : index
    %c0_99 = arith.constant 0 : index
    %c0_100 = arith.constant 0 : index
    %93 = vector.load %arg9[%c0_98, %c6, %c0_99, %c0_100] : memref<7x7x128x128xbf16, #tpu.memory_space<vmem>>, vector<1x1x128x128xbf16>
    %94 = vector.shape_cast %93 : vector<1x1x128x128xbf16> to vector<128x128xbf16>
    %cst_101 = arith.constant dense<0.000000e+00> : vector<8x128xf32>
    %95 = tpu.matmul %92, %94, %cst_101 {dimension_numbers = #tpu.dot_dimension_numbers<[1], [0], [0], [1], [0, 0, 1, 1], [], []>} : vector<8x128xbf16>, vector<128x128xbf16>, vector<8x128xf32> -> vector<8x128xf32>
    %96 = arith.addf %91, %95 : vector<8x128xf32>
    %c1_i32_102 = arith.constant 1 : i32
    %c1_i32_103 = arith.constant 1 : i32
    %c1_i32_104 = arith.constant 1 : i32
    %c0_i32_105 = arith.constant 0 : i32
    %c0_i32_106 = arith.constant 0 : i32
    %c0_i32_107 = arith.constant 0 : i32
    %97 = tpu.memref_slice %arg3[%c1_i32_102, %c0_i32_105, %c0_i32_106, %c0_i32_107] : memref<7x7x128x128xbf16, #tpu.memory_space<any>> -> memref<1x7x128x128xbf16, #tpu.memory_space<any>>
    %98 = tpu.memref_squeeze %97 : memref<1x7x128x128xbf16, #tpu.memory_space<any>> -> memref<7x128x128xbf16, #tpu.memory_space<any>>
    %c0_i32_108 = arith.constant 0 : i32
    %c0_i32_109 = arith.constant 0 : i32
    %c0_i32_110 = arith.constant 0 : i32
    %99 = tpu.memref_slice %arg9[%c1_i32_103, %c0_i32_108, %c0_i32_109, %c0_i32_110] : memref<7x7x128x128xbf16, #tpu.memory_space<vmem>> -> memref<1x7x128x128xbf16, #tpu.memory_space<vmem>>
    %100 = tpu.memref_squeeze %99 : memref<1x7x128x128xbf16, #tpu.memory_space<vmem>> -> memref<7x128x128xbf16, #tpu.memory_space<vmem>>
    %101 = tpu.memref_slice %arg10[%c1_i32_104] : memref<8x!tpu.dma_semaphore, #tpu.memory_space<semaphore_mem>> -> memref<1x!tpu.dma_semaphore, #tpu.memory_space<semaphore_mem>>
    %102 = tpu.memref_squeeze %101 : memref<1x!tpu.dma_semaphore, #tpu.memory_space<semaphore_mem>> -> memref<!tpu.dma_semaphore, #tpu.memory_space<semaphore_mem>>
    tpu.wait_dma2 semaphore(%102 : memref<!tpu.dma_semaphore, #tpu.memory_space<semaphore_mem>>) src(%98 : memref<7x128x128xbf16, #tpu.memory_space<any>>) dst(%100 : memref<7x128x128xbf16, #tpu.memory_space<vmem>>)
    %103 = vector.extract_strided_slice %54 {offsets = [56, 0], sizes = [8, 128], strides = [1, 1]} : vector<392x128xbf16> to vector<8x128xbf16>
    %c1_111 = arith.constant 1 : index
    %c0_112 = arith.constant 0 : index
    %c0_113 = arith.constant 0 : index
    %c0_114 = arith.constant 0 : index
    %104 = vector.load %arg9[%c1_111, %c0_112, %c0_113, %c0_114] : memref<7x7x128x128xbf16, #tpu.memory_space<vmem>>, vector<1x1x128x128xbf16>
    %105 = vector.shape_cast %104 : vector<1x1x128x128xbf16> to vector<128x128xbf16>
    %cst_115 = arith.constant dense<0.000000e+00> : vector<8x128xf32>
    %106 = tpu.matmul %103, %105, %cst_115 {dimension_numbers = #tpu.dot_dimension_numbers<[1], [0], [0], [1], [0, 0, 1, 1], [], []>} : vector<8x128xbf16>, vector<128x128xbf16>, vector<8x128xf32> -> vector<8x128xf32>
    %107 = arith.addf %96, %106 : vector<8x128xf32>
    %108 = vector.extract_strided_slice %54 {offsets = [64, 0], sizes = [8, 128], strides = [1, 1]} : vector<392x128xbf16> to vector<8x128xbf16>
    %c1_116 = arith.constant 1 : index
    %c1_117 = arith.constant 1 : index
    %c0_118 = arith.constant 0 : index
    %c0_119 = arith.constant 0 : index
    %109 = vector.load %arg9[%c1_116, %c1_117, %c0_118, %c0_119] : memref<7x7x128x128xbf16, #tpu.memory_space<vmem>>, vector<1x1x128x128xbf16>
    %110 = vector.shape_cast %109 : vector<1x1x128x128xbf16> to vector<128x128xbf16>
    %cst_120 = arith.constant dense<0.000000e+00> : vector<8x128xf32>
    %111 = tpu.matmul %108, %110, %cst_120 {dimension_numbers = #tpu.dot_dimension_numbers<[1], [0], [0], [1], [0, 0, 1, 1], [], []>} : vector<8x128xbf16>, vector<128x128xbf16>, vector<8x128xf32> -> vector<8x128xf32>
    %112 = arith.addf %107, %111 : vector<8x128xf32>
    %113 = vector.extract_strided_slice %54 {offsets = [72, 0], sizes = [8, 128], strides = [1, 1]} : vector<392x128xbf16> to vector<8x128xbf16>
    %c1_121 = arith.constant 1 : index
    %c2_122 = arith.constant 2 : index
    %c0_123 = arith.constant 0 : index
    %c0_124 = arith.constant 0 : index
    %114 = vector.load %arg9[%c1_121, %c2_122, %c0_123, %c0_124] : memref<7x7x128x128xbf16, #tpu.memory_space<vmem>>, vector<1x1x128x128xbf16>
    %115 = vector.shape_cast %114 : vector<1x1x128x128xbf16> to vector<128x128xbf16>
    %cst_125 = arith.constant dense<0.000000e+00> : vector<8x128xf32>
    %116 = tpu.matmul %113, %115, %cst_125 {dimension_numbers = #tpu.dot_dimension_numbers<[1], [0], [0], [1], [0, 0, 1, 1], [], []>} : vector<8x128xbf16>, vector<128x128xbf16>, vector<8x128xf32> -> vector<8x128xf32>
    %117 = arith.addf %112, %116 : vector<8x128xf32>
    %118 = vector.extract_strided_slice %54 {offsets = [80, 0], sizes = [8, 128], strides = [1, 1]} : vector<392x128xbf16> to vector<8x128xbf16>
    %c1_126 = arith.constant 1 : index
    %c3_127 = arith.constant 3 : index
    %c0_128 = arith.constant 0 : index
    %c0_129 = arith.constant 0 : index
    %119 = vector.load %arg9[%c1_126, %c3_127, %c0_128, %c0_129] : memref<7x7x128x128xbf16, #tpu.memory_space<vmem>>, vector<1x1x128x128xbf16>
    %120 = vector.shape_cast %119 : vector<1x1x128x128xbf16> to vector<128x128xbf16>
    %cst_130 = arith.constant dense<0.000000e+00> : vector<8x128xf32>
    %121 = tpu.matmul %118, %120, %cst_130 {dimension_numbers = #tpu.dot_dimension_numbers<[1], [0], [0], [1], [0, 0, 1, 1], [], []>} : vector<8x128xbf16>, vector<128x128xbf16>, vector<8x128xf32> -> vector<8x128xf32>
    %122 = arith.addf %117, %121 : vector<8x128xf32>
    %123 = vector.extract_strided_slice %54 {offsets = [88, 0], sizes = [8, 128], strides = [1, 1]} : vector<392x128xbf16> to vector<8x128xbf16>
    %c1_131 = arith.constant 1 : index
    %c4_132 = arith.constant 4 : index
    %c0_133 = arith.constant 0 : index
    %c0_134 = arith.constant 0 : index
    %124 = vector.load %arg9[%c1_131, %c4_132, %c0_133, %c0_134] : memref<7x7x128x128xbf16, #tpu.memory_space<vmem>>, vector<1x1x128x128xbf16>
    %125 = vector.shape_cast %124 : vector<1x1x128x128xbf16> to vector<128x128xbf16>
    %cst_135 = arith.constant dense<0.000000e+00> : vector<8x128xf32>
    %126 = tpu.matmul %123, %125, %cst_135 {dimension_numbers = #tpu.dot_dimension_numbers<[1], [0], [0], [1], [0, 0, 1, 1], [], []>} : vector<8x128xbf16>, vector<128x128xbf16>, vector<8x128xf32> -> vector<8x128xf32>
    %127 = arith.addf %122, %126 : vector<8x128xf32>
    %128 = vector.extract_strided_slice %54 {offsets = [96, 0], sizes = [8, 128], strides = [1, 1]} : vector<392x128xbf16> to vector<8x128xbf16>
    %c1_136 = arith.constant 1 : index
    %c5_137 = arith.constant 5 : index
    %c0_138 = arith.constant 0 : index
    %c0_139 = arith.constant 0 : index
    %129 = vector.load %arg9[%c1_136, %c5_137, %c0_138, %c0_139] : memref<7x7x128x128xbf16, #tpu.memory_space<vmem>>, vector<1x1x128x128xbf16>
    %130 = vector.shape_cast %129 : vector<1x1x128x128xbf16> to vector<128x128xbf16>
    %cst_140 = arith.constant dense<0.000000e+00> : vector<8x128xf32>
    %131 = tpu.matmul %128, %130, %cst_140 {dimension_numbers = #tpu.dot_dimension_numbers<[1], [0], [0], [1], [0, 0, 1, 1], [], []>} : vector<8x128xbf16>, vector<128x128xbf16>, vector<8x128xf32> -> vector<8x128xf32>
    %132 = arith.addf %127, %131 : vector<8x128xf32>
    %133 = vector.extract_strided_slice %54 {offsets = [104, 0], sizes = [8, 128], strides = [1, 1]} : vector<392x128xbf16> to vector<8x128xbf16>
    %c1_141 = arith.constant 1 : index
    %c6_142 = arith.constant 6 : index
    %c0_143 = arith.constant 0 : index
    %c0_144 = arith.constant 0 : index
    %134 = vector.load %arg9[%c1_141, %c6_142, %c0_143, %c0_144] : memref<7x7x128x128xbf16, #tpu.memory_space<vmem>>, vector<1x1x128x128xbf16>
    %135 = vector.shape_cast %134 : vector<1x1x128x128xbf16> to vector<128x128xbf16>
    %cst_145 = arith.constant dense<0.000000e+00> : vector<8x128xf32>
    %136 = tpu.matmul %133, %135, %cst_145 {dimension_numbers = #tpu.dot_dimension_numbers<[1], [0], [0], [1], [0, 0, 1, 1], [], []>} : vector<8x128xbf16>, vector<128x128xbf16>, vector<8x128xf32> -> vector<8x128xf32>
    %137 = arith.addf %132, %136 : vector<8x128xf32>
    %c2_i32_146 = arith.constant 2 : i32
    %c2_i32_147 = arith.constant 2 : i32
    %c2_i32_148 = arith.constant 2 : i32
    %c0_i32_149 = arith.constant 0 : i32
    %c0_i32_150 = arith.constant 0 : i32
    %c0_i32_151 = arith.constant 0 : i32
    %138 = tpu.memref_slice %arg3[%c2_i32_146, %c0_i32_149, %c0_i32_150, %c0_i32_151] : memref<7x7x128x128xbf16, #tpu.memory_space<any>> -> memref<1x7x128x128xbf16, #tpu.memory_space<any>>
    %139 = tpu.memref_squeeze %138 : memref<1x7x128x128xbf16, #tpu.memory_space<any>> -> memref<7x128x128xbf16, #tpu.memory_space<any>>
    %c0_i32_152 = arith.constant 0 : i32
    %c0_i32_153 = arith.constant 0 : i32
    %c0_i32_154 = arith.constant 0 : i32
    %140 = tpu.memref_slice %arg9[%c2_i32_147, %c0_i32_152, %c0_i32_153, %c0_i32_154] : memref<7x7x128x128xbf16, #tpu.memory_space<vmem>> -> memref<1x7x128x128xbf16, #tpu.memory_space<vmem>>
    %141 = tpu.memref_squeeze %140 : memref<1x7x128x128xbf16, #tpu.memory_space<vmem>> -> memref<7x128x128xbf16, #tpu.memory_space<vmem>>
    %142 = tpu.memref_slice %arg10[%c2_i32_148] : memref<8x!tpu.dma_semaphore, #tpu.memory_space<semaphore_mem>> -> memref<1x!tpu.dma_semaphore, #tpu.memory_space<semaphore_mem>>
    %143 = tpu.memref_squeeze %142 : memref<1x!tpu.dma_semaphore, #tpu.memory_space<semaphore_mem>> -> memref<!tpu.dma_semaphore, #tpu.memory_space<semaphore_mem>>
    tpu.wait_dma2 semaphore(%143 : memref<!tpu.dma_semaphore, #tpu.memory_space<semaphore_mem>>) src(%139 : memref<7x128x128xbf16, #tpu.memory_space<any>>) dst(%141 : memref<7x128x128xbf16, #tpu.memory_space<vmem>>)
    %144 = vector.extract_strided_slice %54 {offsets = [112, 0], sizes = [8, 128], strides = [1, 1]} : vector<392x128xbf16> to vector<8x128xbf16>
    %c2_155 = arith.constant 2 : index
    %c0_156 = arith.constant 0 : index
    %c0_157 = arith.constant 0 : index
    %c0_158 = arith.constant 0 : index
    %145 = vector.load %arg9[%c2_155, %c0_156, %c0_157, %c0_158] : memref<7x7x128x128xbf16, #tpu.memory_space<vmem>>, vector<1x1x128x128xbf16>
    %146 = vector.shape_cast %145 : vector<1x1x128x128xbf16> to vector<128x128xbf16>
    %cst_159 = arith.constant dense<0.000000e+00> : vector<8x128xf32>
    %147 = tpu.matmul %144, %146, %cst_159 {dimension_numbers = #tpu.dot_dimension_numbers<[1], [0], [0], [1], [0, 0, 1, 1], [], []>} : vector<8x128xbf16>, vector<128x128xbf16>, vector<8x128xf32> -> vector<8x128xf32>
    %148 = arith.addf %137, %147 : vector<8x128xf32>
    %149 = vector.extract_strided_slice %54 {offsets = [120, 0], sizes = [8, 128], strides = [1, 1]} : vector<392x128xbf16> to vector<8x128xbf16>
    %c2_160 = arith.constant 2 : index
    %c1_161 = arith.constant 1 : index
    %c0_162 = arith.constant 0 : index
    %c0_163 = arith.constant 0 : index
    %150 = vector.load %arg9[%c2_160, %c1_161, %c0_162, %c0_163] : memref<7x7x128x128xbf16, #tpu.memory_space<vmem>>, vector<1x1x128x128xbf16>
    %151 = vector.shape_cast %150 : vector<1x1x128x128xbf16> to vector<128x128xbf16>
    %cst_164 = arith.constant dense<0.000000e+00> : vector<8x128xf32>
    %152 = tpu.matmul %149, %151, %cst_164 {dimension_numbers = #tpu.dot_dimension_numbers<[1], [0], [0], [1], [0, 0, 1, 1], [], []>} : vector<8x128xbf16>, vector<128x128xbf16>, vector<8x128xf32> -> vector<8x128xf32>
    %153 = arith.addf %148, %152 : vector<8x128xf32>
    %154 = vector.extract_strided_slice %54 {offsets = [128, 0], sizes = [8, 128], strides = [1, 1]} : vector<392x128xbf16> to vector<8x128xbf16>
    %c2_165 = arith.constant 2 : index
    %c2_166 = arith.constant 2 : index
    %c0_167 = arith.constant 0 : index
    %c0_168 = arith.constant 0 : index
    %155 = vector.load %arg9[%c2_165, %c2_166, %c0_167, %c0_168] : memref<7x7x128x128xbf16, #tpu.memory_space<vmem>>, vector<1x1x128x128xbf16>
    %156 = vector.shape_cast %155 : vector<1x1x128x128xbf16> to vector<128x128xbf16>
    %cst_169 = arith.constant dense<0.000000e+00> : vector<8x128xf32>
    %157 = tpu.matmul %154, %156, %cst_169 {dimension_numbers = #tpu.dot_dimension_numbers<[1], [0], [0], [1], [0, 0, 1, 1], [], []>} : vector<8x128xbf16>, vector<128x128xbf16>, vector<8x128xf32> -> vector<8x128xf32>
    %158 = arith.addf %153, %157 : vector<8x128xf32>
    %159 = vector.extract_strided_slice %54 {offsets = [136, 0], sizes = [8, 128], strides = [1, 1]} : vector<392x128xbf16> to vector<8x128xbf16>
    %c2_170 = arith.constant 2 : index
    %c3_171 = arith.constant 3 : index
    %c0_172 = arith.constant 0 : index
    %c0_173 = arith.constant 0 : index
    %160 = vector.load %arg9[%c2_170, %c3_171, %c0_172, %c0_173] : memref<7x7x128x128xbf16, #tpu.memory_space<vmem>>, vector<1x1x128x128xbf16>
    %161 = vector.shape_cast %160 : vector<1x1x128x128xbf16> to vector<128x128xbf16>
    %cst_174 = arith.constant dense<0.000000e+00> : vector<8x128xf32>
    %162 = tpu.matmul %159, %161, %cst_174 {dimension_numbers = #tpu.dot_dimension_numbers<[1], [0], [0], [1], [0, 0, 1, 1], [], []>} : vector<8x128xbf16>, vector<128x128xbf16>, vector<8x128xf32> -> vector<8x128xf32>
    %163 = arith.addf %158, %162 : vector<8x128xf32>
    %164 = vector.extract_strided_slice %54 {offsets = [144, 0], sizes = [8, 128], strides = [1, 1]} : vector<392x128xbf16> to vector<8x128xbf16>
    %c2_175 = arith.constant 2 : index
    %c4_176 = arith.constant 4 : index
    %c0_177 = arith.constant 0 : index
    %c0_178 = arith.constant 0 : index
    %165 = vector.load %arg9[%c2_175, %c4_176, %c0_177, %c0_178] : memref<7x7x128x128xbf16, #tpu.memory_space<vmem>>, vector<1x1x128x128xbf16>
    %166 = vector.shape_cast %165 : vector<1x1x128x128xbf16> to vector<128x128xbf16>
    %cst_179 = arith.constant dense<0.000000e+00> : vector<8x128xf32>
    %167 = tpu.matmul %164, %166, %cst_179 {dimension_numbers = #tpu.dot_dimension_numbers<[1], [0], [0], [1], [0, 0, 1, 1], [], []>} : vector<8x128xbf16>, vector<128x128xbf16>, vector<8x128xf32> -> vector<8x128xf32>
    %168 = arith.addf %163, %167 : vector<8x128xf32>
    %169 = vector.extract_strided_slice %54 {offsets = [152, 0], sizes = [8, 128], strides = [1, 1]} : vector<392x128xbf16> to vector<8x128xbf16>
    %c2_180 = arith.constant 2 : index
    %c5_181 = arith.constant 5 : index
    %c0_182 = arith.constant 0 : index
    %c0_183 = arith.constant 0 : index
    %170 = vector.load %arg9[%c2_180, %c5_181, %c0_182, %c0_183] : memref<7x7x128x128xbf16, #tpu.memory_space<vmem>>, vector<1x1x128x128xbf16>
    %171 = vector.shape_cast %170 : vector<1x1x128x128xbf16> to vector<128x128xbf16>
    %cst_184 = arith.constant dense<0.000000e+00> : vector<8x128xf32>
    %172 = tpu.matmul %169, %171, %cst_184 {dimension_numbers = #tpu.dot_dimension_numbers<[1], [0], [0], [1], [0, 0, 1, 1], [], []>} : vector<8x128xbf16>, vector<128x128xbf16>, vector<8x128xf32> -> vector<8x128xf32>
    %173 = arith.addf %168, %172 : vector<8x128xf32>
    %174 = vector.extract_strided_slice %54 {offsets = [160, 0], sizes = [8, 128], strides = [1, 1]} : vector<392x128xbf16> to vector<8x128xbf16>
    %c2_185 = arith.constant 2 : index
    %c6_186 = arith.constant 6 : index
    %c0_187 = arith.constant 0 : index
    %c0_188 = arith.constant 0 : index
    %175 = vector.load %arg9[%c2_185, %c6_186, %c0_187, %c0_188] : memref<7x7x128x128xbf16, #tpu.memory_space<vmem>>, vector<1x1x128x128xbf16>
    %176 = vector.shape_cast %175 : vector<1x1x128x128xbf16> to vector<128x128xbf16>
    %cst_189 = arith.constant dense<0.000000e+00> : vector<8x128xf32>
    %177 = tpu.matmul %174, %176, %cst_189 {dimension_numbers = #tpu.dot_dimension_numbers<[1], [0], [0], [1], [0, 0, 1, 1], [], []>} : vector<8x128xbf16>, vector<128x128xbf16>, vector<8x128xf32> -> vector<8x128xf32>
    %178 = arith.addf %173, %177 : vector<8x128xf32>
    %c3_i32_190 = arith.constant 3 : i32
    %c3_i32_191 = arith.constant 3 : i32
    %c3_i32_192 = arith.constant 3 : i32
    %c0_i32_193 = arith.constant 0 : i32
    %c0_i32_194 = arith.constant 0 : i32
    %c0_i32_195 = arith.constant 0 : i32
    %179 = tpu.memref_slice %arg3[%c3_i32_190, %c0_i32_193, %c0_i32_194, %c0_i32_195] : memref<7x7x128x128xbf16, #tpu.memory_space<any>> -> memref<1x7x128x128xbf16, #tpu.memory_space<any>>
    %180 = tpu.memref_squeeze %179 : memref<1x7x128x128xbf16, #tpu.memory_space<any>> -> memref<7x128x128xbf16, #tpu.memory_space<any>>
    %c0_i32_196 = arith.constant 0 : i32
    %c0_i32_197 = arith.constant 0 : i32
    %c0_i32_198 = arith.constant 0 : i32
    %181 = tpu.memref_slice %arg9[%c3_i32_191, %c0_i32_196, %c0_i32_197, %c0_i32_198] : memref<7x7x128x128xbf16, #tpu.memory_space<vmem>> -> memref<1x7x128x128xbf16, #tpu.memory_space<vmem>>
    %182 = tpu.memref_squeeze %181 : memref<1x7x128x128xbf16, #tpu.memory_space<vmem>> -> memref<7x128x128xbf16, #tpu.memory_space<vmem>>
    %183 = tpu.memref_slice %arg10[%c3_i32_192] : memref<8x!tpu.dma_semaphore, #tpu.memory_space<semaphore_mem>> -> memref<1x!tpu.dma_semaphore, #tpu.memory_space<semaphore_mem>>
    %184 = tpu.memref_squeeze %183 : memref<1x!tpu.dma_semaphore, #tpu.memory_space<semaphore_mem>> -> memref<!tpu.dma_semaphore, #tpu.memory_space<semaphore_mem>>
    tpu.wait_dma2 semaphore(%184 : memref<!tpu.dma_semaphore, #tpu.memory_space<semaphore_mem>>) src(%180 : memref<7x128x128xbf16, #tpu.memory_space<any>>) dst(%182 : memref<7x128x128xbf16, #tpu.memory_space<vmem>>)
    %185 = vector.extract_strided_slice %54 {offsets = [168, 0], sizes = [8, 128], strides = [1, 1]} : vector<392x128xbf16> to vector<8x128xbf16>
    %c3_199 = arith.constant 3 : index
    %c0_200 = arith.constant 0 : index
    %c0_201 = arith.constant 0 : index
    %c0_202 = arith.constant 0 : index
    %186 = vector.load %arg9[%c3_199, %c0_200, %c0_201, %c0_202] : memref<7x7x128x128xbf16, #tpu.memory_space<vmem>>, vector<1x1x128x128xbf16>
    %187 = vector.shape_cast %186 : vector<1x1x128x128xbf16> to vector<128x128xbf16>
    %cst_203 = arith.constant dense<0.000000e+00> : vector<8x128xf32>
    %188 = tpu.matmul %185, %187, %cst_203 {dimension_numbers = #tpu.dot_dimension_numbers<[1], [0], [0], [1], [0, 0, 1, 1], [], []>} : vector<8x128xbf16>, vector<128x128xbf16>, vector<8x128xf32> -> vector<8x128xf32>
    %189 = arith.addf %178, %188 : vector<8x128xf32>
    %190 = vector.extract_strided_slice %54 {offsets = [176, 0], sizes = [8, 128], strides = [1, 1]} : vector<392x128xbf16> to vector<8x128xbf16>
    %c3_204 = arith.constant 3 : index
    %c1_205 = arith.constant 1 : index
    %c0_206 = arith.constant 0 : index
    %c0_207 = arith.constant 0 : index
    %191 = vector.load %arg9[%c3_204, %c1_205, %c0_206, %c0_207] : memref<7x7x128x128xbf16, #tpu.memory_space<vmem>>, vector<1x1x128x128xbf16>
    %192 = vector.shape_cast %191 : vector<1x1x128x128xbf16> to vector<128x128xbf16>
    %cst_208 = arith.constant dense<0.000000e+00> : vector<8x128xf32>
    %193 = tpu.matmul %190, %192, %cst_208 {dimension_numbers = #tpu.dot_dimension_numbers<[1], [0], [0], [1], [0, 0, 1, 1], [], []>} : vector<8x128xbf16>, vector<128x128xbf16>, vector<8x128xf32> -> vector<8x128xf32>
    %194 = arith.addf %189, %193 : vector<8x128xf32>
    %195 = vector.extract_strided_slice %54 {offsets = [184, 0], sizes = [8, 128], strides = [1, 1]} : vector<392x128xbf16> to vector<8x128xbf16>
    %c3_209 = arith.constant 3 : index
    %c2_210 = arith.constant 2 : index
    %c0_211 = arith.constant 0 : index
    %c0_212 = arith.constant 0 : index
    %196 = vector.load %arg9[%c3_209, %c2_210, %c0_211, %c0_212] : memref<7x7x128x128xbf16, #tpu.memory_space<vmem>>, vector<1x1x128x128xbf16>
    %197 = vector.shape_cast %196 : vector<1x1x128x128xbf16> to vector<128x128xbf16>
    %cst_213 = arith.constant dense<0.000000e+00> : vector<8x128xf32>
    %198 = tpu.matmul %195, %197, %cst_213 {dimension_numbers = #tpu.dot_dimension_numbers<[1], [0], [0], [1], [0, 0, 1, 1], [], []>} : vector<8x128xbf16>, vector<128x128xbf16>, vector<8x128xf32> -> vector<8x128xf32>
    %199 = arith.addf %194, %198 : vector<8x128xf32>
    %200 = vector.extract_strided_slice %54 {offsets = [192, 0], sizes = [8, 128], strides = [1, 1]} : vector<392x128xbf16> to vector<8x128xbf16>
    %c3_214 = arith.constant 3 : index
    %c3_215 = arith.constant 3 : index
    %c0_216 = arith.constant 0 : index
    %c0_217 = arith.constant 0 : index
    %201 = vector.load %arg9[%c3_214, %c3_215, %c0_216, %c0_217] : memref<7x7x128x128xbf16, #tpu.memory_space<vmem>>, vector<1x1x128x128xbf16>
    %202 = vector.shape_cast %201 : vector<1x1x128x128xbf16> to vector<128x128xbf16>
    %cst_218 = arith.constant dense<0.000000e+00> : vector<8x128xf32>
    %203 = tpu.matmul %200, %202, %cst_218 {dimension_numbers = #tpu.dot_dimension_numbers<[1], [0], [0], [1], [0, 0, 1, 1], [], []>} : vector<8x128xbf16>, vector<128x128xbf16>, vector<8x128xf32> -> vector<8x128xf32>
    %204 = arith.addf %199, %203 : vector<8x128xf32>
    %205 = vector.extract_strided_slice %54 {offsets = [200, 0], sizes = [8, 128], strides = [1, 1]} : vector<392x128xbf16> to vector<8x128xbf16>
    %c3_219 = arith.constant 3 : index
    %c4_220 = arith.constant 4 : index
    %c0_221 = arith.constant 0 : index
    %c0_222 = arith.constant 0 : index
    %206 = vector.load %arg9[%c3_219, %c4_220, %c0_221, %c0_222] : memref<7x7x128x128xbf16, #tpu.memory_space<vmem>>, vector<1x1x128x128xbf16>
    %207 = vector.shape_cast %206 : vector<1x1x128x128xbf16> to vector<128x128xbf16>
    %cst_223 = arith.constant dense<0.000000e+00> : vector<8x128xf32>
    %208 = tpu.matmul %205, %207, %cst_223 {dimension_numbers = #tpu.dot_dimension_numbers<[1], [0], [0], [1], [0, 0, 1, 1], [], []>} : vector<8x128xbf16>, vector<128x128xbf16>, vector<8x128xf32> -> vector<8x128xf32>
    %209 = arith.addf %204, %208 : vector<8x128xf32>
    %210 = vector.extract_strided_slice %54 {offsets = [208, 0], sizes = [8, 128], strides = [1, 1]} : vector<392x128xbf16> to vector<8x128xbf16>
    %c3_224 = arith.constant 3 : index
    %c5_225 = arith.constant 5 : index
    %c0_226 = arith.constant 0 : index
    %c0_227 = arith.constant 0 : index
    %211 = vector.load %arg9[%c3_224, %c5_225, %c0_226, %c0_227] : memref<7x7x128x128xbf16, #tpu.memory_space<vmem>>, vector<1x1x128x128xbf16>
    %212 = vector.shape_cast %211 : vector<1x1x128x128xbf16> to vector<128x128xbf16>
    %cst_228 = arith.constant dense<0.000000e+00> : vector<8x128xf32>
    %213 = tpu.matmul %210, %212, %cst_228 {dimension_numbers = #tpu.dot_dimension_numbers<[1], [0], [0], [1], [0, 0, 1, 1], [], []>} : vector<8x128xbf16>, vector<128x128xbf16>, vector<8x128xf32> -> vector<8x128xf32>
    %214 = arith.addf %209, %213 : vector<8x128xf32>
    %215 = vector.extract_strided_slice %54 {offsets = [216, 0], sizes = [8, 128], strides = [1, 1]} : vector<392x128xbf16> to vector<8x128xbf16>
    %c3_229 = arith.constant 3 : index
    %c6_230 = arith.constant 6 : index
    %c0_231 = arith.constant 0 : index
    %c0_232 = arith.constant 0 : index
    %216 = vector.load %arg9[%c3_229, %c6_230, %c0_231, %c0_232] : memref<7x7x128x128xbf16, #tpu.memory_space<vmem>>, vector<1x1x128x128xbf16>
    %217 = vector.shape_cast %216 : vector<1x1x128x128xbf16> to vector<128x128xbf16>
    %cst_233 = arith.constant dense<0.000000e+00> : vector<8x128xf32>
    %218 = tpu.matmul %215, %217, %cst_233 {dimension_numbers = #tpu.dot_dimension_numbers<[1], [0], [0], [1], [0, 0, 1, 1], [], []>} : vector<8x128xbf16>, vector<128x128xbf16>, vector<8x128xf32> -> vector<8x128xf32>
    %219 = arith.addf %214, %218 : vector<8x128xf32>
    %c4_i32_234 = arith.constant 4 : i32
    %c4_i32_235 = arith.constant 4 : i32
    %c4_i32_236 = arith.constant 4 : i32
    %c0_i32_237 = arith.constant 0 : i32
    %c0_i32_238 = arith.constant 0 : i32
    %c0_i32_239 = arith.constant 0 : i32
    %220 = tpu.memref_slice %arg3[%c4_i32_234, %c0_i32_237, %c0_i32_238, %c0_i32_239] : memref<7x7x128x128xbf16, #tpu.memory_space<any>> -> memref<1x7x128x128xbf16, #tpu.memory_space<any>>
    %221 = tpu.memref_squeeze %220 : memref<1x7x128x128xbf16, #tpu.memory_space<any>> -> memref<7x128x128xbf16, #tpu.memory_space<any>>
    %c0_i32_240 = arith.constant 0 : i32
    %c0_i32_241 = arith.constant 0 : i32
    %c0_i32_242 = arith.constant 0 : i32
    %222 = tpu.memref_slice %arg9[%c4_i32_235, %c0_i32_240, %c0_i32_241, %c0_i32_242] : memref<7x7x128x128xbf16, #tpu.memory_space<vmem>> -> memref<1x7x128x128xbf16, #tpu.memory_space<vmem>>
    %223 = tpu.memref_squeeze %222 : memref<1x7x128x128xbf16, #tpu.memory_space<vmem>> -> memref<7x128x128xbf16, #tpu.memory_space<vmem>>
    %224 = tpu.memref_slice %arg10[%c4_i32_236] : memref<8x!tpu.dma_semaphore, #tpu.memory_space<semaphore_mem>> -> memref<1x!tpu.dma_semaphore, #tpu.memory_space<semaphore_mem>>
    %225 = tpu.memref_squeeze %224 : memref<1x!tpu.dma_semaphore, #tpu.memory_space<semaphore_mem>> -> memref<!tpu.dma_semaphore, #tpu.memory_space<semaphore_mem>>
    tpu.wait_dma2 semaphore(%225 : memref<!tpu.dma_semaphore, #tpu.memory_space<semaphore_mem>>) src(%221 : memref<7x128x128xbf16, #tpu.memory_space<any>>) dst(%223 : memref<7x128x128xbf16, #tpu.memory_space<vmem>>)
    %226 = vector.extract_strided_slice %54 {offsets = [224, 0], sizes = [8, 128], strides = [1, 1]} : vector<392x128xbf16> to vector<8x128xbf16>
    %c4_243 = arith.constant 4 : index
    %c0_244 = arith.constant 0 : index
    %c0_245 = arith.constant 0 : index
    %c0_246 = arith.constant 0 : index
    %227 = vector.load %arg9[%c4_243, %c0_244, %c0_245, %c0_246] : memref<7x7x128x128xbf16, #tpu.memory_space<vmem>>, vector<1x1x128x128xbf16>
    %228 = vector.shape_cast %227 : vector<1x1x128x128xbf16> to vector<128x128xbf16>
    %cst_247 = arith.constant dense<0.000000e+00> : vector<8x128xf32>
    %229 = tpu.matmul %226, %228, %cst_247 {dimension_numbers = #tpu.dot_dimension_numbers<[1], [0], [0], [1], [0, 0, 1, 1], [], []>} : vector<8x128xbf16>, vector<128x128xbf16>, vector<8x128xf32> -> vector<8x128xf32>
    %230 = arith.addf %219, %229 : vector<8x128xf32>
    %231 = vector.extract_strided_slice %54 {offsets = [232, 0], sizes = [8, 128], strides = [1, 1]} : vector<392x128xbf16> to vector<8x128xbf16>
    %c4_248 = arith.constant 4 : index
    %c1_249 = arith.constant 1 : index
    %c0_250 = arith.constant 0 : index
    %c0_251 = arith.constant 0 : index
    %232 = vector.load %arg9[%c4_248, %c1_249, %c0_250, %c0_251] : memref<7x7x128x128xbf16, #tpu.memory_space<vmem>>, vector<1x1x128x128xbf16>
    %233 = vector.shape_cast %232 : vector<1x1x128x128xbf16> to vector<128x128xbf16>
    %cst_252 = arith.constant dense<0.000000e+00> : vector<8x128xf32>
    %234 = tpu.matmul %231, %233, %cst_252 {dimension_numbers = #tpu.dot_dimension_numbers<[1], [0], [0], [1], [0, 0, 1, 1], [], []>} : vector<8x128xbf16>, vector<128x128xbf16>, vector<8x128xf32> -> vector<8x128xf32>
    %235 = arith.addf %230, %234 : vector<8x128xf32>
    %236 = vector.extract_strided_slice %54 {offsets = [240, 0], sizes = [8, 128], strides = [1, 1]} : vector<392x128xbf16> to vector<8x128xbf16>
    %c4_253 = arith.constant 4 : index
    %c2_254 = arith.constant 2 : index
    %c0_255 = arith.constant 0 : index
    %c0_256 = arith.constant 0 : index
    %237 = vector.load %arg9[%c4_253, %c2_254, %c0_255, %c0_256] : memref<7x7x128x128xbf16, #tpu.memory_space<vmem>>, vector<1x1x128x128xbf16>
    %238 = vector.shape_cast %237 : vector<1x1x128x128xbf16> to vector<128x128xbf16>
    %cst_257 = arith.constant dense<0.000000e+00> : vector<8x128xf32>
    %239 = tpu.matmul %236, %238, %cst_257 {dimension_numbers = #tpu.dot_dimension_numbers<[1], [0], [0], [1], [0, 0, 1, 1], [], []>} : vector<8x128xbf16>, vector<128x128xbf16>, vector<8x128xf32> -> vector<8x128xf32>
    %240 = arith.addf %235, %239 : vector<8x128xf32>
    %241 = vector.extract_strided_slice %54 {offsets = [248, 0], sizes = [8, 128], strides = [1, 1]} : vector<392x128xbf16> to vector<8x128xbf16>
    %c4_258 = arith.constant 4 : index
    %c3_259 = arith.constant 3 : index
    %c0_260 = arith.constant 0 : index
    %c0_261 = arith.constant 0 : index
    %242 = vector.load %arg9[%c4_258, %c3_259, %c0_260, %c0_261] : memref<7x7x128x128xbf16, #tpu.memory_space<vmem>>, vector<1x1x128x128xbf16>
    %243 = vector.shape_cast %242 : vector<1x1x128x128xbf16> to vector<128x128xbf16>
    %cst_262 = arith.constant dense<0.000000e+00> : vector<8x128xf32>
    %244 = tpu.matmul %241, %243, %cst_262 {dimension_numbers = #tpu.dot_dimension_numbers<[1], [0], [0], [1], [0, 0, 1, 1], [], []>} : vector<8x128xbf16>, vector<128x128xbf16>, vector<8x128xf32> -> vector<8x128xf32>
    %245 = arith.addf %240, %244 : vector<8x128xf32>
    %246 = vector.extract_strided_slice %54 {offsets = [256, 0], sizes = [8, 128], strides = [1, 1]} : vector<392x128xbf16> to vector<8x128xbf16>
    %c4_263 = arith.constant 4 : index
    %c4_264 = arith.constant 4 : index
    %c0_265 = arith.constant 0 : index
    %c0_266 = arith.constant 0 : index
    %247 = vector.load %arg9[%c4_263, %c4_264, %c0_265, %c0_266] : memref<7x7x128x128xbf16, #tpu.memory_space<vmem>>, vector<1x1x128x128xbf16>
    %248 = vector.shape_cast %247 : vector<1x1x128x128xbf16> to vector<128x128xbf16>
    %cst_267 = arith.constant dense<0.000000e+00> : vector<8x128xf32>
    %249 = tpu.matmul %246, %248, %cst_267 {dimension_numbers = #tpu.dot_dimension_numbers<[1], [0], [0], [1], [0, 0, 1, 1], [], []>} : vector<8x128xbf16>, vector<128x128xbf16>, vector<8x128xf32> -> vector<8x128xf32>
    %250 = arith.addf %245, %249 : vector<8x128xf32>
    %251 = vector.extract_strided_slice %54 {offsets = [264, 0], sizes = [8, 128], strides = [1, 1]} : vector<392x128xbf16> to vector<8x128xbf16>
    %c4_268 = arith.constant 4 : index
    %c5_269 = arith.constant 5 : index
    %c0_270 = arith.constant 0 : index
    %c0_271 = arith.constant 0 : index
    %252 = vector.load %arg9[%c4_268, %c5_269, %c0_270, %c0_271] : memref<7x7x128x128xbf16, #tpu.memory_space<vmem>>, vector<1x1x128x128xbf16>
    %253 = vector.shape_cast %252 : vector<1x1x128x128xbf16> to vector<128x128xbf16>
    %cst_272 = arith.constant dense<0.000000e+00> : vector<8x128xf32>
    %254 = tpu.matmul %251, %253, %cst_272 {dimension_numbers = #tpu.dot_dimension_numbers<[1], [0], [0], [1], [0, 0, 1, 1], [], []>} : vector<8x128xbf16>, vector<128x128xbf16>, vector<8x128xf32> -> vector<8x128xf32>
    %255 = arith.addf %250, %254 : vector<8x128xf32>
    %256 = vector.extract_strided_slice %54 {offsets = [272, 0], sizes = [8, 128], strides = [1, 1]} : vector<392x128xbf16> to vector<8x128xbf16>
    %c4_273 = arith.constant 4 : index
    %c6_274 = arith.constant 6 : index
    %c0_275 = arith.constant 0 : index
    %c0_276 = arith.constant 0 : index
    %257 = vector.load %arg9[%c4_273, %c6_274, %c0_275, %c0_276] : memref<7x7x128x128xbf16, #tpu.memory_space<vmem>>, vector<1x1x128x128xbf16>
    %258 = vector.shape_cast %257 : vector<1x1x128x128xbf16> to vector<128x128xbf16>
    %cst_277 = arith.constant dense<0.000000e+00> : vector<8x128xf32>
    %259 = tpu.matmul %256, %258, %cst_277 {dimension_numbers = #tpu.dot_dimension_numbers<[1], [0], [0], [1], [0, 0, 1, 1], [], []>} : vector<8x128xbf16>, vector<128x128xbf16>, vector<8x128xf32> -> vector<8x128xf32>
    %260 = arith.addf %255, %259 : vector<8x128xf32>
    %c5_i32_278 = arith.constant 5 : i32
    %c5_i32_279 = arith.constant 5 : i32
    %c5_i32_280 = arith.constant 5 : i32
    %c0_i32_281 = arith.constant 0 : i32
    %c0_i32_282 = arith.constant 0 : i32
    %c0_i32_283 = arith.constant 0 : i32
    %261 = tpu.memref_slice %arg3[%c5_i32_278, %c0_i32_281, %c0_i32_282, %c0_i32_283] : memref<7x7x128x128xbf16, #tpu.memory_space<any>> -> memref<1x7x128x128xbf16, #tpu.memory_space<any>>
    %262 = tpu.memref_squeeze %261 : memref<1x7x128x128xbf16, #tpu.memory_space<any>> -> memref<7x128x128xbf16, #tpu.memory_space<any>>
    %c0_i32_284 = arith.constant 0 : i32
    %c0_i32_285 = arith.constant 0 : i32
    %c0_i32_286 = arith.constant 0 : i32
    %263 = tpu.memref_slice %arg9[%c5_i32_279, %c0_i32_284, %c0_i32_285, %c0_i32_286] : memref<7x7x128x128xbf16, #tpu.memory_space<vmem>> -> memref<1x7x128x128xbf16, #tpu.memory_space<vmem>>
    %264 = tpu.memref_squeeze %263 : memref<1x7x128x128xbf16, #tpu.memory_space<vmem>> -> memref<7x128x128xbf16, #tpu.memory_space<vmem>>
    %265 = tpu.memref_slice %arg10[%c5_i32_280] : memref<8x!tpu.dma_semaphore, #tpu.memory_space<semaphore_mem>> -> memref<1x!tpu.dma_semaphore, #tpu.memory_space<semaphore_mem>>
    %266 = tpu.memref_squeeze %265 : memref<1x!tpu.dma_semaphore, #tpu.memory_space<semaphore_mem>> -> memref<!tpu.dma_semaphore, #tpu.memory_space<semaphore_mem>>
    tpu.wait_dma2 semaphore(%266 : memref<!tpu.dma_semaphore, #tpu.memory_space<semaphore_mem>>) src(%262 : memref<7x128x128xbf16, #tpu.memory_space<any>>) dst(%264 : memref<7x128x128xbf16, #tpu.memory_space<vmem>>)
    %267 = vector.extract_strided_slice %54 {offsets = [280, 0], sizes = [8, 128], strides = [1, 1]} : vector<392x128xbf16> to vector<8x128xbf16>
    %c5_287 = arith.constant 5 : index
    %c0_288 = arith.constant 0 : index
    %c0_289 = arith.constant 0 : index
    %c0_290 = arith.constant 0 : index
    %268 = vector.load %arg9[%c5_287, %c0_288, %c0_289, %c0_290] : memref<7x7x128x128xbf16, #tpu.memory_space<vmem>>, vector<1x1x128x128xbf16>
    %269 = vector.shape_cast %268 : vector<1x1x128x128xbf16> to vector<128x128xbf16>
    %cst_291 = arith.constant dense<0.000000e+00> : vector<8x128xf32>
    %270 = tpu.matmul %267, %269, %cst_291 {dimension_numbers = #tpu.dot_dimension_numbers<[1], [0], [0], [1], [0, 0, 1, 1], [], []>} : vector<8x128xbf16>, vector<128x128xbf16>, vector<8x128xf32> -> vector<8x128xf32>
    %271 = arith.addf %260, %270 : vector<8x128xf32>
    %272 = vector.extract_strided_slice %54 {offsets = [288, 0], sizes = [8, 128], strides = [1, 1]} : vector<392x128xbf16> to vector<8x128xbf16>
    %c5_292 = arith.constant 5 : index
    %c1_293 = arith.constant 1 : index
    %c0_294 = arith.constant 0 : index
    %c0_295 = arith.constant 0 : index
    %273 = vector.load %arg9[%c5_292, %c1_293, %c0_294, %c0_295] : memref<7x7x128x128xbf16, #tpu.memory_space<vmem>>, vector<1x1x128x128xbf16>
    %274 = vector.shape_cast %273 : vector<1x1x128x128xbf16> to vector<128x128xbf16>
    %cst_296 = arith.constant dense<0.000000e+00> : vector<8x128xf32>
    %275 = tpu.matmul %272, %274, %cst_296 {dimension_numbers = #tpu.dot_dimension_numbers<[1], [0], [0], [1], [0, 0, 1, 1], [], []>} : vector<8x128xbf16>, vector<128x128xbf16>, vector<8x128xf32> -> vector<8x128xf32>
    %276 = arith.addf %271, %275 : vector<8x128xf32>
    %277 = vector.extract_strided_slice %54 {offsets = [296, 0], sizes = [8, 128], strides = [1, 1]} : vector<392x128xbf16> to vector<8x128xbf16>
    %c5_297 = arith.constant 5 : index
    %c2_298 = arith.constant 2 : index
    %c0_299 = arith.constant 0 : index
    %c0_300 = arith.constant 0 : index
    %278 = vector.load %arg9[%c5_297, %c2_298, %c0_299, %c0_300] : memref<7x7x128x128xbf16, #tpu.memory_space<vmem>>, vector<1x1x128x128xbf16>
    %279 = vector.shape_cast %278 : vector<1x1x128x128xbf16> to vector<128x128xbf16>
    %cst_301 = arith.constant dense<0.000000e+00> : vector<8x128xf32>
    %280 = tpu.matmul %277, %279, %cst_301 {dimension_numbers = #tpu.dot_dimension_numbers<[1], [0], [0], [1], [0, 0, 1, 1], [], []>} : vector<8x128xbf16>, vector<128x128xbf16>, vector<8x128xf32> -> vector<8x128xf32>
    %281 = arith.addf %276, %280 : vector<8x128xf32>
    %282 = vector.extract_strided_slice %54 {offsets = [304, 0], sizes = [8, 128], strides = [1, 1]} : vector<392x128xbf16> to vector<8x128xbf16>
    %c5_302 = arith.constant 5 : index
    %c3_303 = arith.constant 3 : index
    %c0_304 = arith.constant 0 : index
    %c0_305 = arith.constant 0 : index
    %283 = vector.load %arg9[%c5_302, %c3_303, %c0_304, %c0_305] : memref<7x7x128x128xbf16, #tpu.memory_space<vmem>>, vector<1x1x128x128xbf16>
    %284 = vector.shape_cast %283 : vector<1x1x128x128xbf16> to vector<128x128xbf16>
    %cst_306 = arith.constant dense<0.000000e+00> : vector<8x128xf32>
    %285 = tpu.matmul %282, %284, %cst_306 {dimension_numbers = #tpu.dot_dimension_numbers<[1], [0], [0], [1], [0, 0, 1, 1], [], []>} : vector<8x128xbf16>, vector<128x128xbf16>, vector<8x128xf32> -> vector<8x128xf32>
    %286 = arith.addf %281, %285 : vector<8x128xf32>
    %287 = vector.extract_strided_slice %54 {offsets = [312, 0], sizes = [8, 128], strides = [1, 1]} : vector<392x128xbf16> to vector<8x128xbf16>
    %c5_307 = arith.constant 5 : index
    %c4_308 = arith.constant 4 : index
    %c0_309 = arith.constant 0 : index
    %c0_310 = arith.constant 0 : index
    %288 = vector.load %arg9[%c5_307, %c4_308, %c0_309, %c0_310] : memref<7x7x128x128xbf16, #tpu.memory_space<vmem>>, vector<1x1x128x128xbf16>
    %289 = vector.shape_cast %288 : vector<1x1x128x128xbf16> to vector<128x128xbf16>
    %cst_311 = arith.constant dense<0.000000e+00> : vector<8x128xf32>
    %290 = tpu.matmul %287, %289, %cst_311 {dimension_numbers = #tpu.dot_dimension_numbers<[1], [0], [0], [1], [0, 0, 1, 1], [], []>} : vector<8x128xbf16>, vector<128x128xbf16>, vector<8x128xf32> -> vector<8x128xf32>
    %291 = arith.addf %286, %290 : vector<8x128xf32>
    %292 = vector.extract_strided_slice %54 {offsets = [320, 0], sizes = [8, 128], strides = [1, 1]} : vector<392x128xbf16> to vector<8x128xbf16>
    %c5_312 = arith.constant 5 : index
    %c5_313 = arith.constant 5 : index
    %c0_314 = arith.constant 0 : index
    %c0_315 = arith.constant 0 : index
    %293 = vector.load %arg9[%c5_312, %c5_313, %c0_314, %c0_315] : memref<7x7x128x128xbf16, #tpu.memory_space<vmem>>, vector<1x1x128x128xbf16>
    %294 = vector.shape_cast %293 : vector<1x1x128x128xbf16> to vector<128x128xbf16>
    %cst_316 = arith.constant dense<0.000000e+00> : vector<8x128xf32>
    %295 = tpu.matmul %292, %294, %cst_316 {dimension_numbers = #tpu.dot_dimension_numbers<[1], [0], [0], [1], [0, 0, 1, 1], [], []>} : vector<8x128xbf16>, vector<128x128xbf16>, vector<8x128xf32> -> vector<8x128xf32>
    %296 = arith.addf %291, %295 : vector<8x128xf32>
    %297 = vector.extract_strided_slice %54 {offsets = [328, 0], sizes = [8, 128], strides = [1, 1]} : vector<392x128xbf16> to vector<8x128xbf16>
    %c5_317 = arith.constant 5 : index
    %c6_318 = arith.constant 6 : index
    %c0_319 = arith.constant 0 : index
    %c0_320 = arith.constant 0 : index
    %298 = vector.load %arg9[%c5_317, %c6_318, %c0_319, %c0_320] : memref<7x7x128x128xbf16, #tpu.memory_space<vmem>>, vector<1x1x128x128xbf16>
    %299 = vector.shape_cast %298 : vector<1x1x128x128xbf16> to vector<128x128xbf16>
    %cst_321 = arith.constant dense<0.000000e+00> : vector<8x128xf32>
    %300 = tpu.matmul %297, %299, %cst_321 {dimension_numbers = #tpu.dot_dimension_numbers<[1], [0], [0], [1], [0, 0, 1, 1], [], []>} : vector<8x128xbf16>, vector<128x128xbf16>, vector<8x128xf32> -> vector<8x128xf32>
    %301 = arith.addf %296, %300 : vector<8x128xf32>
    %c6_i32_322 = arith.constant 6 : i32
    %c6_i32_323 = arith.constant 6 : i32
    %c6_i32_324 = arith.constant 6 : i32
    %c0_i32_325 = arith.constant 0 : i32
    %c0_i32_326 = arith.constant 0 : i32
    %c0_i32_327 = arith.constant 0 : i32
    %302 = tpu.memref_slice %arg3[%c6_i32_322, %c0_i32_325, %c0_i32_326, %c0_i32_327] : memref<7x7x128x128xbf16, #tpu.memory_space<any>> -> memref<1x7x128x128xbf16, #tpu.memory_space<any>>
    %303 = tpu.memref_squeeze %302 : memref<1x7x128x128xbf16, #tpu.memory_space<any>> -> memref<7x128x128xbf16, #tpu.memory_space<any>>
    %c0_i32_328 = arith.constant 0 : i32
    %c0_i32_329 = arith.constant 0 : i32
    %c0_i32_330 = arith.constant 0 : i32
    %304 = tpu.memref_slice %arg9[%c6_i32_323, %c0_i32_328, %c0_i32_329, %c0_i32_330] : memref<7x7x128x128xbf16, #tpu.memory_space<vmem>> -> memref<1x7x128x128xbf16, #tpu.memory_space<vmem>>
    %305 = tpu.memref_squeeze %304 : memref<1x7x128x128xbf16, #tpu.memory_space<vmem>> -> memref<7x128x128xbf16, #tpu.memory_space<vmem>>
    %306 = tpu.memref_slice %arg10[%c6_i32_324] : memref<8x!tpu.dma_semaphore, #tpu.memory_space<semaphore_mem>> -> memref<1x!tpu.dma_semaphore, #tpu.memory_space<semaphore_mem>>
    %307 = tpu.memref_squeeze %306 : memref<1x!tpu.dma_semaphore, #tpu.memory_space<semaphore_mem>> -> memref<!tpu.dma_semaphore, #tpu.memory_space<semaphore_mem>>
    tpu.wait_dma2 semaphore(%307 : memref<!tpu.dma_semaphore, #tpu.memory_space<semaphore_mem>>) src(%303 : memref<7x128x128xbf16, #tpu.memory_space<any>>) dst(%305 : memref<7x128x128xbf16, #tpu.memory_space<vmem>>)
    %308 = vector.extract_strided_slice %54 {offsets = [336, 0], sizes = [8, 128], strides = [1, 1]} : vector<392x128xbf16> to vector<8x128xbf16>
    %c6_331 = arith.constant 6 : index
    %c0_332 = arith.constant 0 : index
    %c0_333 = arith.constant 0 : index
    %c0_334 = arith.constant 0 : index
    %309 = vector.load %arg9[%c6_331, %c0_332, %c0_333, %c0_334] : memref<7x7x128x128xbf16, #tpu.memory_space<vmem>>, vector<1x1x128x128xbf16>
    %310 = vector.shape_cast %309 : vector<1x1x128x128xbf16> to vector<128x128xbf16>
    %cst_335 = arith.constant dense<0.000000e+00> : vector<8x128xf32>
    %311 = tpu.matmul %308, %310, %cst_335 {dimension_numbers = #tpu.dot_dimension_numbers<[1], [0], [0], [1], [0, 0, 1, 1], [], []>} : vector<8x128xbf16>, vector<128x128xbf16>, vector<8x128xf32> -> vector<8x128xf32>
    %312 = arith.addf %301, %311 : vector<8x128xf32>
    %313 = vector.extract_strided_slice %54 {offsets = [344, 0], sizes = [8, 128], strides = [1, 1]} : vector<392x128xbf16> to vector<8x128xbf16>
    %c6_336 = arith.constant 6 : index
    %c1_337 = arith.constant 1 : index
    %c0_338 = arith.constant 0 : index
    %c0_339 = arith.constant 0 : index
    %314 = vector.load %arg9[%c6_336, %c1_337, %c0_338, %c0_339] : memref<7x7x128x128xbf16, #tpu.memory_space<vmem>>, vector<1x1x128x128xbf16>
    %315 = vector.shape_cast %314 : vector<1x1x128x128xbf16> to vector<128x128xbf16>
    %cst_340 = arith.constant dense<0.000000e+00> : vector<8x128xf32>
    %316 = tpu.matmul %313, %315, %cst_340 {dimension_numbers = #tpu.dot_dimension_numbers<[1], [0], [0], [1], [0, 0, 1, 1], [], []>} : vector<8x128xbf16>, vector<128x128xbf16>, vector<8x128xf32> -> vector<8x128xf32>
    %317 = arith.addf %312, %316 : vector<8x128xf32>
    %318 = vector.extract_strided_slice %54 {offsets = [352, 0], sizes = [8, 128], strides = [1, 1]} : vector<392x128xbf16> to vector<8x128xbf16>
    %c6_341 = arith.constant 6 : index
    %c2_342 = arith.constant 2 : index
    %c0_343 = arith.constant 0 : index
    %c0_344 = arith.constant 0 : index
    %319 = vector.load %arg9[%c6_341, %c2_342, %c0_343, %c0_344] : memref<7x7x128x128xbf16, #tpu.memory_space<vmem>>, vector<1x1x128x128xbf16>
    %320 = vector.shape_cast %319 : vector<1x1x128x128xbf16> to vector<128x128xbf16>
    %cst_345 = arith.constant dense<0.000000e+00> : vector<8x128xf32>
    %321 = tpu.matmul %318, %320, %cst_345 {dimension_numbers = #tpu.dot_dimension_numbers<[1], [0], [0], [1], [0, 0, 1, 1], [], []>} : vector<8x128xbf16>, vector<128x128xbf16>, vector<8x128xf32> -> vector<8x128xf32>
    %322 = arith.addf %317, %321 : vector<8x128xf32>
    %323 = vector.extract_strided_slice %54 {offsets = [360, 0], sizes = [8, 128], strides = [1, 1]} : vector<392x128xbf16> to vector<8x128xbf16>
    %c6_346 = arith.constant 6 : index
    %c3_347 = arith.constant 3 : index
    %c0_348 = arith.constant 0 : index
    %c0_349 = arith.constant 0 : index
    %324 = vector.load %arg9[%c6_346, %c3_347, %c0_348, %c0_349] : memref<7x7x128x128xbf16, #tpu.memory_space<vmem>>, vector<1x1x128x128xbf16>
    %325 = vector.shape_cast %324 : vector<1x1x128x128xbf16> to vector<128x128xbf16>
    %cst_350 = arith.constant dense<0.000000e+00> : vector<8x128xf32>
    %326 = tpu.matmul %323, %325, %cst_350 {dimension_numbers = #tpu.dot_dimension_numbers<[1], [0], [0], [1], [0, 0, 1, 1], [], []>} : vector<8x128xbf16>, vector<128x128xbf16>, vector<8x128xf32> -> vector<8x128xf32>
    %327 = arith.addf %322, %326 : vector<8x128xf32>
    %328 = vector.extract_strided_slice %54 {offsets = [368, 0], sizes = [8, 128], strides = [1, 1]} : vector<392x128xbf16> to vector<8x128xbf16>
    %c6_351 = arith.constant 6 : index
    %c4_352 = arith.constant 4 : index
    %c0_353 = arith.constant 0 : index
    %c0_354 = arith.constant 0 : index
    %329 = vector.load %arg9[%c6_351, %c4_352, %c0_353, %c0_354] : memref<7x7x128x128xbf16, #tpu.memory_space<vmem>>, vector<1x1x128x128xbf16>
    %330 = vector.shape_cast %329 : vector<1x1x128x128xbf16> to vector<128x128xbf16>
    %cst_355 = arith.constant dense<0.000000e+00> : vector<8x128xf32>
    %331 = tpu.matmul %328, %330, %cst_355 {dimension_numbers = #tpu.dot_dimension_numbers<[1], [0], [0], [1], [0, 0, 1, 1], [], []>} : vector<8x128xbf16>, vector<128x128xbf16>, vector<8x128xf32> -> vector<8x128xf32>
    %332 = arith.addf %327, %331 : vector<8x128xf32>
    %333 = vector.extract_strided_slice %54 {offsets = [376, 0], sizes = [8, 128], strides = [1, 1]} : vector<392x128xbf16> to vector<8x128xbf16>
    %c6_356 = arith.constant 6 : index
    %c5_357 = arith.constant 5 : index
    %c0_358 = arith.constant 0 : index
    %c0_359 = arith.constant 0 : index
    %334 = vector.load %arg9[%c6_356, %c5_357, %c0_358, %c0_359] : memref<7x7x128x128xbf16, #tpu.memory_space<vmem>>, vector<1x1x128x128xbf16>
    %335 = vector.shape_cast %334 : vector<1x1x128x128xbf16> to vector<128x128xbf16>
    %cst_360 = arith.constant dense<0.000000e+00> : vector<8x128xf32>
    %336 = tpu.matmul %333, %335, %cst_360 {dimension_numbers = #tpu.dot_dimension_numbers<[1], [0], [0], [1], [0, 0, 1, 1], [], []>} : vector<8x128xbf16>, vector<128x128xbf16>, vector<8x128xf32> -> vector<8x128xf32>
    %337 = arith.addf %332, %336 : vector<8x128xf32>
    %338 = vector.extract_strided_slice %54 {offsets = [384, 0], sizes = [8, 128], strides = [1, 1]} : vector<392x128xbf16> to vector<8x128xbf16>
    %c6_361 = arith.constant 6 : index
    %c6_362 = arith.constant 6 : index
    %c0_363 = arith.constant 0 : index
    %c0_364 = arith.constant 0 : index
    %339 = vector.load %arg9[%c6_361, %c6_362, %c0_363, %c0_364] : memref<7x7x128x128xbf16, #tpu.memory_space<vmem>>, vector<1x1x128x128xbf16>
    %340 = vector.shape_cast %339 : vector<1x1x128x128xbf16> to vector<128x128xbf16>
    %cst_365 = arith.constant dense<0.000000e+00> : vector<8x128xf32>
    %341 = tpu.matmul %338, %340, %cst_365 {dimension_numbers = #tpu.dot_dimension_numbers<[1], [0], [0], [1], [0, 0, 1, 1], [], []>} : vector<8x128xbf16>, vector<128x128xbf16>, vector<8x128xf32> -> vector<8x128xf32>
    %342 = arith.addf %337, %341 : vector<8x128xf32>
    %343 = vector.extract_strided_slice %342 {offsets = [0, 0], sizes = [2, 32], strides = [1, 1]} : vector<8x128xf32> to vector<2x32xf32>
    %344 = vector.extract_strided_slice %342 {offsets = [2, 32], sizes = [2, 32], strides = [1, 1]} : vector<8x128xf32> to vector<2x32xf32>
    %345 = arith.addf %343, %344 : vector<2x32xf32>
    %346 = vector.extract_strided_slice %342 {offsets = [4, 64], sizes = [2, 32], strides = [1, 1]} : vector<8x128xf32> to vector<2x32xf32>
    %347 = arith.addf %345, %346 : vector<2x32xf32>
    %348 = vector.extract_strided_slice %342 {offsets = [6, 96], sizes = [2, 32], strides = [1, 1]} : vector<8x128xf32> to vector<2x32xf32>
    %349 = arith.addf %347, %348 : vector<2x32xf32>
    %c0_366 = arith.constant 0 : index
    %c0_367 = arith.constant 0 : index
    %350 = vector.load %arg4[%c0_366, %c0_367] : memref<1x32xf32, #tpu.memory_space<vmem>>, vector<1x32xf32>
    %351 = vector.broadcast %350 : vector<1x32xf32> to vector<2x32xf32>
    %352 = arith.addf %349, %351 : vector<2x32xf32>
    %cst_368 = arith.constant 0.000000e+00 : f32
    %353 = vector.broadcast %cst_368 : f32 to vector<2x32xf32>
    %354 = arith.maximumf %352, %353 : vector<2x32xf32>
    %c0_369 = arith.constant 0 : index
    %c0_370 = arith.constant 0 : index
    %355 = vector.load %arg5[%c0_369, %c0_370] : memref<32x4xf32, #tpu.memory_space<vmem>>, vector<32x4xf32>
    %cst_371 = arith.constant dense<0.000000e+00> : vector<2x4xf32>
    %356 = tpu.matmul %354, %355, %cst_371 {dimension_numbers = #tpu.dot_dimension_numbers<[1], [0], [0], [1], [0, 0, 1, 1], [], []>} : vector<2x32xf32>, vector<32x4xf32>, vector<2x4xf32> -> vector<2x4xf32>
    %c0_372 = arith.constant 0 : index
    %c0_373 = arith.constant 0 : index
    %357 = vector.load %arg6[%c0_372, %c0_373] : memref<1x4xf32, #tpu.memory_space<vmem>>, vector<1x4xf32>
    %358 = vector.broadcast %357 : vector<1x4xf32> to vector<2x4xf32>
    %359 = arith.addf %356, %358 : vector<2x4xf32>
    %c0_374 = arith.constant 0 : index
    %c0_375 = arith.constant 0 : index
    %360 = vector.load %arg7[%c0_374, %c0_375] : memref<2x4xf32, #tpu.memory_space<vmem>>, vector<2x4xf32>
    tpu.vector_store %arg7[%c0_374, %c0_375], %359 {strides = array<i32>} : memref<2x4xf32, #tpu.memory_space<vmem>>, vector<2x4xf32>,
    return
  }
}

</mosaic_0001>

<bundles_post_ra>
// kernel: fcq_forward.1
= control target key start
LH: loop header
LB: loop body
LE: loop exit
PB: predicated region body
PF: predicated region fallthrough
CT: control target
= control target key end

     0   :  { %12 = vsyncpa [#allocation6], 0  ;;  %s10065_s0 = inlined_call_operand.vmem [shape: bf16[392,36], index: 0, kind: input, shape index: {}]   ;;  %s10066_s1 = inlined_call_operand.vmem [shape: bf16[36,128], index: 1, kind: input, shape index: {}]   ;;  %s10067_s2 = inlined_call_operand.vmem [shape: f32[1,128], index: 2, kind: input, shape index: {}]   ;;  %s10068_s3 = inlined_call_operand.vmem [shape: bf16[7,7,128,128], index: 3, kind: input, shape index: {}]   ;;  %s10069_s4 = inlined_call_operand.vmem [shape: f32[1,32], index: 4, kind: input, shape index: {}]   ;;  %s10070_s5 = inlined_call_operand.vmem [shape: f32[32,4], index: 5, kind: input, shape index: {}]   ;;  %s10071_s6 = inlined_call_operand.vmem [shape: f32[1,4], index: 6, kind: input, shape index: {}]   ;;  %s10072_s7 = inlined_call_operand.hbm [shape: f32[2,4], index: 7, kind: output, shape index: {}]  }
   0x1   :  { %v62_v0 = vld [vmem:[%s10065_s0] sm:$0xff]  ;;  %v64_v1 = vld [vmem:[%s10065_s0 + $0x8] sm:$0xff]  ;;  %v66_v2 = vld [vmem:[%s10065_s0 + $0x10] sm:$0xff] }
   0x2   :  { %63 = vst [vmem:[#allocation2] sm:$0xff] %v62_v0  ;;  %65 = vst [vmem:[#allocation2 + $0x8] sm:$0xff] %v64_v1  ;;  %v68_v3 = vld [vmem:[%s10065_s0 + $0x18] sm:$0xff]  ;;  %v70_v4 = vld [vmem:[%s10065_s0 + $0x20] sm:$0xff] }
   0x3   :  { %67 = vst [vmem:[#allocation2 + $0x10] sm:$0xff] %v66_v2  ;;  %69 = vst [vmem:[#allocation2 + $0x18] sm:$0xff] %v68_v3  ;;  %v72_v5 = vld [vmem:[%s10065_s0 + $0x28] sm:$0xff]  ;;  %v74_v6 = vld [vmem:[%s10065_s0 + $0x30] sm:$0xff] }
   0x4   :  { %71 = vst [vmem:[#allocation2 + $0x20] sm:$0xff] %v70_v4  ;;  %v76_v7 = vld [vmem:[%s10065_s0 + $0x38] sm:$0xff]  ;;  %73 = vst [vmem:[#allocation2 + $0x28] sm:$0xff] %v72_v5  ;;  %v78_v8 = vld [vmem:[%s10065_s0 + $0x40] sm:$0xff] }
   0x5   :  { %75 = vst [vmem:[#allocation2 + $0x30] sm:$0xff] %v74_v6  ;;  %77 = vst [vmem:[#allocation2 + $0x38] sm:$0xff] %v76_v7  ;;  %v80_v9 = vld [vmem:[%s10065_s0 + $0x48] sm:$0xff]  ;;  %v82_v10 = vld [vmem:[%s10065_s0 + $0x50] sm:$0xff] }
   0x6   :  { %79 = vst [vmem:[#allocation2 + $0x40] sm:$0xff] %v78_v8  ;;  %81 = vst [vmem:[#allocation2 + $0x48] sm:$0xff] %v80_v9  ;;  %v84_v11 = vld [vmem:[%s10065_s0 + $0x58] sm:$0xff]  ;;  %v86_v12 = vld [vmem:[%s10065_s0 + $0x60] sm:$0xff] }
   0x7   :  { %83 = vst [vmem:[#allocation2 + $0x50] sm:$0xff] %v82_v10  ;;  %v88_v13 = vld [vmem:[%s10065_s0 + $0x68] sm:$0xff]  ;;  %85 = vst [vmem:[#allocation2 + $0x58] sm:$0xff] %v84_v11  ;;  %v90_v14 = vld [vmem:[%s10065_s0 + $0x70] sm:$0xff] }
   0x8   :  { %87 = vst [vmem:[#allocation2 + $0x60] sm:$0xff] %v86_v12  ;;  %89 = vst [vmem:[#allocation2 + $0x68] sm:$0xff] %v88_v13  ;;  %v92_v15 = vld [vmem:[%s10065_s0 + $0x78] sm:$0xff]  ;;  %v94_v16 = vld [vmem:[%s10065_s0 + $0x80] sm:$0xff] }
   0x9   :  { %91 = vst [vmem:[#allocation2 + $0x70] sm:$0xff] %v90_v14  ;;  %93 = vst [vmem:[#allocation2 + $0x78] sm:$0xff] %v92_v15  ;;  %v96_v17 = vld [vmem:[%s10065_s0 + $0x88] sm:$0xff]  ;;  %v98_v18 = vld [vmem:[%s10065_s0 + $0x90] sm:$0xff] }
   0xa   :  { %95 = vst [vmem:[#allocation2 + $0x80] sm:$0xff] %v94_v16  ;;  %v100_v19 = vld [vmem:[%s10065_s0 + $0x98] sm:$0xff]  ;;  %97 = vst [vmem:[#allocation2 + $0x88] sm:$0xff] %v96_v17  ;;  %v102_v20 = vld [vmem:[%s10065_s0 + $0xa0] sm:$0xff] }
   0xb   :  { %99 = vst [vmem:[#allocation2 + $0x90] sm:$0xff] %v98_v18  ;;  %101 = vst [vmem:[#allocation2 + $0x98] sm:$0xff] %v100_v19  ;;  %v104_v21 = vld [vmem:[%s10065_s0 + $0xa8] sm:$0xff]  ;;  %v106_v22 = vld [vmem:[%s10065_s0 + $0xb0] sm:$0xff] }
   0xc   :  { %103 = vst [vmem:[#allocation2 + $0xa0] sm:$0xff] %v102_v20  ;;  %105 = vst [vmem:[#allocation2 + $0xa8] sm:$0xff] %v104_v21  ;;  %v108_v23 = vld [vmem:[%s10065_s0 + $0xb8] sm:$0xff]  ;;  %v4577_v24 = vld [vmem:[%s10065_s0 + $0xc0] sm:$0xf] }
   0xd   :  { %107 = vst [vmem:[#allocation2 + $0xb0] sm:$0xff] %v106_v22  ;;  %109 = vst [vmem:[#allocation2 + $0xb8] sm:$0xff] %v108_v23 }
   0xe   :  { %120 = vst [vmem:[#allocation2 + $0xc0] sm:$0xf] %v4577_v24 }
   0xf   :  { %124 = vsyncadd [#allocation4 + $0x7], 3136  ;;  %v6951_v25 = vld [vmem:[%s10068_s3] sm:$0xff]  ;;  %v6956_v26 = vld [vmem:[%s10068_s3 + $0x8] sm:$0xff] }
  0x10   :  { %v6961_v27 = vld [vmem:[%s10068_s3 + $0x10] sm:$0xff]  ;;  %v6966_v28 = vld [vmem:[%s10068_s3 + $0x18] sm:$0xff]  ;;  %v6971_v29 = vld [vmem:[%s10068_s3 + $0x20] sm:$0xff] }
  0x11   :  { %v6976_v30 = vld [vmem:[%s10068_s3 + $0x28] sm:$0xff]  ;;  %v6981_v31 = vld [vmem:[%s10068_s3 + $0x30] sm:$0xff]  ;;  %v6986_v32 = vld [vmem:[%s10068_s3 + $0x38] sm:$0xff] }
  0x12   :  { %v6991_v33 = vld [vmem:[%s10068_s3 + $0x40] sm:$0xff]  ;;  %v6996_v34 = vld [vmem:[%s10068_s3 + $0x48] sm:$0xff]  ;;  %v7001_v35 = vld [vmem:[%s10068_s3 + $0x50] sm:$0xff] }
  0x13   :  { %v7006_v36 = vld [vmem:[%s10068_s3 + $0x58] sm:$0xff]  ;;  %v7011_v37 = vld [vmem:[%s10068_s3 + $0x60] sm:$0xff]  ;;  %v7016_v38 = vld [vmem:[%s10068_s3 + $0x68] sm:$0xff] }
  0x14   :  { %v7021_v39 = vld [vmem:[%s10068_s3 + $0x70] sm:$0xff]  ;;  %v7026_v40 = vld [vmem:[%s10068_s3 + $0x78] sm:$0xff]  ;;  %v7031_v41 = vld [vmem:[%s10068_s3 + $0x80] sm:$0xff] }
  0x15   :  { %v7036_v42 = vld [vmem:[%s10068_s3 + $0x88] sm:$0xff]  ;;  %v7041_v43 = vld [vmem:[%s10068_s3 + $0x90] sm:$0xff]  ;;  %v7046_v44 = vld [vmem:[%s10068_s3 + $0x98] sm:$0xff] }
  0x16   :  { %v7051_v45 = vld [vmem:[%s10068_s3 + $0xa0] sm:$0xff]  ;;  %v7056_v46 = vld [vmem:[%s10068_s3 + $0xa8] sm:$0xff]  ;;  %v7061_v47 = vld [vmem:[%s10068_s3 + $0xb0] sm:$0xff] }
  0x17   :  { %v7066_v48 = vld [vmem:[%s10068_s3 + $0xb8] sm:$0xff]  ;;  %v7071_v49 = vld [vmem:[%s10068_s3 + $0xc0] sm:$0xff]  ;;  %v7076_v50 = vld [vmem:[%s10068_s3 + $0xc8] sm:$0xff] }
  0x18   :  { %v7081_v51 = vld [vmem:[%s10068_s3 + $0xd0] sm:$0xff]  ;;  %v7086_v52 = vld [vmem:[%s10068_s3 + $0xd8] sm:$0xff]  ;;  %v7091_v53 = vld [vmem:[%s10068_s3 + $0xe0] sm:$0xff] }
  0x19   :  { %v7096_v54 = vld [vmem:[%s10068_s3 + $0xe8] sm:$0xff]  ;;  %v7101_v55 = vld [vmem:[%s10068_s3 + $0xf0] sm:$0xff]  ;;  %v7106_v56 = vld [vmem:[%s10068_s3 + $0xf8] sm:$0xff] }
  0x1a   :  { %v7111_v57 = vld [vmem:[%s10068_s3 + $0x100] sm:$0xff]  ;;  %v7116_v58 = vld [vmem:[%s10068_s3 + $0x108] sm:$0xff]  ;;  %v7121_v59 = vld [vmem:[%s10068_s3 + $0x110] sm:$0xff] }
  0x1b   :  { %v7126_v60 = vld [vmem:[%s10068_s3 + $0x118] sm:$0xff]  ;;  %v7131_v61 = vld [vmem:[%s10068_s3 + $0x120] sm:$0xff]  ;;  %v7136_v62 = vld [vmem:[%s10068_s3 + $0x128] sm:$0xff] }
  0x1c   :  { %v7141_v63 = vld [vmem:[%s10068_s3 + $0x130] sm:$0xff]  ;;  %v7146_v0 = vld [vmem:[%s10068_s3 + $0x138] sm:$0xff]  ;;  %v7151_v1 = vld [vmem:[%s10068_s3 + $0x140] sm:$0xff] }
  0x1d   :  { %v7156_v2 = vld [vmem:[%s10068_s3 + $0x148] sm:$0xff]  ;;  %v7161_v3 = vld [vmem:[%s10068_s3 + $0x150] sm:$0xff]  ;;  %v7166_v4 = vld [vmem:[%s10068_s3 + $0x158] sm:$0xff] }
  0x1e   :  { %10095 = vst [vmem:[#allocation24_spill] sm:$0xff] %v7166_v4  ;;  %v7171_v5 = vld [vmem:[%s10068_s3 + $0x160] sm:$0xff]  ;;  %v7176_v6 = vld [vmem:[%s10068_s3 + $0x168] sm:$0xff]  ;;  %v7181_v7 = vld [vmem:[%s10068_s3 + $0x170] sm:$0xff] }
  0x1f   :  { %10096 = vst [vmem:[#allocation25_spill] sm:$0xff] %v7171_v5  ;;  %10097 = vst [vmem:[#allocation26_spill] sm:$0xff] %v7176_v6  ;;  %v7186_v8 = vld [vmem:[%s10068_s3 + $0x178] sm:$0xff]  ;;  %v7191_v9 = vld [vmem:[%s10068_s3 + $0x180] sm:$0xff] }
  0x20   :  { %10098 = vst [vmem:[#allocation27_spill] sm:$0xff] %v7181_v7  ;;  %10099 = vst [vmem:[#allocation28_spill] sm:$0xff] %v7186_v8  ;;  %v7196_v10 = vld [vmem:[%s10068_s3 + $0x188] sm:$0xff]  ;;  %v7201_v11 = vld [vmem:[%s10068_s3 + $0x190] sm:$0xff] }
  0x21   :  { %10100 = vst [vmem:[#allocation29_spill] sm:$0xff] %v7191_v9  ;;  %10101 = vst [vmem:[#allocation30_spill] sm:$0xff] %v7196_v10  ;;  %v7206_v12 = vld [vmem:[%s10068_s3 + $0x198] sm:$0xff]  ;;  %v7211_v13 = vld [vmem:[%s10068_s3 + $0x1a0] sm:$0xff] }
  0x22   :  { %10102 = vst [vmem:[#allocation31_spill] sm:$0xff] %v7201_v11  ;;  %10103 = vst [vmem:[#allocation32_spill] sm:$0xff] %v7206_v12  ;;  %v7216_v14 = vld [vmem:[%s10068_s3 + $0x1a8] sm:$0xff]  ;;  %v7221_v15 = vld [vmem:[%s10068_s3 + $0x1b0] sm:$0xff] }
  0x23   :  { %10104 = vst [vmem:[#allocation33_spill] sm:$0xff] %v7211_v13  ;;  %10105 = vst [vmem:[#allocation34_spill] sm:$0xff] %v7216_v14  ;;  %v7226_v16 = vld [vmem:[%s10068_s3 + $0x1b8] sm:$0xff] }
  0x24   :  { %10106 = vst [vmem:[#allocation35_spill] sm:$0xff] %v7221_v15  ;;  %10107 = vst [vmem:[#allocation36_spill] sm:$0xff] %v7226_v16 }
  0x25   :  { %276 = vsyncadd [#allocation4], 7168  ;;  %v7231_v17 = vld [vmem:[%s10068_s3 + $0x1c0] sm:$0xff]  ;;  %v7236_v18 = vld [vmem:[%s10068_s3 + $0x1c8] sm:$0xff] }
  0x26   :  { %10108 = vst [vmem:[#allocation37_spill] sm:$0xff] %v7231_v17  ;;  %10109 = vst [vmem:[#allocation38_spill] sm:$0xff] %v7236_v18  ;;  %v7241_v19 = vld [vmem:[%s10068_s3 + $0x1d0] sm:$0xff]  ;;  %v7246_v20 = vld [vmem:[%s10068_s3 + $0x1d8] sm:$0xff] }
  0x27   :  { %10110 = vst [vmem:[#allocation39_spill] sm:$0xff] %v7241_v19  ;;  %10111 = vst [vmem:[#allocation40_spill] sm:$0xff] %v7246_v20  ;;  %v7251_v21 = vld [vmem:[%s10068_s3 + $0x1e0] sm:$0xff]  ;;  %v7256_v22 = vld [vmem:[%s10068_s3 + $0x1e8] sm:$0xff] }
  0x28   :  { %10112 = vst [vmem:[#allocation41_spill] sm:$0xff] %v7251_v21  ;;  %10113 = vst [vmem:[#allocation42_spill] sm:$0xff] %v7256_v22  ;;  %v7261_v23 = vld [vmem:[%s10068_s3 + $0x1f0] sm:$0xff]  ;;  %v7266_v24 = vld [vmem:[%s10068_s3 + $0x1f8] sm:$0xff] }
  0x29   :  { %10114 = vst [vmem:[#allocation43_spill] sm:$0xff] %v7261_v23  ;;  %10115 = vst [vmem:[#allocation44_spill] sm:$0xff] %v7266_v24  ;;  %v7271_v20 = vld [vmem:[%s10068_s3 + $0x200] sm:$0xff]  ;;  %v7276_v21 = vld [vmem:[%s10068_s3 + $0x208] sm:$0xff] }
  0x2a   :  { %10116 = vst [vmem:[#allocation45_spill] sm:$0xff] %v7271_v20  ;;  %10117 = vst [vmem:[#allocation46_spill] sm:$0xff] %v7276_v21  ;;  %v7281_v22 = vld [vmem:[%s10068_s3 + $0x210] sm:$0xff]  ;;  %v7286_v23 = vld [vmem:[%s10068_s3 + $0x218] sm:$0xff] }
  0x2b   :  { %10118 = vst [vmem:[#allocation47_spill] sm:$0xff] %v7281_v22  ;;  %10119 = vst [vmem:[#allocation48_spill] sm:$0xff] %v7286_v23  ;;  %v7291_v24 = vld [vmem:[%s10068_s3 + $0x220] sm:$0xff]  ;;  %v7296_v20 = vld [vmem:[%s10068_s3 + $0x228] sm:$0xff] }
  0x2c   :  { %10120 = vst [vmem:[#allocation49_spill] sm:$0xff] %v7291_v24  ;;  %10121 = vst [vmem:[#allocation50_spill] sm:$0xff] %v7296_v20  ;;  %v7301_v21 = vld [vmem:[%s10068_s3 + $0x230] sm:$0xff]  ;;  %v7306_v22 = vld [vmem:[%s10068_s3 + $0x238] sm:$0xff] }
  0x2d   :  { %10122 = vst [vmem:[#allocation51_spill] sm:$0xff] %v7301_v21  ;;  %10123 = vst [vmem:[#allocation52_spill] sm:$0xff] %v7306_v22  ;;  %v7311_v23 = vld [vmem:[%s10068_s3 + $0x240] sm:$0xff]  ;;  %v7316_v24 = vld [vmem:[%s10068_s3 + $0x248] sm:$0xff] }
  0x2e   :  { %10124 = vst [vmem:[#allocation53_spill] sm:$0xff] %v7311_v23  ;;  %10125 = vst [vmem:[#allocation54_spill] sm:$0xff] %v7316_v24  ;;  %v7321_v20 = vld [vmem:[%s10068_s3 + $0x250] sm:$0xff]  ;;  %v7326_v21 = vld [vmem:[%s10068_s3 + $0x258] sm:$0xff] }
  0x2f   :  { %10126 = vst [vmem:[#allocation55_spill] sm:$0xff] %v7321_v20  ;;  %10127 = vst [vmem:[#allocation56_spill] sm:$0xff] %v7326_v21  ;;  %v7331_v22 = vld [vmem:[%s10068_s3 + $0x260] sm:$0xff]  ;;  %v7336_v23 = vld [vmem:[%s10068_s3 + $0x268] sm:$0xff] }
  0x30   :  { %10128 = vst [vmem:[#allocation57_spill] sm:$0xff] %v7331_v22  ;;  %10129 = vst [vmem:[#allocation58_spill] sm:$0xff] %v7336_v23  ;;  %v7341_v24 = vld [vmem:[%s10068_s3 + $0x270] sm:$0xff]  ;;  %v7346_v20 = vld [vmem:[%s10068_s3 + $0x278] sm:$0xff] }
  0x31   :  { %10130 = vst [vmem:[#allocation59_spill] sm:$0xff] %v7341_v24  ;;  %10131 = vst [vmem:[#allocation60_spill] sm:$0xff] %v7346_v20  ;;  %v7351_v21 = vld [vmem:[%s10068_s3 + $0x280] sm:$0xff]  ;;  %v7356_v22 = vld [vmem:[%s10068_s3 + $0x288] sm:$0xff] }
  0x32   :  { %10132 = vst [vmem:[#allocation61_spill] sm:$0xff] %v7351_v21  ;;  %10133 = vst [vmem:[#allocation62_spill] sm:$0xff] %v7356_v22  ;;  %v7361_v23 = vld [vmem:[%s10068_s3 + $0x290] sm:$0xff]  ;;  %v7366_v24 = vld [vmem:[%s10068_s3 + $0x298] sm:$0xff] }
  0x33   :  { %10134 = vst [vmem:[#allocation63_spill] sm:$0xff] %v7361_v23  ;;  %10135 = vst [vmem:[#allocation64_spill] sm:$0xff] %v7366_v24  ;;  %v7371_v20 = vld [vmem:[%s10068_s3 + $0x2a0] sm:$0xff]  ;;  %v7376_v21 = vld [vmem:[%s10068_s3 + $0x2a8] sm:$0xff] }
  0x34   :  { %10136 = vst [vmem:[#allocation65_spill] sm:$0xff] %v7371_v20  ;;  %10137 = vst [vmem:[#allocation66_spill] sm:$0xff] %v7376_v21  ;;  %v7381_v22 = vld [vmem:[%s10068_s3 + $0x2b0] sm:$0xff]  ;;  %v7386_v23 = vld [vmem:[%s10068_s3 + $0x2b8] sm:$0xff] }
  0x35   :  { %10138 = vst [vmem:[#allocation67_spill] sm:$0xff] %v7381_v22  ;;  %10139 = vst [vmem:[#allocation68_spill] sm:$0xff] %v7386_v23  ;;  %v7391_v24 = vld [vmem:[%s10068_s3 + $0x2c0] sm:$0xff]  ;;  %v7396_v20 = vld [vmem:[%s10068_s3 + $0x2c8] sm:$0xff] }
  0x36   :  { %10140 = vst [vmem:[#allocation69_spill] sm:$0xff] %v7391_v24  ;;  %10141 = vst [vmem:[#allocation70_spill] sm:$0xff] %v7396_v20  ;;  %v7401_v21 = vld [vmem:[%s10068_s3 + $0x2d0] sm:$0xff]  ;;  %v7406_v22 = vld [vmem:[%s10068_s3 + $0x2d8] sm:$0xff] }
  0x37   :  { %10142 = vst [vmem:[#allocation71_spill] sm:$0xff] %v7401_v21  ;;  %10143 = vst [vmem:[#allocation72_spill] sm:$0xff] %v7406_v22  ;;  %v7411_v23 = vld [vmem:[%s10068_s3 + $0x2e0] sm:$0xff]  ;;  %v7416_v24 = vld [vmem:[%s10068_s3 + $0x2e8] sm:$0xff] }
  0x38   :  { %10144 = vst [vmem:[#allocation73_spill] sm:$0xff] %v7411_v23  ;;  %10145 = vst [vmem:[#allocation74_spill] sm:$0xff] %v7416_v24  ;;  %v7421_v20 = vld [vmem:[%s10068_s3 + $0x2f0] sm:$0xff]  ;;  %v7426_v21 = vld [vmem:[%s10068_s3 + $0x2f8] sm:$0xff] }
  0x39   :  { %10146 = vst [vmem:[#allocation75_spill] sm:$0xff] %v7421_v20  ;;  %10147 = vst [vmem:[#allocation76_spill] sm:$0xff] %v7426_v21  ;;  %v7431_v22 = vld [vmem:[%s10068_s3 + $0x300] sm:$0xff]  ;;  %v7436_v23 = vld [vmem:[%s10068_s3 + $0x308] sm:$0xff] }
  0x3a   :  { %10148 = vst [vmem:[#allocation77_spill] sm:$0xff] %v7431_v22  ;;  %10149 = vst [vmem:[#allocation78_spill] sm:$0xff] %v7436_v23  ;;  %v7441_v24 = vld [vmem:[%s10068_s3 + $0x310] sm:$0xff]  ;;  %v7446_v20 = vld [vmem:[%s10068_s3 + $0x318] sm:$0xff] }
  0x3b   :  { %10150 = vst [vmem:[#allocation79_spill] sm:$0xff] %v7441_v24  ;;  %10151 = vst [vmem:[#allocation80_spill] sm:$0xff] %v7446_v20  ;;  %v7451_v21 = vld [vmem:[%s10068_s3 + $0x320] sm:$0xff]  ;;  %v7456_v22 = vld [vmem:[%s10068_s3 + $0x328] sm:$0xff] }
  0x3c   :  { %10152 = vst [vmem:[#allocation81_spill] sm:$0xff] %v7451_v21  ;;  %10153 = vst [vmem:[#allocation82_spill] sm:$0xff] %v7456_v22  ;;  %v7461_v23 = vld [vmem:[%s10068_s3 + $0x330] sm:$0xff]  ;;  %v7466_v24 = vld [vmem:[%s10068_s3 + $0x338] sm:$0xff] }
  0x3d   :  { %10154 = vst [vmem:[#allocation83_spill] sm:$0xff] %v7461_v23  ;;  %10155 = vst [vmem:[#allocation84_spill] sm:$0xff] %v7466_v24  ;;  %v7471_v20 = vld [vmem:[%s10068_s3 + $0x340] sm:$0xff]  ;;  %v7476_v21 = vld [vmem:[%s10068_s3 + $0x348] sm:$0xff] }
  0x3e   :  { %10156 = vst [vmem:[#allocation85_spill] sm:$0xff] %v7471_v20  ;;  %10157 = vst [vmem:[#allocation86_spill] sm:$0xff] %v7476_v21  ;;  %v7481_v22 = vld [vmem:[%s10068_s3 + $0x350] sm:$0xff]  ;;  %v7486_v23 = vld [vmem:[%s10068_s3 + $0x358] sm:$0xff] }
  0x3f   :  { %10158 = vst [vmem:[#allocation87_spill] sm:$0xff] %v7481_v22  ;;  %10159 = vst [vmem:[#allocation88_spill] sm:$0xff] %v7486_v23  ;;  %v7491_v24 = vld [vmem:[%s10068_s3 + $0x360] sm:$0xff]  ;;  %v7496_v20 = vld [vmem:[%s10068_s3 + $0x368] sm:$0xff] }
  0x40   :  { %10160 = vst [vmem:[#allocation89_spill] sm:$0xff] %v7491_v24  ;;  %10161 = vst [vmem:[#allocation90_spill] sm:$0xff] %v7496_v20  ;;  %v7501_v21 = vld [vmem:[%s10068_s3 + $0x370] sm:$0xff]  ;;  %v7506_v22 = vld [vmem:[%s10068_s3 + $0x378] sm:$0xff] }
  0x41   :  { %10162 = vst [vmem:[#allocation91_spill] sm:$0xff] %v7501_v21  ;;  %10163 = vst [vmem:[#allocation92_spill] sm:$0xff] %v7506_v22 }
  0x42   :  { %431 = vsyncadd [#allocation4 + $0x1], 7168  ;;  %v7511_v24 = vld [vmem:[%s10068_s3 + $0x380] sm:$0xff]  ;;  %v7516_v20 = vld [vmem:[%s10068_s3 + $0x388] sm:$0xff] }
  0x43   :  { %10164 = vst [vmem:[#allocation93_spill] sm:$0xff] %v7511_v24  ;;  %10165 = vst [vmem:[#allocation94_spill] sm:$0xff] %v7516_v20  ;;  %v7521_v21 = vld [vmem:[%s10068_s3 + $0x390] sm:$0xff]  ;;  %v7526_v22 = vld [vmem:[%s10068_s3 + $0x398] sm:$0xff] }
  0x44   :  { %10166 = vst [vmem:[#allocation95_spill] sm:$0xff] %v7521_v21  ;;  %10167 = vst [vmem:[#allocation96_spill] sm:$0xff] %v7526_v22  ;;  %v7531_v23 = vld [vmem:[%s10068_s3 + $0x3a0] sm:$0xff]  ;;  %v7536_v24 = vld [vmem:[%s10068_s3 + $0x3a8] sm:$0xff] }
  0x45   :  { %10168 = vst [vmem:[#allocation97_spill] sm:$0xff] %v7531_v23  ;;  %10169 = vst [vmem:[#allocation98_spill] sm:$0xff] %v7536_v24  ;;  %v7541_v20 = vld [vmem:[%s10068_s3 + $0x3b0] sm:$0xff]  ;;  %v7546_v21 = vld [vmem:[%s10068_s3 + $0x3b8] sm:$0xff] }
  0x46   :  { %10170 = vst [vmem:[#allocation99_spill] sm:$0xff] %v7541_v20  ;;  %10171 = vst [vmem:[#allocation100_spill] sm:$0xff] %v7546_v21  ;;  %v7551_v22 = vld [vmem:[%s10068_s3 + $0x3c0] sm:$0xff]  ;;  %v7556_v23 = vld [vmem:[%s10068_s3 + $0x3c8] sm:$0xff] }
  0x47   :  { %10172 = vst [vmem:[#allocation101_spill] sm:$0xff] %v7551_v22  ;;  %10173 = vst [vmem:[#allocation102_spill] sm:$0xff] %v7556_v23  ;;  %v7561_v24 = vld [vmem:[%s10068_s3 + $0x3d0] sm:$0xff]  ;;  %v7566_v20 = vld [vmem:[%s10068_s3 + $0x3d8] sm:$0xff] }
  0x48   :  { %10174 = vst [vmem:[#allocation103_spill] sm:$0xff] %v7561_v24  ;;  %10175 = vst [vmem:[#allocation104_spill] sm:$0xff] %v7566_v20  ;;  %v7571_v21 = vld [vmem:[%s10068_s3 + $0x3e0] sm:$0xff]  ;;  %v7576_v22 = vld [vmem:[%s10068_s3 + $0x3e8] sm:$0xff] }
  0x49   :  { %10176 = vst [vmem:[#allocation105_spill] sm:$0xff] %v7571_v21  ;;  %10177 = vst [vmem:[#allocation106_spill] sm:$0xff] %v7576_v22  ;;  %v7581_v23 = vld [vmem:[%s10068_s3 + $0x3f0] sm:$0xff]  ;;  %v7586_v24 = vld [vmem:[%s10068_s3 + $0x3f8] sm:$0xff] }
  0x4a   :  { %10178 = vst [vmem:[#allocation107_spill] sm:$0xff] %v7581_v23  ;;  %10179 = vst [vmem:[#allocation108_spill] sm:$0xff] %v7586_v24  ;;  %v7591_v20 = vld [vmem:[%s10068_s3 + $0x400] sm:$0xff]  ;;  %v7596_v21 = vld [vmem:[%s10068_s3 + $0x408] sm:$0xff] }
  0x4b   :  { %10180 = vst [vmem:[#allocation109_spill] sm:$0xff] %v7591_v20  ;;  %10181 = vst [vmem:[#allocation110_spill] sm:$0xff] %v7596_v21  ;;  %v7601_v22 = vld [vmem:[%s10068_s3 + $0x410] sm:$0xff]  ;;  %v7606_v23 = vld [vmem:[%s10068_s3 + $0x418] sm:$0xff] }
  0x4c   :  { %10182 = vst [vmem:[#allocation111_spill] sm:$0xff] %v7601_v22  ;;  %10183 = vst [vmem:[#allocation112_spill] sm:$0xff] %v7606_v23  ;;  %v7611_v24 = vld [vmem:[%s10068_s3 + $0x420] sm:$0xff]  ;;  %v7616_v20 = vld [vmem:[%s10068_s3 + $0x428] sm:$0xff] }
  0x4d   :  { %10184 = vst [vmem:[#allocation113_spill] sm:$0xff] %v7611_v24  ;;  %10185 = vst [vmem:[#allocation114_spill] sm:$0xff] %v7616_v20  ;;  %v7621_v21 = vld [vmem:[%s10068_s3 + $0x430] sm:$0xff]  ;;  %v7626_v22 = vld [vmem:[%s10068_s3 + $0x438] sm:$0xff] }
  0x4e   :  { %10186 = vst [vmem:[#allocation115_spill] sm:$0xff] %v7621_v21  ;;  %10187 = vst [vmem:[#allocation116_spill] sm:$0xff] %v7626_v22  ;;  %v7631_v23 = vld [vmem:[%s10068_s3 + $0x440] sm:$0xff]  ;;  %v7636_v24 = vld [vmem:[%s10068_s3 + $0x448] sm:$0xff] }
  0x4f   :  { %10188 = vst [vmem:[#allocation117_spill] sm:$0xff] %v7631_v23  ;;  %10189 = vst [vmem:[#allocation118_spill] sm:$0xff] %v7636_v24  ;;  %v7641_v20 = vld [vmem:[%s10068_s3 + $0x450] sm:$0xff]  ;;  %v7646_v21 = vld [vmem:[%s10068_s3 + $0x458] sm:$0xff] }
  0x50   :  { %10190 = vst [vmem:[#allocation119_spill] sm:$0xff] %v7641_v20  ;;  %10191 = vst [vmem:[#allocation120_spill] sm:$0xff] %v7646_v21  ;;  %v7651_v22 = vld [vmem:[%s10068_s3 + $0x460] sm:$0xff]  ;;  %v7656_v23 = vld [vmem:[%s10068_s3 + $0x468] sm:$0xff] }
  0x51   :  { %10192 = vst [vmem:[#allocation121_spill] sm:$0xff] %v7651_v22  ;;  %10193 = vst [vmem:[#allocation122_spill] sm:$0xff] %v7656_v23  ;;  %v7661_v24 = vld [vmem:[%s10068_s3 + $0x470] sm:$0xff]  ;;  %v7666_v20 = vld [vmem:[%s10068_s3 + $0x478] sm:$0xff] }
  0x52   :  { %10194 = vst [vmem:[#allocation123_spill] sm:$0xff] %v7661_v24  ;;  %10195 = vst [vmem:[#allocation124_spill] sm:$0xff] %v7666_v20  ;;  %v7671_v21 = vld [vmem:[%s10068_s3 + $0x480] sm:$0xff]  ;;  %v7676_v22 = vld [vmem:[%s10068_s3 + $0x488] sm:$0xff] }
  0x53   :  { %10196 = vst [vmem:[#allocation125_spill] sm:$0xff] %v7671_v21  ;;  %10197 = vst [vmem:[#allocation126_spill] sm:$0xff] %v7676_v22  ;;  %v7681_v23 = vld [vmem:[%s10068_s3 + $0x490] sm:$0xff]  ;;  %v7686_v24 = vld [vmem:[%s10068_s3 + $0x498] sm:$0xff] }
  0x54   :  { %10198 = vst [vmem:[#allocation127_spill] sm:$0xff] %v7681_v23  ;;  %10199 = vst [vmem:[#allocation128_spill] sm:$0xff] %v7686_v24  ;;  %v7691_v20 = vld [vmem:[%s10068_s3 + $0x4a0] sm:$0xff]  ;;  %v7696_v21 = vld [vmem:[%s10068_s3 + $0x4a8] sm:$0xff] }
  0x55   :  { %10200 = vst [vmem:[#allocation129_spill] sm:$0xff] %v7691_v20  ;;  %10201 = vst [vmem:[#allocation130_spill] sm:$0xff] %v7696_v21  ;;  %v7701_v22 = vld [vmem:[%s10068_s3 + $0x4b0] sm:$0xff]  ;;  %v7706_v23 = vld [vmem:[%s10068_s3 + $0x4b8] sm:$0xff] }
  0x56   :  { %10202 = vst [vmem:[#allocation131_spill] sm:$0xff] %v7701_v22  ;;  %10203 = vst [vmem:[#allocation132_spill] sm:$0xff] %v7706_v23  ;;  %v7711_v24 = vld [vmem:[%s10068_s3 + $0x4c0] sm:$0xff]  ;;  %v7716_v20 = vld [vmem:[%s10068_s3 + $0x4c8] sm:$0xff] }
  0x57   :  { %10204 = vst [vmem:[#allocation133_spill] sm:$0xff] %v7711_v24  ;;  %10205 = vst [vmem:[#allocation134_spill] sm:$0xff] %v7716_v20  ;;  %v7721_v21 = vld [vmem:[%s10068_s3 + $0x4d0] sm:$0xff]  ;;  %v7726_v22 = vld [vmem:[%s10068_s3 + $0x4d8] sm:$0xff] }
  0x58   :  { %10206 = vst [vmem:[#allocation135_spill] sm:$0xff] %v7721_v21  ;;  %10207 = vst [vmem:[#allocation136_spill] sm:$0xff] %v7726_v22  ;;  %v7731_v23 = vld [vmem:[%s10068_s3 + $0x4e0] sm:$0xff]  ;;  %v7736_v24 = vld [vmem:[%s10068_s3 + $0x4e8] sm:$0xff] }
  0x59   :  { %10208 = vst [vmem:[#allocation137_spill] sm:$0xff] %v7731_v23  ;;  %10209 = vst [vmem:[#allocation138_spill] sm:$0xff] %v7736_v24  ;;  %v7741_v20 = vld [vmem:[%s10068_s3 + $0x4f0] sm:$0xff]  ;;  %v7746_v21 = vld [vmem:[%s10068_s3 + $0x4f8] sm:$0xff] }
  0x5a   :  { %10210 = vst [vmem:[#allocation139_spill] sm:$0xff] %v7741_v20  ;;  %10211 = vst [vmem:[#allocation140_spill] sm:$0xff] %v7746_v21  ;;  %v7751_v22 = vld [vmem:[%s10068_s3 + $0x500] sm:$0xff]  ;;  %v7756_v23 = vld [vmem:[%s10068_s3 + $0x508] sm:$0xff] }
  0x5b   :  { %10212 = vst [vmem:[#allocation141_spill] sm:$0xff] %v7751_v22  ;;  %10213 = vst [vmem:[#allocation142_spill] sm:$0xff] %v7756_v23  ;;  %v7761_v24 = vld [vmem:[%s10068_s3 + $0x510] sm:$0xff]  ;;  %v7766_v20 = vld [vmem:[%s10068_s3 + $0x518] sm:$0xff] }
  0x5c   :  { %10214 = vst [vmem:[#allocation143_spill] sm:$0xff] %v7761_v24  ;;  %10215 = vst [vmem:[#allocation144_spill] sm:$0xff] %v7766_v20  ;;  %v7771_v21 = vld [vmem:[%s10068_s3 + $0x520] sm:$0xff]  ;;  %v7776_v22 = vld [vmem:[%s10068_s3 + $0x528] sm:$0xff] }
  0x5d   :  { %10216 = vst [vmem:[#allocation145_spill] sm:$0xff] %v7771_v21  ;;  %10217 = vst [vmem:[#allocation146_spill] sm:$0xff] %v7776_v22  ;;  %v7781_v23 = vld [vmem:[%s10068_s3 + $0x530] sm:$0xff]  ;;  %v7786_v24 = vld [vmem:[%s10068_s3 + $0x538] sm:$0xff] }
  0x5e   :  { %10218 = vst [vmem:[#allocation147_spill] sm:$0xff] %v7781_v23  ;;  %10219 = vst [vmem:[#allocation148_spill] sm:$0xff] %v7786_v24 }
  0x5f   :  { %586 = vsyncadd [#allocation4 + $0x2], 7168  ;;  %v7791_v21 = vld [vmem:[%s10068_s3 + $0x540] sm:$0xff]  ;;  %v7796_v22 = vld [vmem:[%s10068_s3 + $0x548] sm:$0xff] }
  0x60   :  { %10220 = vst [vmem:[#allocation149_spill] sm:$0xff] %v7791_v21  ;;  %10221 = vst [vmem:[#allocation150_spill] sm:$0xff] %v7796_v22  ;;  %v7801_v23 = vld [vmem:[%s10068_s3 + $0x550] sm:$0xff]  ;;  %v7806_v24 = vld [vmem:[%s10068_s3 + $0x558] sm:$0xff] }
  0x61   :  { %10222 = vst [vmem:[#allocation151_spill] sm:$0xff] %v7801_v23  ;;  %10223 = vst [vmem:[#allocation152_spill] sm:$0xff] %v7806_v24  ;;  %v7811_v20 = vld [vmem:[%s10068_s3 + $0x560] sm:$0xff]  ;;  %v7816_v21 = vld [vmem:[%s10068_s3 + $0x568] sm:$0xff] }
  0x62   :  { %10224 = vst [vmem:[#allocation153_spill] sm:$0xff] %v7811_v20  ;;  %10225 = vst [vmem:[#allocation154_spill] sm:$0xff] %v7816_v21  ;;  %v7821_v22 = vld [vmem:[%s10068_s3 + $0x570] sm:$0xff]  ;;  %v7826_v23 = vld [vmem:[%s10068_s3 + $0x578] sm:$0xff] }
  0x63   :  { %10226 = vst [vmem:[#allocation155_spill] sm:$0xff] %v7821_v22  ;;  %10227 = vst [vmem:[#allocation156_spill] sm:$0xff] %v7826_v23  ;;  %v7831_v24 = vld [vmem:[%s10068_s3 + $0x580] sm:$0xff]  ;;  %v7836_v20 = vld [vmem:[%s10068_s3 + $0x588] sm:$0xff] }
  0x64   :  { %10228 = vst [vmem:[#allocation157_spill] sm:$0xff] %v7831_v24  ;;  %10229 = vst [vmem:[#allocation158_spill] sm:$0xff] %v7836_v20  ;;  %v7841_v21 = vld [vmem:[%s10068_s3 + $0x590] sm:$0xff]  ;;  %v7846_v22 = vld [vmem:[%s10068_s3 + $0x598] sm:$0xff] }
  0x65   :  { %10230 = vst [vmem:[#allocation159_spill] sm:$0xff] %v7841_v21  ;;  %10231 = vst [vmem:[#allocation160_spill] sm:$0xff] %v7846_v22  ;;  %v7851_v23 = vld [vmem:[%s10068_s3 + $0x5a0] sm:$0xff]  ;;  %v7856_v24 = vld [vmem:[%s10068_s3 + $0x5a8] sm:$0xff] }
  0x66   :  { %10232 = vst [vmem:[#allocation161_spill] sm:$0xff] %v7851_v23  ;;  %10233 = vst [vmem:[#allocation162_spill] sm:$0xff] %v7856_v24  ;;  %v7861_v20 = vld [vmem:[%s10068_s3 + $0x5b0] sm:$0xff]  ;;  %v7866_v21 = vld [vmem:[%s10068_s3 + $0x5b8] sm:$0xff] }
  0x67   :  { %10234 = vst [vmem:[#allocation163_spill] sm:$0xff] %v7861_v20  ;;  %10235 = vst [vmem:[#allocation164_spill] sm:$0xff] %v7866_v21  ;;  %v7871_v22 = vld [vmem:[%s10068_s3 + $0x5c0] sm:$0xff]  ;;  %v7876_v23 = vld [vmem:[%s10068_s3 + $0x5c8] sm:$0xff] }
  0x68   :  { %10236 = vst [vmem:[#allocation165_spill] sm:$0xff] %v7871_v22  ;;  %10237 = vst [vmem:[#allocation166_spill] sm:$0xff] %v7876_v23  ;;  %v7881_v24 = vld [vmem:[%s10068_s3 + $0x5d0] sm:$0xff]  ;;  %v7886_v20 = vld [vmem:[%s10068_s3 + $0x5d8] sm:$0xff] }
  0x69   :  { %10238 = vst [vmem:[#allocation167_spill] sm:$0xff] %v7881_v24  ;;  %10239 = vst [vmem:[#allocation168_spill] sm:$0xff] %v7886_v20  ;;  %v7891_v21 = vld [vmem:[%s10068_s3 + $0x5e0] sm:$0xff]  ;;  %v7896_v22 = vld [vmem:[%s10068_s3 + $0x5e8] sm:$0xff] }
  0x6a   :  { %10240 = vst [vmem:[#allocation169_spill] sm:$0xff] %v7891_v21  ;;  %10241 = vst [vmem:[#allocation170_spill] sm:$0xff] %v7896_v22  ;;  %v7901_v23 = vld [vmem:[%s10068_s3 + $0x5f0] sm:$0xff]  ;;  %v7906_v24 = vld [vmem:[%s10068_s3 + $0x5f8] sm:$0xff] }
  0x6b   :  { %10242 = vst [vmem:[#allocation171_spill] sm:$0xff] %v7901_v23  ;;  %10243 = vst [vmem:[#allocation172_spill] sm:$0xff] %v7906_v24  ;;  %v7911_v20 = vld [vmem:[%s10068_s3 + $0x600] sm:$0xff]  ;;  %v7916_v21 = vld [vmem:[%s10068_s3 + $0x608] sm:$0xff] }
  0x6c   :  { %10244 = vst [vmem:[#allocation173_spill] sm:$0xff] %v7911_v20  ;;  %10245 = vst [vmem:[#allocation174_spill] sm:$0xff] %v7916_v21  ;;  %v7921_v22 = vld [vmem:[%s10068_s3 + $0x610] sm:$0xff]  ;;  %v7926_v23 = vld [vmem:[%s10068_s3 + $0x618] sm:$0xff] }
  0x6d   :  { %10246 = vst [vmem:[#allocation175_spill] sm:$0xff] %v7921_v22  ;;  %10247 = vst [vmem:[#allocation176_spill] sm:$0xff] %v7926_v23  ;;  %v7931_v24 = vld [vmem:[%s10068_s3 + $0x620] sm:$0xff]  ;;  %v7936_v20 = vld [vmem:[%s10068_s3 + $0x628] sm:$0xff] }
  0x6e   :  { %10248 = vst [vmem:[#allocation177_spill] sm:$0xff] %v7931_v24  ;;  %10249 = vst [vmem:[#allocation178_spill] sm:$0xff] %v7936_v20  ;;  %v7941_v21 = vld [vmem:[%s10068_s3 + $0x630] sm:$0xff]  ;;  %v7946_v22 = vld [vmem:[%s10068_s3 + $0x638] sm:$0xff] }
  0x6f   :  { %10250 = vst [vmem:[#allocation179_spill] sm:$0xff] %v7941_v21  ;;  %10251 = vst [vmem:[#allocation180_spill] sm:$0xff] %v7946_v22  ;;  %v7951_v23 = vld [vmem:[%s10068_s3 + $0x640] sm:$0xff]  ;;  %v7956_v24 = vld [vmem:[%s10068_s3 + $0x648] sm:$0xff] }
  0x70   :  { %10252 = vst [vmem:[#allocation181_spill] sm:$0xff] %v7951_v23  ;;  %10253 = vst [vmem:[#allocation182_spill] sm:$0xff] %v7956_v24  ;;  %v7961_v20 = vld [vmem:[%s10068_s3 + $0x650] sm:$0xff]  ;;  %v7966_v21 = vld [vmem:[%s10068_s3 + $0x658] sm:$0xff] }
  0x71   :  { %10254 = vst [vmem:[#allocation183_spill] sm:$0xff] %v7961_v20  ;;  %10255 = vst [vmem:[#allocation184_spill] sm:$0xff] %v7966_v21  ;;  %v7971_v22 = vld [vmem:[%s10068_s3 + $0x660] sm:$0xff]  ;;  %v7976_v23 = vld [vmem:[%s10068_s3 + $0x668] sm:$0xff] }
  0x72   :  { %10256 = vst [vmem:[#allocation185_spill] sm:$0xff] %v7971_v22  ;;  %10257 = vst [vmem:[#allocation186_spill] sm:$0xff] %v7976_v23  ;;  %v7981_v24 = vld [vmem:[%s10068_s3 + $0x670] sm:$0xff]  ;;  %v7986_v20 = vld [vmem:[%s10068_s3 + $0x678] sm:$0xff] }
  0x73   :  { %10258 = vst [vmem:[#allocation187_spill] sm:$0xff] %v7981_v24  ;;  %10259 = vst [vmem:[#allocation188_spill] sm:$0xff] %v7986_v20  ;;  %v7991_v21 = vld [vmem:[%s10068_s3 + $0x680] sm:$0xff]  ;;  %v7996_v22 = vld [vmem:[%s10068_s3 + $0x688] sm:$0xff] }
  0x74   :  { %10260 = vst [vmem:[#allocation189_spill] sm:$0xff] %v7991_v21  ;;  %10261 = vst [vmem:[#allocation190_spill] sm:$0xff] %v7996_v22  ;;  %v8001_v23 = vld [vmem:[%s10068_s3 + $0x690] sm:$0xff]  ;;  %v8006_v24 = vld [vmem:[%s10068_s3 + $0x698] sm:$0xff] }
  0x75   :  { %10262 = vst [vmem:[#allocation191_spill] sm:$0xff] %v8001_v23  ;;  %10263 = vst [vmem:[#allocation192_spill] sm:$0xff] %v8006_v24  ;;  %v8011_v20 = vld [vmem:[%s10068_s3 + $0x6a0] sm:$0xff]  ;;  %v8016_v21 = vld [vmem:[%s10068_s3 + $0x6a8] sm:$0xff] }
  0x76   :  { %10264 = vst [vmem:[#allocation193_spill] sm:$0xff] %v8011_v20  ;;  %10265 = vst [vmem:[#allocation194_spill] sm:$0xff] %v8016_v21  ;;  %v8021_v22 = vld [vmem:[%s10068_s3 + $0x6b0] sm:$0xff]  ;;  %v8026_v23 = vld [vmem:[%s10068_s3 + $0x6b8] sm:$0xff] }
  0x77   :  { %10266 = vst [vmem:[#allocation195_spill] sm:$0xff] %v8021_v22  ;;  %10267 = vst [vmem:[#allocation196_spill] sm:$0xff] %v8026_v23  ;;  %v8031_v24 = vld [vmem:[%s10068_s3 + $0x6c0] sm:$0xff]  ;;  %v8036_v20 = vld [vmem:[%s10068_s3 + $0x6c8] sm:$0xff] }
  0x78   :  { %10268 = vst [vmem:[#allocation197_spill] sm:$0xff] %v8031_v24  ;;  %10269 = vst [vmem:[#allocation198_spill] sm:$0xff] %v8036_v20  ;;  %v8041_v21 = vld [vmem:[%s10068_s3 + $0x6d0] sm:$0xff]  ;;  %v8046_v22 = vld [vmem:[%s10068_s3 + $0x6d8] sm:$0xff] }
  0x79   :  { %10270 = vst [vmem:[#allocation199_spill] sm:$0xff] %v8041_v21  ;;  %10271 = vst [vmem:[#allocation200_spill] sm:$0xff] %v8046_v22  ;;  %v8051_v23 = vld [vmem:[%s10068_s3 + $0x6e0] sm:$0xff]  ;;  %v8056_v24 = vld [vmem:[%s10068_s3 + $0x6e8] sm:$0xff] }
  0x7a   :  { %10272 = vst [vmem:[#allocation201_spill] sm:$0xff] %v8051_v23  ;;  %10273 = vst [vmem:[#allocation202_spill] sm:$0xff] %v8056_v24  ;;  %v8061_v20 = vld [vmem:[%s10068_s3 + $0x6f0] sm:$0xff]  ;;  %v8066_v21 = vld [vmem:[%s10068_s3 + $0x6f8] sm:$0xff] }
  0x7b   :  { %10274 = vst [vmem:[#allocation203_spill] sm:$0xff] %v8061_v20  ;;  %10275 = vst [vmem:[#allocation204_spill] sm:$0xff] %v8066_v21 }
  0x7c   :  { %741 = vsyncadd [#allocation4 + $0x3], 7168  ;;  %v8071_v23 = vld [vmem:[%s10068_s3 + $0x700] sm:$0xff]  ;;  %v8076_v24 = vld [vmem:[%s10068_s3 + $0x708] sm:$0xff] }
  0x7d   :  { %10276 = vst [vmem:[#allocation205_spill] sm:$0xff] %v8071_v23  ;;  %10277 = vst [vmem:[#allocation206_spill] sm:$0xff] %v8076_v24  ;;  %v8081_v20 = vld [vmem:[%s10068_s3 + $0x710] sm:$0xff]  ;;  %v8086_v21 = vld [vmem:[%s10068_s3 + $0x718] sm:$0xff] }
  0x7e   :  { %10278 = vst [vmem:[#allocation207_spill] sm:$0xff] %v8081_v20  ;;  %10279 = vst [vmem:[#allocation208_spill] sm:$0xff] %v8086_v21  ;;  %v8091_v22 = vld [vmem:[%s10068_s3 + $0x720] sm:$0xff]  ;;  %v8096_v23 = vld [vmem:[%s10068_s3 + $0x728] sm:$0xff] }
  0x7f   :  { %10280 = vst [vmem:[#allocation209_spill] sm:$0xff] %v8091_v22  ;;  %10281 = vst [vmem:[#allocation210_spill] sm:$0xff] %v8096_v23  ;;  %v8101_v24 = vld [vmem:[%s10068_s3 + $0x730] sm:$0xff]  ;;  %v8106_v20 = vld [vmem:[%s10068_s3 + $0x738] sm:$0xff] }
  0x80   :  { %10282 = vst [vmem:[#allocation211_spill] sm:$0xff] %v8101_v24  ;;  %10283 = vst [vmem:[#allocation212_spill] sm:$0xff] %v8106_v20  ;;  %v8111_v21 = vld [vmem:[%s10068_s3 + $0x740] sm:$0xff]  ;;  %v8116_v22 = vld [vmem:[%s10068_s3 + $0x748] sm:$0xff] }
  0x81   :  { %10284 = vst [vmem:[#allocation213_spill] sm:$0xff] %v8111_v21  ;;  %10285 = vst [vmem:[#allocation214_spill] sm:$0xff] %v8116_v22  ;;  %v8121_v23 = vld [vmem:[%s10068_s3 + $0x750] sm:$0xff]  ;;  %v8126_v24 = vld [vmem:[%s10068_s3 + $0x758] sm:$0xff] }
  0x82   :  { %10286 = vst [vmem:[#allocation215_spill] sm:$0xff] %v8121_v23  ;;  %10287 = vst [vmem:[#allocation216_spill] sm:$0xff] %v8126_v24  ;;  %v8131_v20 = vld [vmem:[%s10068_s3 + $0x760] sm:$0xff]  ;;  %v8136_v21 = vld [vmem:[%s10068_s3 + $0x768] sm:$0xff] }
  0x83   :  { %10288 = vst [vmem:[#allocation217_spill] sm:$0xff] %v8131_v20  ;;  %10289 = vst [vmem:[#allocation218_spill] sm:$0xff] %v8136_v21  ;;  %v8141_v22 = vld [vmem:[%s10068_s3 + $0x770] sm:$0xff]  ;;  %v8146_v23 = vld [vmem:[%s10068_s3 + $0x778] sm:$0xff] }
  0x84   :  { %10290 = vst [vmem:[#allocation219_spill] sm:$0xff] %v8141_v22  ;;  %10291 = vst [vmem:[#allocation220_spill] sm:$0xff] %v8146_v23  ;;  %v8151_v24 = vld [vmem:[%s10068_s3 + $0x780] sm:$0xff]  ;;  %v8156_v20 = vld [vmem:[%s10068_s3 + $0x788] sm:$0xff] }
  0x85   :  { %10292 = vst [vmem:[#allocation221_spill] sm:$0xff] %v8151_v24  ;;  %10293 = vst [vmem:[#allocation222_spill] sm:$0xff] %v8156_v20  ;;  %v8161_v21 = vld [vmem:[%s10068_s3 + $0x790] sm:$0xff]  ;;  %v8166_v22 = vld [vmem:[%s10068_s3 + $0x798] sm:$0xff] }
  0x86   :  { %10294 = vst [vmem:[#allocation223_spill] sm:$0xff] %v8161_v21  ;;  %10295 = vst [vmem:[#allocation224_spill] sm:$0xff] %v8166_v22  ;;  %v8171_v23 = vld [vmem:[%s10068_s3 + $0x7a0] sm:$0xff]  ;;  %v8176_v24 = vld [vmem:[%s10068_s3 + $0x7a8] sm:$0xff] }
  0x87   :  { %10296 = vst [vmem:[#allocation225_spill] sm:$0xff] %v8171_v23  ;;  %10297 = vst [vmem:[#allocation226_spill] sm:$0xff] %v8176_v24  ;;  %v8181_v20 = vld [vmem:[%s10068_s3 + $0x7b0] sm:$0xff]  ;;  %v8186_v21 = vld [vmem:[%s10068_s3 + $0x7b8] sm:$0xff] }
  0x88   :  { %10298 = vst [vmem:[#allocation227_spill] sm:$0xff] %v8181_v20  ;;  %10299 = vst [vmem:[#allocation228_spill] sm:$0xff] %v8186_v21  ;;  %v8191_v22 = vld [vmem:[%s10068_s3 + $0x7c0] sm:$0xff]  ;;  %v8196_v23 = vld [vmem:[%s10068_s3 + $0x7c8] sm:$0xff] }
  0x89   :  { %10300 = vst [vmem:[#allocation229_spill] sm:$0xff] %v8191_v22  ;;  %10301 = vst [vmem:[#allocation230_spill] sm:$0xff] %v8196_v23  ;;  %v8201_v24 = vld [vmem:[%s10068_s3 + $0x7d0] sm:$0xff]  ;;  %v8206_v20 = vld [vmem:[%s10068_s3 + $0x7d8] sm:$0xff] }
  0x8a   :  { %10302 = vst [vmem:[#allocation231_spill] sm:$0xff] %v8201_v24  ;;  %10303 = vst [vmem:[#allocation232_spill] sm:$0xff] %v8206_v20  ;;  %v8211_v21 = vld [vmem:[%s10068_s3 + $0x7e0] sm:$0xff]  ;;  %v8216_v22 = vld [vmem:[%s10068_s3 + $0x7e8] sm:$0xff] }
  0x8b   :  { %10304 = vst [vmem:[#allocation233_spill] sm:$0xff] %v8211_v21  ;;  %10305 = vst [vmem:[#allocation234_spill] sm:$0xff] %v8216_v22  ;;  %v8221_v23 = vld [vmem:[%s10068_s3 + $0x7f0] sm:$0xff]  ;;  %v8226_v24 = vld [vmem:[%s10068_s3 + $0x7f8] sm:$0xff] }
  0x8c   :  { %10306 = vst [vmem:[#allocation235_spill] sm:$0xff] %v8221_v23  ;;  %10307 = vst [vmem:[#allocation236_spill] sm:$0xff] %v8226_v24  ;;  %v8231_v20 = vld [vmem:[%s10068_s3 + $0x800] sm:$0xff]  ;;  %v8236_v21 = vld [vmem:[%s10068_s3 + $0x808] sm:$0xff] }
  0x8d   :  { %10308 = vst [vmem:[#allocation237_spill] sm:$0xff] %v8231_v20  ;;  %10309 = vst [vmem:[#allocation238_spill] sm:$0xff] %v8236_v21  ;;  %v8241_v22 = vld [vmem:[%s10068_s3 + $0x810] sm:$0xff]  ;;  %v8246_v23 = vld [vmem:[%s10068_s3 + $0x818] sm:$0xff] }
  0x8e   :  { %10310 = vst [vmem:[#allocation239_spill] sm:$0xff] %v8241_v22  ;;  %10311 = vst [vmem:[#allocation240_spill] sm:$0xff] %v8246_v23  ;;  %v8251_v24 = vld [vmem:[%s10068_s3 + $0x820] sm:$0xff]  ;;  %v8256_v20 = vld [vmem:[%s10068_s3 + $0x828] sm:$0xff] }
  0x8f   :  { %10312 = vst [vmem:[#allocation241_spill] sm:$0xff] %v8251_v24  ;;  %10313 = vst [vmem:[#allocation242_spill] sm:$0xff] %v8256_v20  ;;  %v8261_v21 = vld [vmem:[%s10068_s3 + $0x830] sm:$0xff]  ;;  %v8266_v22 = vld [vmem:[%s10068_s3 + $0x838] sm:$0xff] }
  0x90   :  { %10314 = vst [vmem:[#allocation243_spill] sm:$0xff] %v8261_v21  ;;  %10315 = vst [vmem:[#allocation244_spill] sm:$0xff] %v8266_v22  ;;  %v8271_v23 = vld [vmem:[%s10068_s3 + $0x840] sm:$0xff]  ;;  %v8276_v24 = vld [vmem:[%s10068_s3 + $0x848] sm:$0xff] }
  0x91   :  { %10316 = vst [vmem:[#allocation245_spill] sm:$0xff] %v8271_v23  ;;  %10317 = vst [vmem:[#allocation246_spill] sm:$0xff] %v8276_v24  ;;  %v8281_v20 = vld [vmem:[%s10068_s3 + $0x850] sm:$0xff]  ;;  %v8286_v21 = vld [vmem:[%s10068_s3 + $0x858] sm:$0xff] }
  0x92   :  { %10318 = vst [vmem:[#allocation247_spill] sm:$0xff] %v8281_v20  ;;  %10319 = vst [vmem:[#allocation248_spill] sm:$0xff] %v8286_v21  ;;  %v8291_v22 = vld [vmem:[%s10068_s3 + $0x860] sm:$0xff]  ;;  %v8296_v23 = vld [vmem:[%s10068_s3 + $0x868] sm:$0xff] }
  0x93   :  { %10320 = vst [vmem:[#allocation249_spill] sm:$0xff] %v8291_v22  ;;  %10321 = vst [vmem:[#allocation250_spill] sm:$0xff] %v8296_v23  ;;  %v8301_v24 = vld [vmem:[%s10068_s3 + $0x870] sm:$0xff]  ;;  %v8306_v20 = vld [vmem:[%s10068_s3 + $0x878] sm:$0xff] }
  0x94   :  { %10322 = vst [vmem:[#allocation251_spill] sm:$0xff] %v8301_v24  ;;  %10323 = vst [vmem:[#allocation252_spill] sm:$0xff] %v8306_v20  ;;  %v8311_v21 = vld [vmem:[%s10068_s3 + $0x880] sm:$0xff]  ;;  %v8316_v22 = vld [vmem:[%s10068_s3 + $0x888] sm:$0xff] }
  0x95   :  { %10324 = vst [vmem:[#allocation253_spill] sm:$0xff] %v8311_v21  ;;  %10325 = vst [vmem:[#allocation254_spill] sm:$0xff] %v8316_v22  ;;  %v8321_v23 = vld [vmem:[%s10068_s3 + $0x890] sm:$0xff]  ;;  %v8326_v24 = vld [vmem:[%s10068_s3 + $0x898] sm:$0xff] }
  0x96   :  { %10326 = vst [vmem:[#allocation255_spill] sm:$0xff] %v8321_v23  ;;  %10327 = vst [vmem:[#allocation256_spill] sm:$0xff] %v8326_v24  ;;  %v8331_v20 = vld [vmem:[%s10068_s3 + $0x8a0] sm:$0xff]  ;;  %v8336_v21 = vld [vmem:[%s10068_s3 + $0x8a8] sm:$0xff] }
  0x97   :  { %10328 = vst [vmem:[#allocation257_spill] sm:$0xff] %v8331_v20  ;;  %10329 = vst [vmem:[#allocation258_spill] sm:$0xff] %v8336_v21  ;;  %v8341_v22 = vld [vmem:[%s10068_s3 + $0x8b0] sm:$0xff]  ;;  %v8346_v23 = vld [vmem:[%s10068_s3 + $0x8b8] sm:$0xff] }
  0x98   :  { %10330 = vst [vmem:[#allocation259_spill] sm:$0xff] %v8341_v22  ;;  %10331 = vst [vmem:[#allocation260_spill] sm:$0xff] %v8346_v23 }
  0x99   :  { %896 = vsyncadd [#allocation4 + $0x4], 7168  ;;  %v8351_v20 = vld [vmem:[%s10068_s3 + $0x8c0] sm:$0xff]  ;;  %v8356_v21 = vld [vmem:[%s10068_s3 + $0x8c8] sm:$0xff] }
  0x9a   :  { %10332 = vst [vmem:[#allocation261_spill] sm:$0xff] %v8351_v20  ;;  %10333 = vst [vmem:[#allocation262_spill] sm:$0xff] %v8356_v21  ;;  %v8361_v22 = vld [vmem:[%s10068_s3 + $0x8d0] sm:$0xff]  ;;  %v8366_v23 = vld [vmem:[%s10068_s3 + $0x8d8] sm:$0xff] }
  0x9b   :  { %10334 = vst [vmem:[#allocation263_spill] sm:$0xff] %v8361_v22  ;;  %10335 = vst [vmem:[#allocation264_spill] sm:$0xff] %v8366_v23  ;;  %v8371_v24 = vld [vmem:[%s10068_s3 + $0x8e0] sm:$0xff]  ;;  %v8376_v20 = vld [vmem:[%s10068_s3 + $0x8e8] sm:$0xff] }
  0x9c   :  { %10336 = vst [vmem:[#allocation265_spill] sm:$0xff] %v8371_v24  ;;  %10337 = vst [vmem:[#allocation266_spill] sm:$0xff] %v8376_v20  ;;  %v8381_v21 = vld [vmem:[%s10068_s3 + $0x8f0] sm:$0xff]  ;;  %v8386_v22 = vld [vmem:[%s10068_s3 + $0x8f8] sm:$0xff] }
  0x9d   :  { %10338 = vst [vmem:[#allocation267_spill] sm:$0xff] %v8381_v21  ;;  %10339 = vst [vmem:[#allocation268_spill] sm:$0xff] %v8386_v22  ;;  %v8391_v23 = vld [vmem:[%s10068_s3 + $0x900] sm:$0xff]  ;;  %v8396_v24 = vld [vmem:[%s10068_s3 + $0x908] sm:$0xff] }
  0x9e   :  { %10340 = vst [vmem:[#allocation269_spill] sm:$0xff] %v8391_v23  ;;  %10341 = vst [vmem:[#allocation270_spill] sm:$0xff] %v8396_v24  ;;  %v8401_v20 = vld [vmem:[%s10068_s3 + $0x910] sm:$0xff]  ;;  %v8406_v21 = vld [vmem:[%s10068_s3 + $0x918] sm:$0xff] }
  0x9f   :  { %10342 = vst [vmem:[#allocation271_spill] sm:$0xff] %v8401_v20  ;;  %10343 = vst [vmem:[#allocation272_spill] sm:$0xff] %v8406_v21  ;;  %v8411_v22 = vld [vmem:[%s10068_s3 + $0x920] sm:$0xff]  ;;  %v8416_v23 = vld [vmem:[%s10068_s3 + $0x928] sm:$0xff] }
  0xa0   :  { %10344 = vst [vmem:[#allocation273_spill] sm:$0xff] %v8411_v22  ;;  %10345 = vst [vmem:[#allocation274_spill] sm:$0xff] %v8416_v23  ;;  %v8421_v24 = vld [vmem:[%s10068_s3 + $0x930] sm:$0xff]  ;;  %v8426_v20 = vld [vmem:[%s10068_s3 + $0x938] sm:$0xff] }
  0xa1   :  { %10346 = vst [vmem:[#allocation275_spill] sm:$0xff] %v8421_v24  ;;  %10347 = vst [vmem:[#allocation276_spill] sm:$0xff] %v8426_v20  ;;  %v8431_v21 = vld [vmem:[%s10068_s3 + $0x940] sm:$0xff]  ;;  %v8436_v22 = vld [vmem:[%s10068_s3 + $0x948] sm:$0xff] }
  0xa2   :  { %10348 = vst [vmem:[#allocation277_spill] sm:$0xff] %v8431_v21  ;;  %10349 = vst [vmem:[#allocation278_spill] sm:$0xff] %v8436_v22  ;;  %v8441_v23 = vld [vmem:[%s10068_s3 + $0x950] sm:$0xff]  ;;  %v8446_v24 = vld [vmem:[%s10068_s3 + $0x958] sm:$0xff] }
  0xa3   :  { %10350 = vst [vmem:[#allocation279_spill] sm:$0xff] %v8441_v23  ;;  %10351 = vst [vmem:[#allocation280_spill] sm:$0xff] %v8446_v24  ;;  %v8451_v20 = vld [vmem:[%s10068_s3 + $0x960] sm:$0xff]  ;;  %v8456_v21 = vld [vmem:[%s10068_s3 + $0x968] sm:$0xff] }
  0xa4   :  { %10352 = vst [vmem:[#allocation281_spill] sm:$0xff] %v8451_v20  ;;  %10353 = vst [vmem:[#allocation282_spill] sm:$0xff] %v8456_v21  ;;  %v8461_v22 = vld [vmem:[%s10068_s3 + $0x970] sm:$0xff]  ;;  %v8466_v23 = vld [vmem:[%s10068_s3 + $0x978] sm:$0xff] }
  0xa5   :  { %10354 = vst [vmem:[#allocation283_spill] sm:$0xff] %v8461_v22  ;;  %10355 = vst [vmem:[#allocation284_spill] sm:$0xff] %v8466_v23  ;;  %v8471_v24 = vld [vmem:[%s10068_s3 + $0x980] sm:$0xff]  ;;  %v8476_v20 = vld [vmem:[%s10068_s3 + $0x988] sm:$0xff] }
  0xa6   :  { %10356 = vst [vmem:[#allocation285_spill] sm:$0xff] %v8471_v24  ;;  %10357 = vst [vmem:[#allocation286_spill] sm:$0xff] %v8476_v20  ;;  %v8481_v21 = vld [vmem:[%s10068_s3 + $0x990] sm:$0xff]  ;;  %v8486_v22 = vld [vmem:[%s10068_s3 + $0x998] sm:$0xff] }
  0xa7   :  { %10358 = vst [vmem:[#allocation287_spill] sm:$0xff] %v8481_v21  ;;  %10359 = vst [vmem:[#allocation288_spill] sm:$0xff] %v8486_v22  ;;  %v8491_v23 = vld [vmem:[%s10068_s3 + $0x9a0] sm:$0xff]  ;;  %v8496_v24 = vld [vmem:[%s10068_s3 + $0x9a8] sm:$0xff] }
  0xa8   :  { %10360 = vst [vmem:[#allocation289_spill] sm:$0xff] %v8491_v23  ;;  %10361 = vst [vmem:[#allocation290_spill] sm:$0xff] %v8496_v24  ;;  %v8501_v20 = vld [vmem:[%s10068_s3 + $0x9b0] sm:$0xff]  ;;  %v8506_v21 = vld [vmem:[%s10068_s3 + $0x9b8] sm:$0xff] }
  0xa9   :  { %10362 = vst [vmem:[#allocation291_spill] sm:$0xff] %v8501_v20  ;;  %10363 = vst [vmem:[#allocation292_spill] sm:$0xff] %v8506_v21  ;;  %v8511_v22 = vld [vmem:[%s10068_s3 + $0x9c0] sm:$0xff]  ;;  %v8516_v23 = vld [vmem:[%s10068_s3 + $0x9c8] sm:$0xff] }
  0xaa   :  { %10364 = vst [vmem:[#allocation293_spill] sm:$0xff] %v8511_v22  ;;  %10365 = vst [vmem:[#allocation294_spill] sm:$0xff] %v8516_v23  ;;  %v8521_v24 = vld [vmem:[%s10068_s3 + $0x9d0] sm:$0xff]  ;;  %v8526_v20 = vld [vmem:[%s10068_s3 + $0x9d8] sm:$0xff] }
  0xab   :  { %10366 = vst [vmem:[#allocation295_spill] sm:$0xff] %v8521_v24  ;;  %10367 = vst [vmem:[#allocation296_spill] sm:$0xff] %v8526_v20  ;;  %v8531_v21 = vld [vmem:[%s10068_s3 + $0x9e0] sm:$0xff]  ;;  %v8536_v22 = vld [vmem:[%s10068_s3 + $0x9e8] sm:$0xff] }
  0xac   :  { %10368 = vst [vmem:[#allocation297_spill] sm:$0xff] %v8531_v21  ;;  %10369 = vst [vmem:[#allocation298_spill] sm:$0xff] %v8536_v22  ;;  %v8541_v23 = vld [vmem:[%s10068_s3 + $0x9f0] sm:$0xff]  ;;  %v8546_v24 = vld [vmem:[%s10068_s3 + $0x9f8] sm:$0xff] }
  0xad   :  { %10370 = vst [vmem:[#allocation299_spill] sm:$0xff] %v8541_v23  ;;  %10371 = vst [vmem:[#allocation300_spill] sm:$0xff] %v8546_v24  ;;  %v8551_v20 = vld [vmem:[%s10068_s3 + $0xa00] sm:$0xff]  ;;  %v8556_v21 = vld [vmem:[%s10068_s3 + $0xa08] sm:$0xff] }
  0xae   :  { %10372 = vst [vmem:[#allocation301_spill] sm:$0xff] %v8551_v20  ;;  %10373 = vst [vmem:[#allocation302_spill] sm:$0xff] %v8556_v21  ;;  %v8561_v22 = vld [vmem:[%s10068_s3 + $0xa10] sm:$0xff]  ;;  %v8566_v23 = vld [vmem:[%s10068_s3 + $0xa18] sm:$0xff] }
  0xaf   :  { %10374 = vst [vmem:[#allocation303_spill] sm:$0xff] %v8561_v22  ;;  %10375 = vst [vmem:[#allocation304_spill] sm:$0xff] %v8566_v23  ;;  %v8571_v24 = vld [vmem:[%s10068_s3 + $0xa20] sm:$0xff]  ;;  %v8576_v20 = vld [vmem:[%s10068_s3 + $0xa28] sm:$0xff] }
  0xb0   :  { %10376 = vst [vmem:[#allocation305_spill] sm:$0xff] %v8571_v24  ;;  %10377 = vst [vmem:[#allocation306_spill] sm:$0xff] %v8576_v20  ;;  %v8581_v21 = vld [vmem:[%s10068_s3 + $0xa30] sm:$0xff]  ;;  %v8586_v22 = vld [vmem:[%s10068_s3 + $0xa38] sm:$0xff] }
  0xb1   :  { %10378 = vst [vmem:[#allocation307_spill] sm:$0xff] %v8581_v21  ;;  %10379 = vst [vmem:[#allocation308_spill] sm:$0xff] %v8586_v22  ;;  %v8591_v23 = vld [vmem:[%s10068_s3 + $0xa40] sm:$0xff]  ;;  %v8596_v24 = vld [vmem:[%s10068_s3 + $0xa48] sm:$0xff] }
  0xb2   :  { %10380 = vst [vmem:[#allocation309_spill] sm:$0xff] %v8591_v23  ;;  %10381 = vst [vmem:[#allocation310_spill] sm:$0xff] %v8596_v24  ;;  %v8601_v20 = vld [vmem:[%s10068_s3 + $0xa50] sm:$0xff]  ;;  %v8606_v21 = vld [vmem:[%s10068_s3 + $0xa58] sm:$0xff] }
  0xb3   :  { %10382 = vst [vmem:[#allocation311_spill] sm:$0xff] %v8601_v20  ;;  %10383 = vst [vmem:[#allocation312_spill] sm:$0xff] %v8606_v21  ;;  %v8611_v22 = vld [vmem:[%s10068_s3 + $0xa60] sm:$0xff]  ;;  %v8616_v23 = vld [vmem:[%s10068_s3 + $0xa68] sm:$0xff] }
  0xb4   :  { %10384 = vst [vmem:[#allocation313_spill] sm:$0xff] %v8611_v22  ;;  %10385 = vst [vmem:[#allocation314_spill] sm:$0xff] %v8616_v23  ;;  %v8621_v24 = vld [vmem:[%s10068_s3 + $0xa70] sm:$0xff]  ;;  %v8626_v20 = vld [vmem:[%s10068_s3 + $0xa78] sm:$0xff] }
  0xb5   :  { %10386 = vst [vmem:[#allocation315_spill] sm:$0xff] %v8621_v24  ;;  %10387 = vst [vmem:[#allocation316_spill] sm:$0xff] %v8626_v20 }
  0xb6   :  { %1051 = vsyncadd [#allocation4 + $0x5], 7168  ;;  %v8631_v22 = vld [vmem:[%s10068_s3 + $0xa80] sm:$0xff]  ;;  %v8636_v23 = vld [vmem:[%s10068_s3 + $0xa88] sm:$0xff] }
  0xb7   :  { %10388 = vst [vmem:[#allocation317_spill] sm:$0xff] %v8631_v22  ;;  %10389 = vst [vmem:[#allocation318_spill] sm:$0xff] %v8636_v23  ;;  %v8641_v24 = vld [vmem:[%s10068_s3 + $0xa90] sm:$0xff]  ;;  %v8646_v20 = vld [vmem:[%s10068_s3 + $0xa98] sm:$0xff] }
  0xb8   :  { %10390 = vst [vmem:[#allocation319_spill] sm:$0xff] %v8641_v24  ;;  %10391 = vst [vmem:[#allocation320_spill] sm:$0xff] %v8646_v20  ;;  %v8651_v21 = vld [vmem:[%s10068_s3 + $0xaa0] sm:$0xff]  ;;  %v8656_v22 = vld [vmem:[%s10068_s3 + $0xaa8] sm:$0xff] }
  0xb9   :  { %10392 = vst [vmem:[#allocation321_spill] sm:$0xff] %v8651_v21  ;;  %10393 = vst [vmem:[#allocation322_spill] sm:$0xff] %v8656_v22  ;;  %v8661_v23 = vld [vmem:[%s10068_s3 + $0xab0] sm:$0xff]  ;;  %v8666_v24 = vld [vmem:[%s10068_s3 + $0xab8] sm:$0xff] }
  0xba   :  { %10394 = vst [vmem:[#allocation323_spill] sm:$0xff] %v8661_v23  ;;  %10395 = vst [vmem:[#allocation324_spill] sm:$0xff] %v8666_v24  ;;  %v8671_v20 = vld [vmem:[%s10068_s3 + $0xac0] sm:$0xff]  ;;  %v8676_v21 = vld [vmem:[%s10068_s3 + $0xac8] sm:$0xff] }
  0xbb   :  { %10396 = vst [vmem:[#allocation325_spill] sm:$0xff] %v8671_v20  ;;  %10397 = vst [vmem:[#allocation326_spill] sm:$0xff] %v8676_v21  ;;  %v8681_v22 = vld [vmem:[%s10068_s3 + $0xad0] sm:$0xff]  ;;  %v8686_v23 = vld [vmem:[%s10068_s3 + $0xad8] sm:$0xff] }
  0xbc   :  { %10398 = vst [vmem:[#allocation327_spill] sm:$0xff] %v8681_v22  ;;  %10399 = vst [vmem:[#allocation328_spill] sm:$0xff] %v8686_v23  ;;  %v8691_v24 = vld [vmem:[%s10068_s3 + $0xae0] sm:$0xff]  ;;  %v8696_v20 = vld [vmem:[%s10068_s3 + $0xae8] sm:$0xff] }
  0xbd   :  { %10400 = vst [vmem:[#allocation329_spill] sm:$0xff] %v8691_v24  ;;  %10401 = vst [vmem:[#allocation330_spill] sm:$0xff] %v8696_v20  ;;  %v8701_v21 = vld [vmem:[%s10068_s3 + $0xaf0] sm:$0xff]  ;;  %v8706_v22 = vld [vmem:[%s10068_s3 + $0xaf8] sm:$0xff] }
  0xbe   :  { %10402 = vst [vmem:[#allocation331_spill] sm:$0xff] %v8701_v21  ;;  %10403 = vst [vmem:[#allocation332_spill] sm:$0xff] %v8706_v22  ;;  %v8711_v23 = vld [vmem:[%s10068_s3 + $0xb00] sm:$0xff]  ;;  %v8716_v24 = vld [vmem:[%s10068_s3 + $0xb08] sm:$0xff] }
  0xbf   :  { %10404 = vst [vmem:[#allocation333_spill] sm:$0xff] %v8711_v23  ;;  %10405 = vst [vmem:[#allocation334_spill] sm:$0xff] %v8716_v24  ;;  %v8721_v20 = vld [vmem:[%s10068_s3 + $0xb10] sm:$0xff]  ;;  %v8726_v21 = vld [vmem:[%s10068_s3 + $0xb18] sm:$0xff] }
  0xc0   :  { %10406 = vst [vmem:[#allocation335_spill] sm:$0xff] %v8721_v20  ;;  %10407 = vst [vmem:[#allocation336_spill] sm:$0xff] %v8726_v21  ;;  %v8731_v22 = vld [vmem:[%s10068_s3 + $0xb20] sm:$0xff]  ;;  %v8736_v23 = vld [vmem:[%s10068_s3 + $0xb28] sm:$0xff] }
  0xc1   :  { %10408 = vst [vmem:[#allocation337_spill] sm:$0xff] %v8731_v22  ;;  %10409 = vst [vmem:[#allocation338_spill] sm:$0xff] %v8736_v23  ;;  %v8741_v24 = vld [vmem:[%s10068_s3 + $0xb30] sm:$0xff]  ;;  %v8746_v20 = vld [vmem:[%s10068_s3 + $0xb38] sm:$0xff] }
  0xc2   :  { %10410 = vst [vmem:[#allocation339_spill] sm:$0xff] %v8741_v24  ;;  %10411 = vst [vmem:[#allocation340_spill] sm:$0xff] %v8746_v20  ;;  %v8751_v21 = vld [vmem:[%s10068_s3 + $0xb40] sm:$0xff]  ;;  %v8756_v22 = vld [vmem:[%s10068_s3 + $0xb48] sm:$0xff] }
  0xc3   :  { %10412 = vst [vmem:[#allocation341_spill] sm:$0xff] %v8751_v21  ;;  %10413 = vst [vmem:[#allocation342_spill] sm:$0xff] %v8756_v22  ;;  %v8761_v23 = vld [vmem:[%s10068_s3 + $0xb50] sm:$0xff]  ;;  %v8766_v24 = vld [vmem:[%s10068_s3 + $0xb58] sm:$0xff] }
  0xc4   :  { %10414 = vst [vmem:[#allocation343_spill] sm:$0xff] %v8761_v23  ;;  %10415 = vst [vmem:[#allocation344_spill] sm:$0xff] %v8766_v24  ;;  %v8771_v20 = vld [vmem:[%s10068_s3 + $0xb60] sm:$0xff]  ;;  %v8776_v21 = vld [vmem:[%s10068_s3 + $0xb68] sm:$0xff] }
  0xc5   :  { %10416 = vst [vmem:[#allocation345_spill] sm:$0xff] %v8771_v20  ;;  %10417 = vst [vmem:[#allocation346_spill] sm:$0xff] %v8776_v21  ;;  %v8781_v22 = vld [vmem:[%s10068_s3 + $0xb70] sm:$0xff]  ;;  %v8786_v23 = vld [vmem:[%s10068_s3 + $0xb78] sm:$0xff] }
  0xc6   :  { %10418 = vst [vmem:[#allocation347_spill] sm:$0xff] %v8781_v22  ;;  %10419 = vst [vmem:[#allocation348_spill] sm:$0xff] %v8786_v23  ;;  %v8791_v24 = vld [vmem:[%s10068_s3 + $0xb80] sm:$0xff]  ;;  %v8796_v20 = vld [vmem:[%s10068_s3 + $0xb88] sm:$0xff] }
  0xc7   :  { %10420 = vst [vmem:[#allocation349_spill] sm:$0xff] %v8791_v24  ;;  %10421 = vst [vmem:[#allocation350_spill] sm:$0xff] %v8796_v20  ;;  %v8801_v21 = vld [vmem:[%s10068_s3 + $0xb90] sm:$0xff]  ;;  %v8806_v22 = vld [vmem:[%s10068_s3 + $0xb98] sm:$0xff] }
  0xc8   :  { %10422 = vst [vmem:[#allocation351_spill] sm:$0xff] %v8801_v21  ;;  %10423 = vst [vmem:[#allocation352_spill] sm:$0xff] %v8806_v22  ;;  %v8811_v23 = vld [vmem:[%s10068_s3 + $0xba0] sm:$0xff]  ;;  %v8816_v24 = vld [vmem:[%s10068_s3 + $0xba8] sm:$0xff] }
  0xc9   :  { %10424 = vst [vmem:[#allocation353_spill] sm:$0xff] %v8811_v23  ;;  %10425 = vst [vmem:[#allocation354_spill] sm:$0xff] %v8816_v24  ;;  %v8821_v20 = vld [vmem:[%s10068_s3 + $0xbb0] sm:$0xff]  ;;  %v8826_v21 = vld [vmem:[%s10068_s3 + $0xbb8] sm:$0xff] }
  0xca   :  { %10426 = vst [vmem:[#allocation355_spill] sm:$0xff] %v8821_v20  ;;  %10427 = vst [vmem:[#allocation356_spill] sm:$0xff] %v8826_v21  ;;  %v8831_v22 = vld [vmem:[%s10068_s3 + $0xbc0] sm:$0xff]  ;;  %v8836_v23 = vld [vmem:[%s10068_s3 + $0xbc8] sm:$0xff] }
  0xcb   :  { %10428 = vst [vmem:[#allocation357_spill] sm:$0xff] %v8831_v22  ;;  %10429 = vst [vmem:[#allocation358_spill] sm:$0xff] %v8836_v23  ;;  %v8841_v24 = vld [vmem:[%s10068_s3 + $0xbd0] sm:$0xff]  ;;  %v8846_v20 = vld [vmem:[%s10068_s3 + $0xbd8] sm:$0xff] }
  0xcc   :  { %10430 = vst [vmem:[#allocation359_spill] sm:$0xff] %v8841_v24  ;;  %10431 = vst [vmem:[#allocation360_spill] sm:$0xff] %v8846_v20  ;;  %v8851_v21 = vld [vmem:[%s10068_s3 + $0xbe0] sm:$0xff]  ;;  %v8856_v22 = vld [vmem:[%s10068_s3 + $0xbe8] sm:$0xff] }
  0xcd   :  { %10432 = vst [vmem:[#allocation361_spill] sm:$0xff] %v8851_v21  ;;  %10433 = vst [vmem:[#allocation362_spill] sm:$0xff] %v8856_v22  ;;  %v8861_v23 = vld [vmem:[%s10068_s3 + $0xbf0] sm:$0xff]  ;;  %v8866_v24 = vld [vmem:[%s10068_s3 + $0xbf8] sm:$0xff] }
  0xce   :  { %10434 = vst [vmem:[#allocation363_spill] sm:$0xff] %v8861_v23  ;;  %10435 = vst [vmem:[#allocation364_spill] sm:$0xff] %v8866_v24  ;;  %v8871_v20 = vld [vmem:[%s10068_s3 + $0xc00] sm:$0xff]  ;;  %v8876_v21 = vld [vmem:[%s10068_s3 + $0xc08] sm:$0xff] }
  0xcf   :  { %10436 = vst [vmem:[#allocation365_spill] sm:$0xff] %v8871_v20  ;;  %10437 = vst [vmem:[#allocation366_spill] sm:$0xff] %v8876_v21  ;;  %v8881_v22 = vld [vmem:[%s10068_s3 + $0xc10] sm:$0xff]  ;;  %v8886_v23 = vld [vmem:[%s10068_s3 + $0xc18] sm:$0xff] }
  0xd0   :  { %10438 = vst [vmem:[#allocation367_spill] sm:$0xff] %v8881_v22  ;;  %10439 = vst [vmem:[#allocation368_spill] sm:$0xff] %v8886_v23  ;;  %v8891_v24 = vld [vmem:[%s10068_s3 + $0xc20] sm:$0xff]  ;;  %v8896_v20 = vld [vmem:[%s10068_s3 + $0xc28] sm:$0xff] }
  0xd1   :  { %10440 = vst [vmem:[#allocation369_spill] sm:$0xff] %v8891_v24  ;;  %10441 = vst [vmem:[#allocation370_spill] sm:$0xff] %v8896_v20  ;;  %v8901_v21 = vld [vmem:[%s10068_s3 + $0xc30] sm:$0xff]  ;;  %v8906_v22 = vld [vmem:[%s10068_s3 + $0xc38] sm:$0xff] }
  0xd2   :  { %10442 = vst [vmem:[#allocation371_spill] sm:$0xff] %v8901_v21  ;;  %10443 = vst [vmem:[#allocation372_spill] sm:$0xff] %v8906_v22 }
  0xd3   :  { %1206 = vsyncadd [#allocation4 + $0x6], 7168 }
  0xd4   :  { %6808 = dma.done.wait [#allocation4 + $0x7], 3136 }
  0xd5   :  { %6809 = vsyncadd [#allocation4 + $0x7], 4294964160  ;;  %v10073_v23 = vmov 0.0   ;;  %vm6827_vm0 = vmmov 0   ;;  %v6758_v20 = vld [vmem:[%s10066_s1] sm:$0xff]   ;;  %v6759_v21 = vld [vmem:[%s10066_s1 + $0x8] sm:$0xff]  }
  0xd6   :  { %5459 = vmatprep.subr.bf16.mxu0 %v10073_v23  ;;  %5465 = vmatprep.mubr.msk.bf16.mxu0 %vm6827_vm0, %v10073_v23  ;;  %v6760_v22 = vld [vmem:[%s10066_s1 + $0x10] ss:$0 sps:$4 sm:$0x33]   ;;  %vm1486_vm1 = vcmask 1041408   ;;  %v6761_v19 = vld [vmem:[#allocation2] sm:$0xff]   ;;  %vm1410_vm2 = vcmask 293888  }
  0xd7   :  { %5460 = vmatpush3.bf16.msra.mxu0 %v6758_v20  ;;  %v1488_v24 = vsel %vm1486_vm1, %v6760_v22, 0  ;;  %v6762_v20 = vld [vmem:[#allocation2 + $0x8] sm:$0xff]   ;;  %v6763_v18 = vld [vmem:[#allocation2 + $0x10] sm:$0xff]  }
  0xd8   :  { %5461 = vmatprep.subr.bf16.mxu0 %v10073_v23  ;;  %v6766_v22 = vld [vmem:[#allocation2 + $0x28] sm:$0xff]  }
  0xdb   :  { %5462 = vmatpush3.bf16.msra.mxu0 %v6759_v21  ;;  %v6764_v21 = vld [vmem:[#allocation2 + $0x18] sm:$0xff]  }
  0xdc   :  { %5463 = vmatprep.subr.bf16.mxu0 %v10073_v23 }
  0xdf   :  { %5464 = vmatpush3.bf16.msra.mxu0 %v1488_v24  ;;  %v6768_v24 = vld [vmem:[#allocation2 + $0x38] sm:$0xff]  }
  0xe2   :  { %5466 = vmatmul.mubr.msk.bf16.vlgmr.msra.gmra.mrb[0].mxu0 %vm1410_vm2, %v6761_v19  ;;  %v6765_v19 = vld [vmem:[#allocation2 + $0x20] sm:$0xff]  }
  0xe3   :  { %5469 = vmatprep.mubr.msk.bf16.mxu0 %vm6827_vm0, %v10073_v23 }
  0xea   :  { %5470 = vmatmul.mubr.msk.bf16.gmra.mrb[4].mxu0 %vm1410_vm2, %v6762_v20  ;;  %v6769_v20 = vld [vmem:[#allocation2 + $0x40] sm:$0xff]  }
  0xeb   :  { %5473 = vmatprep.mubr.msk.bf16.mxu0 %vm6827_vm0, %v10073_v23 }
  0xf2   :  { %5474 = vmatmul.mubr.msk.bf16.gmra.mrb[8].mxu0 %vm1410_vm2, %v6763_v18  ;;  %v6767_v18 = vld [vmem:[#allocation2 + $0x30] sm:$0xff]  }
  0xf3   :  { %5477 = vmatprep.mubr.msk.bf16.mxu0 %vm6827_vm0, %v10073_v23 }
  0xfa   :  { %5478 = vmatmul.mubr.msk.bf16.gmra.mrb[12].mxu0 %vm1410_vm2, %v6764_v21  ;;  %v6770_v21 = vld [vmem:[#allocation2 + $0x48] sm:$0xff]  }
  0xfb   :  { %5481 = vmatprep.mubr.msk.bf16.mxu0 %vm6827_vm0, %v10073_v23 }
 0x102   :  { %5482 = vmatmul.mubr.msk.bf16.gmra.mrb[16].mxu0 %vm1410_vm2, %v6765_v19  ;;  %v6771_v19 = vld [vmem:[#allocation2 + $0x50] sm:$0xff]  }
 0x103   :  { %5485 = vmatprep.mubr.msk.bf16.mxu0 %vm6827_vm0, %v10073_v23 }
 0x10a   :  { %5486 = vmatmul.mubr.msk.bf16.gmra.mrb[20].mxu0 %vm1410_vm2, %v6766_v22  ;;  %v6772_v22 = vld [vmem:[#allocation2 + $0x58] sm:$0xff]  }
 0x10b   :  { %5489 = vmatprep.mubr.msk.bf16.mxu0 %vm6827_vm0, %v10073_v23 }
 0x112   :  { %5490 = vmatmul.mubr.msk.bf16.gmra.mrb[24].mxu0 %vm1410_vm2, %v6767_v18  ;;  %v6773_v18 = vld [vmem:[#allocation2 + $0x60] sm:$0xff]  }
 0x113   :  { %5493 = vmatprep.mubr.msk.bf16.mxu0 %vm6827_vm0, %v10073_v23 }
 0x11a   :  { %5494 = vmatmul.mubr.msk.bf16.gmra.mrb[28].mxu0 %vm1410_vm2, %v6768_v24  ;;  %v6774_v24 = vld [vmem:[#allocation2 + $0x68] sm:$0xff]  }
 0x11b   :  { %5497 = vmatprep.mubr.msk.bf16.mxu0 %vm6827_vm0, %v10073_v23 }
 0x122   :  { %5498 = vmatmul.mubr.msk.bf16.gmra.mrb[32].mxu0 %vm1410_vm2, %v6769_v20  ;;  %v6775_v20 = vld [vmem:[#allocation2 + $0x70] sm:$0xff]  }
 0x123   :  { %5501 = vmatprep.mubr.msk.bf16.mxu0 %vm6827_vm0, %v10073_v23 }
 0x12a   :  { %5502 = vmatmul.mubr.msk.bf16.gmra.mrb[36].mxu0 %vm1410_vm2, %v6770_v21  ;;  %v6776_v21 = vld [vmem:[#allocation2 + $0x78] sm:$0xff]  }
 0x12b   :  { %5505 = vmatprep.mubr.msk.bf16.mxu0 %vm6827_vm0, %v10073_v23 }
 0x132   :  { %5506 = vmatmul.mubr.msk.bf16.gmra.mrb[40].mxu0 %vm1410_vm2, %v6771_v19  ;;  %v6777_v19 = vld [vmem:[#allocation2 + $0x80] sm:$0xff]  }
 0x133   :  { %5509 = vmatprep.mubr.msk.bf16.mxu0 %vm6827_vm0, %v10073_v23 }
 0x13a   :  { %5510 = vmatmul.mubr.msk.bf16.gmra.mrb[44].mxu0 %vm1410_vm2, %v6772_v22  ;;  %v6778_v22 = vld [vmem:[#allocation2 + $0x88] sm:$0xff]  }
 0x13b   :  { %5513 = vmatprep.mubr.msk.bf16.mxu0 %vm6827_vm0, %v10073_v23 }
 0x142   :  { %5514 = vmatmul.mubr.msk.bf16.gmra.mrb[48].mxu0 %vm1410_vm2, %v6773_v18  ;;  %v6779_v18 = vld [vmem:[#allocation2 + $0x90] sm:$0xff]  }
 0x143   :  { %5517 = vmatprep.mubr.msk.bf16.mxu0 %vm6827_vm0, %v10073_v23 }
 0x14a   :  { %5518 = vmatmul.mubr.msk.bf16.gmra.mrb[52].mxu0 %vm1410_vm2, %v6774_v24  ;;  %v6780_v24 = vld [vmem:[#allocation2 + $0x98] sm:$0xff]  }
 0x14b   :  { %5521 = vmatprep.mubr.msk.bf16.mxu0 %vm6827_vm0, %v10073_v23 }
 0x152   :  { %5522 = vmatmul.mubr.msk.bf16.gmra.mrb[56].mxu0 %vm1410_vm2, %v6775_v20  ;;  %v6781_v20 = vld [vmem:[#allocation2 + $0xa0] sm:$0xff]  }
 0x153   :  { %5525 = vmatprep.mubr.msk.bf16.mxu0 %vm6827_vm0, %v10073_v23 }
 0x15a   :  { %5526 = vmatmul.mubr.msk.bf16.gmra.mrb[60].mxu0 %vm1410_vm2, %v6776_v21  ;;  %v6782_v21 = vld [vmem:[#allocation2 + $0xa8] sm:$0xff]  }
 0x15b   :  { %5529 = vmatprep.mubr.msk.bf16.mxu0 %vm6827_vm0, %v10073_v23 }
 0x162   :  { %5530 = vmatmul.mubr.msk.bf16.gmra.mrb[64].mxu0 %vm1410_vm2, %v6777_v19  ;;  %v6783_v19 = vld [vmem:[#allocation2 + $0xb0] sm:$0xff]  }
 0x163   :  { %5533 = vmatprep.mubr.msk.bf16.mxu0 %vm6827_vm0, %v10073_v23 }
 0x16a   :  { %5534 = vmatmul.mubr.msk.bf16.gmra.mrb[68].mxu0 %vm1410_vm2, %v6778_v22  ;;  %v6784_v22 = vld [vmem:[#allocation2 + $0xb8] sm:$0xff]  }
 0x16b   :  { %5537 = vmatprep.mubr.msk.bf16.mxu0 %vm6827_vm0, %v10073_v23 }
 0x172   :  { %5538 = vmatmul.mubr.msk.bf16.gmra.mrb[72].mxu0 %vm1410_vm2, %v6779_v18  ;;  %v6785_v18 = vld [vmem:[#allocation2 + $0xc0] ss:$0 sps:$4 sm:$0xff]  }
 0x173   :  { %5541 = vmatprep.mubr.msk.bf16.mxu0 %vm6827_vm0, %v10073_v23 }
 0x17a   :  { %5542 = vmatmul.mubr.msk.bf16.gmra.mrb[76].mxu0 %vm1410_vm2, %v6780_v24  ;;  %v8998_v24 = vld [vmem:[%s10067_s2] ss:$0 sm:$0xff] }
 0x17b   :  { %5545 = vmatprep.mubr.msk.bf16.mxu0 %vm6827_vm0, %v10073_v23 }
 0x182   :  { %5546 = vmatmul.mubr.msk.bf16.gmra.mrb[80].mxu0 %vm1410_vm2, %v6781_v20 }
 0x183   :  { %5549 = vmatprep.mubr.msk.bf16.mxu0 %vm6827_vm0, %v10073_v23 }
 0x18a   :  { %5550 = vmatmul.mubr.msk.bf16.gmra.mrb[84].mxu0 %vm1410_vm2, %v6782_v21 }
 0x18b   :  { %5553 = vmatprep.mubr.msk.bf16.mxu0 %vm6827_vm0, %v10073_v23 }
 0x192   :  { %5554 = vmatmul.mubr.msk.bf16.gmra.mrb[88].mxu0 %vm1410_vm2, %v6783_v19 }
 0x193   :  { %5557 = vmatprep.mubr.msk.bf16.mxu0 %vm6827_vm0, %v10073_v23 }
 0x19a   :  { %5558 = vmatmul.mubr.msk.bf16.gmra.mrb[92].mxu0 %vm1410_vm2, %v6784_v22 }
 0x19b   :  { %5561 = vmatprep.mubr.msk.bf16.mxu0 %vm6827_vm0, %v10073_v23 }
 0x1a2   :  { %5562 = vmatmul.mubr.msk.bf16.gmra.mrb[96].mxu0 %vm1410_vm2, %v6785_v18 }
 0x1b5   :  { %v1524_v20 = vpop.f32.mrb[0].mxu0 }
 0x1b6   :  { %v1525_v21 = vadd.f32 %v8998_v24, %v1524_v20  ;;  %v5467_v19 = vpop.f32.mrb[1].mxu0 }
 0x1b7   :  { %v1527_v17 = vpop.f32.mrb[2].mxu0 }
 0x1b8   :  { %v1528_v16 = vadd.f32 %v8998_v24, %v1527_v17  ;;  %v5468_v15 = vpop.f32.mrb[3].mxu0  ;;  %v1722_v22 = vmax.f32 %v1525_v21, 0.0 }
 0x1ba   :  { %v1723_v14 = vmax.f32 %v1528_v16, 0.0 }
 0x1bc   :  { %v9002_v13 = vpack.c.bf16 %v1723_v14, %v1722_v22 }
 0x1bd   :  { %v1532_v23 = vpop.f32.mrb[4].mxu0 }
 0x1be   :  { %v1533_v18 = vadd.f32 %v8998_v24, %v1532_v23  ;;  %v5471_v12 = vpop.f32.mrb[5].mxu0 }
 0x1bf   :  { %v1535_v11 = vpop.f32.mrb[6].mxu0 }
 0x1c0   :  { %v1536_v10 = vadd.f32 %v8998_v24, %v1535_v11  ;;  %v5472_v9 = vpop.f32.mrb[7].mxu0  ;;  %v1724_v8 = vmax.f32 %v1533_v18, 0.0 }
 0x1c2   :  { %v1725_v7 = vmax.f32 %v1536_v10, 0.0 }
 0x1c4   :  { %v9006_v20 = vpack.c.bf16 %v1725_v7, %v1724_v8 }
 0x1c5   :  { %v1540_v19 = vpop.f32.mrb[8].mxu0 }
 0x1c6   :  { %v1541_v17 = vadd.f32 %v8998_v24, %v1540_v19  ;;  %v5475_v15 = vpop.f32.mrb[9].mxu0 }
 0x1c7   :  { %v1543_v21 = vpop.f32.mrb[10].mxu0 }
 0x1c8   :  { %v1544_v14 = vadd.f32 %v8998_v24, %v1543_v21  ;;  %v5476_v16 = vpop.f32.mrb[11].mxu0  ;;  %v1726_v22 = vmax.f32 %v1541_v17, 0.0 }
 0x1ca   :  { %v1727_v6 = vmax.f32 %v1544_v14, 0.0 }
 0x1cc   :  { %v9010_v23 = vpack.c.bf16 %v1727_v6, %v1726_v22 }
 0x1cd   :  { %v1548_v12 = vpop.f32.mrb[12].mxu0 }
 0x1ce   :  { %v1549_v11 = vadd.f32 %v8998_v24, %v1548_v12  ;;  %v5479_v9 = vpop.f32.mrb[13].mxu0 }
 0x1cf   :  { %v1551_v18 = vpop.f32.mrb[14].mxu0 }
 0x1d0   :  { %v1552_v7 = vadd.f32 %v8998_v24, %v1551_v18  ;;  %v5480_v8 = vpop.f32.mrb[15].mxu0  ;;  %v1728_v10 = vmax.f32 %v1549_v11, 0.0 }
 0x1d2   :  { %v1729_v5 = vmax.f32 %v1552_v7, 0.0 }
 0x1d4   :  { %v9014_v19 = vpack.c.bf16 %v1729_v5, %v1728_v10 }
 0x1d5   :  { %v1556_v15 = vpop.f32.mrb[16].mxu0 }
 0x1d6   :  { %10444 = vst [vmem:[#allocation373_spill] sm:$0xff] %v9014_v19  ;;  %v1557_v21 = vadd.f32 %v8998_v24, %v1556_v15  ;;  %v5483_v16 = vpop.f32.mrb[17].mxu0 }
 0x1d7   :  { %v1559_v17 = vpop.f32.mrb[18].mxu0 }
 0x1d8   :  { %v1560_v6 = vadd.f32 %v8998_v24, %v1559_v17  ;;  %v5484_v14 = vpop.f32.mrb[19].mxu0  ;;  %v1730_v22 = vmax.f32 %v1557_v21, 0.0 }
 0x1da   :  { %v1731_v4 = vmax.f32 %v1560_v6, 0.0 }
 0x1dc   :  { %v9018_v12 = vpack.c.bf16 %v1731_v4, %v1730_v22 }
 0x1dd   :  { %v1564_v9 = vpop.f32.mrb[20].mxu0 }
 0x1de   :  { %10445 = vst [vmem:[#allocation374_spill] sm:$0xff] %v9018_v12  ;;  %v1565_v18 = vadd.f32 %v8998_v24, %v1564_v9  ;;  %v5487_v8 = vpop.f32.mrb[21].mxu0 }
 0x1df   :  { %v1567_v11 = vpop.f32.mrb[22].mxu0 }
 0x1e0   :  { %v1568_v5 = vadd.f32 %v8998_v24, %v1567_v11  ;;  %v5488_v7 = vpop.f32.mrb[23].mxu0  ;;  %v1732_v10 = vmax.f32 %v1565_v18, 0.0 }
 0x1e2   :  { %v1733_v19 = vmax.f32 %v1568_v5, 0.0 }
 0x1e4   :  { %v9022_v15 = vpack.c.bf16 %v1733_v19, %v1732_v10 }
 0x1e5   :  { %v1572_v16 = vpop.f32.mrb[24].mxu0 }
 0x1e6   :  { %10446 = vst [vmem:[#allocation375_spill] sm:$0xff] %v9022_v15  ;;  %v1573_v17 = vadd.f32 %v8998_v24, %v1572_v16  ;;  %v5491_v14 = vpop.f32.mrb[25].mxu0 }
 0x1e7   :  { %v1575_v21 = vpop.f32.mrb[26].mxu0 }
 0x1e8   :  { %v1576_v4 = vadd.f32 %v8998_v24, %v1575_v21  ;;  %v5492_v6 = vpop.f32.mrb[27].mxu0  ;;  %v1734_v22 = vmax.f32 %v1573_v17, 0.0 }
 0x1ea   :  { %v1735_v12 = vmax.f32 %v1576_v4, 0.0 }
 0x1ec   :  { %v9026_v9 = vpack.c.bf16 %v1735_v12, %v1734_v22 }
 0x1ed   :  { %v1580_v8 = vpop.f32.mrb[28].mxu0 }
 0x1ee   :  { %10447 = vst [vmem:[#allocation376_spill] sm:$0xff] %v9026_v9  ;;  %v1581_v11 = vadd.f32 %v8998_v24, %v1580_v8  ;;  %v5495_v7 = vpop.f32.mrb[29].mxu0 }
 0x1ef   :  { %v1583_v18 = vpop.f32.mrb[30].mxu0 }
 0x1f0   :  { %v1584_v19 = vadd.f32 %v8998_v24, %v1583_v18  ;;  %v5496_v5 = vpop.f32.mrb[31].mxu0  ;;  %v1736_v10 = vmax.f32 %v1581_v11, 0.0 }
 0x1f2   :  { %v1737_v15 = vmax.f32 %v1584_v19, 0.0 }
 0x1f4   :  { %v9030_v16 = vpack.c.bf16 %v1737_v15, %v1736_v10 }
 0x1f5   :  { %v1588_v14 = vpop.f32.mrb[32].mxu0 }
 0x1f6   :  { %10448 = vst [vmem:[#allocation377_spill] sm:$0xff] %v9030_v16  ;;  %v1589_v21 = vadd.f32 %v8998_v24, %v1588_v14  ;;  %v5499_v6 = vpop.f32.mrb[33].mxu0 }
 0x1f7   :  { %v1591_v17 = vpop.f32.mrb[34].mxu0 }
 0x1f8   :  { %v1592_v12 = vadd.f32 %v8998_v24, %v1591_v17  ;;  %v5500_v4 = vpop.f32.mrb[35].mxu0  ;;  %v1738_v22 = vmax.f32 %v1589_v21, 0.0 }
 0x1fa   :  { %v1739_v9 = vmax.f32 %v1592_v12, 0.0 }
 0x1fc   :  { %v9034_v8 = vpack.c.bf16 %v1739_v9, %v1738_v22 }
 0x1fd   :  { %v1596_v7 = vpop.f32.mrb[36].mxu0 }
 0x1fe   :  { %10449 = vst [vmem:[#allocation378_spill] sm:$0xff] %v9034_v8  ;;  %v1597_v18 = vadd.f32 %v8998_v24, %v1596_v7  ;;  %v5503_v5 = vpop.f32.mrb[37].mxu0 }
 0x1ff   :  { %v1599_v11 = vpop.f32.mrb[38].mxu0 }
 0x200   :  { %v1600_v15 = vadd.f32 %v8998_v24, %v1599_v11  ;;  %v5504_v19 = vpop.f32.mrb[39].mxu0  ;;  %v1740_v10 = vmax.f32 %v1597_v18, 0.0 }
 0x202   :  { %v1741_v16 = vmax.f32 %v1600_v15, 0.0 }
 0x204   :  { %v9038_v14 = vpack.c.bf16 %v1741_v16, %v1740_v10 }
 0x205   :  { %v1604_v6 = vpop.f32.mrb[40].mxu0 }
 0x206   :  { %10450 = vst [vmem:[#allocation379_spill] sm:$0xff] %v9038_v14  ;;  %v1605_v17 = vadd.f32 %v8998_v24, %v1604_v6  ;;  %v5507_v4 = vpop.f32.mrb[41].mxu0 }
 0x207   :  { %v1607_v21 = vpop.f32.mrb[42].mxu0 }
 0x208   :  { %v1608_v9 = vadd.f32 %v8998_v24, %v1607_v21  ;;  %v5508_v12 = vpop.f32.mrb[43].mxu0  ;;  %v1742_v22 = vmax.f32 %v1605_v17, 0.0 }
 0x20a   :  { %v1743_v8 = vmax.f32 %v1608_v9, 0.0 }
 0x20c   :  { %v9042_v7 = vpack.c.bf16 %v1743_v8, %v1742_v22 }
 0x20d   :  { %v1612_v5 = vpop.f32.mrb[44].mxu0 }
 0x20e   :  { %10451 = vst [vmem:[#allocation380_spill] sm:$0xff] %v9042_v7  ;;  %v1613_v11 = vadd.f32 %v8998_v24, %v1612_v5  ;;  %v5511_v19 = vpop.f32.mrb[45].mxu0 }
 0x20f   :  { %v1615_v18 = vpop.f32.mrb[46].mxu0 }
 0x210   :  { %v1616_v16 = vadd.f32 %v8998_v24, %v1615_v18  ;;  %v5512_v15 = vpop.f32.mrb[47].mxu0  ;;  %v1744_v10 = vmax.f32 %v1613_v11, 0.0 }
 0x212   :  { %v1745_v14 = vmax.f32 %v1616_v16, 0.0 }
 0x214   :  { %v9046_v6 = vpack.c.bf16 %v1745_v14, %v1744_v10 }
 0x215   :  { %v1620_v4 = vpop.f32.mrb[48].mxu0 }
 0x216   :  { %10452 = vst [vmem:[#allocation381_spill] sm:$0xff] %v9046_v6  ;;  %v1621_v21 = vadd.f32 %v8998_v24, %v1620_v4  ;;  %v5515_v12 = vpop.f32.mrb[49].mxu0 }
 0x217   :  { %v1623_v17 = vpop.f32.mrb[50].mxu0 }
 0x218   :  { %v1624_v8 = vadd.f32 %v8998_v24, %v1623_v17  ;;  %v5516_v9 = vpop.f32.mrb[51].mxu0  ;;  %v1746_v22 = vmax.f32 %v1621_v21, 0.0 }
 0x21a   :  { %v1747_v7 = vmax.f32 %v1624_v8, 0.0 }
 0x21c   :  { %v9050_v5 = vpack.c.bf16 %v1747_v7, %v1746_v22 }
 0x21d   :  { %v1628_v19 = vpop.f32.mrb[52].mxu0 }
 0x21e   :  { %10453 = vst [vmem:[#allocation382_spill] sm:$0xff] %v9050_v5  ;;  %v1629_v18 = vadd.f32 %v8998_v24, %v1628_v19  ;;  %v5519_v15 = vpop.f32.mrb[53].mxu0 }
 0x21f   :  { %v1631_v11 = vpop.f32.mrb[54].mxu0 }
 0x220   :  { %v1632_v14 = vadd.f32 %v8998_v24, %v1631_v11  ;;  %v5520_v16 = vpop.f32.mrb[55].mxu0  ;;  %v1748_v10 = vmax.f32 %v1629_v18, 0.0 }
 0x222   :  { %v1749_v6 = vmax.f32 %v1632_v14, 0.0 }
 0x224   :  { %v9054_v4 = vpack.c.bf16 %v1749_v6, %v1748_v10 }
 0x225   :  { %v1636_v12 = vpop.f32.mrb[56].mxu0 }
 0x226   :  { %10454 = vst [vmem:[#allocation383_spill] sm:$0xff] %v9054_v4  ;;  %v1637_v17 = vadd.f32 %v8998_v24, %v1636_v12  ;;  %v5523_v9 = vpop.f32.mrb[57].mxu0 }
 0x227   :  { %v1639_v21 = vpop.f32.mrb[58].mxu0 }
 0x228   :  { %v1640_v7 = vadd.f32 %v8998_v24, %v1639_v21  ;;  %v5524_v8 = vpop.f32.mrb[59].mxu0  ;;  %v1750_v22 = vmax.f32 %v1637_v17, 0.0 }
 0x22a   :  { %v1751_v5 = vmax.f32 %v1640_v7, 0.0 }
 0x22c   :  { %v9058_v19 = vpack.c.bf16 %v1751_v5, %v1750_v22 }
 0x22d   :  { %v1644_v15 = vpop.f32.mrb[60].mxu0 }
 0x22e   :  { %10455 = vst [vmem:[#allocation384_spill] sm:$0xff] %v9058_v19  ;;  %v1645_v11 = vadd.f32 %v8998_v24, %v1644_v15  ;;  %v5527_v16 = vpop.f32.mrb[61].mxu0 }
 0x22f   :  { %v1647_v18 = vpop.f32.mrb[62].mxu0 }
 0x230   :  { %v1648_v6 = vadd.f32 %v8998_v24, %v1647_v18  ;;  %v5528_v14 = vpop.f32.mrb[63].mxu0  ;;  %v1752_v10 = vmax.f32 %v1645_v11, 0.0 }
 0x232   :  { %v1753_v4 = vmax.f32 %v1648_v6, 0.0 }
 0x234   :  { %v9062_v12 = vpack.c.bf16 %v1753_v4, %v1752_v10 }
 0x235   :  { %v1652_v9 = vpop.f32.mrb[64].mxu0 }
 0x236   :  { %10456 = vst [vmem:[#allocation385_spill] sm:$0xff] %v9062_v12  ;;  %v1653_v21 = vadd.f32 %v8998_v24, %v1652_v9  ;;  %v5531_v8 = vpop.f32.mrb[65].mxu0 }
 0x237   :  { %v1655_v17 = vpop.f32.mrb[66].mxu0 }
 0x238   :  { %v1656_v5 = vadd.f32 %v8998_v24, %v1655_v17  ;;  %v5532_v7 = vpop.f32.mrb[67].mxu0  ;;  %v1754_v22 = vmax.f32 %v1653_v21, 0.0 }
 0x23a   :  { %v1755_v19 = vmax.f32 %v1656_v5, 0.0 }
 0x23c   :  { %v9066_v15 = vpack.c.bf16 %v1755_v19, %v1754_v22 }
 0x23d   :  { %v1660_v16 = vpop.f32.mrb[68].mxu0 }
 0x23e   :  { %10457 = vst [vmem:[#allocation386_spill] sm:$0xff] %v9066_v15  ;;  %v1661_v18 = vadd.f32 %v8998_v24, %v1660_v16  ;;  %v5535_v14 = vpop.f32.mrb[69].mxu0 }
 0x23f   :  { %v1663_v11 = vpop.f32.mrb[70].mxu0 }
 0x240   :  { %v1664_v4 = vadd.f32 %v8998_v24, %v1663_v11  ;;  %v5536_v6 = vpop.f32.mrb[71].mxu0  ;;  %v1756_v10 = vmax.f32 %v1661_v18, 0.0 }
 0x242   :  { %v1757_v12 = vmax.f32 %v1664_v4, 0.0 }
 0x244   :  { %v9070_v9 = vpack.c.bf16 %v1757_v12, %v1756_v10 }
 0x245   :  { %v1668_v8 = vpop.f32.mrb[72].mxu0 }
 0x246   :  { %10458 = vst [vmem:[#allocation387_spill] sm:$0xff] %v9070_v9  ;;  %v1669_v17 = vadd.f32 %v8998_v24, %v1668_v8  ;;  %v5539_v7 = vpop.f32.mrb[73].mxu0 }
 0x247   :  { %v1671_v21 = vpop.f32.mrb[74].mxu0 }
 0x248   :  { %v1672_v19 = vadd.f32 %v8998_v24, %v1671_v21  ;;  %v5540_v5 = vpop.f32.mrb[75].mxu0  ;;  %v1758_v22 = vmax.f32 %v1669_v17, 0.0 }
 0x24a   :  { %v1759_v15 = vmax.f32 %v1672_v19, 0.0 }
 0x24c   :  { %v9074_v16 = vpack.c.bf16 %v1759_v15, %v1758_v22 }
 0x24d   :  { %v1676_v14 = vpop.f32.mrb[76].mxu0 }
 0x24e   :  { %10459 = vst [vmem:[#allocation388_spill] sm:$0xff] %v9074_v16  ;;  %v1677_v11 = vadd.f32 %v8998_v24, %v1676_v14  ;;  %v5543_v6 = vpop.f32.mrb[77].mxu0 }
 0x24f   :  { %v1679_v18 = vpop.f32.mrb[78].mxu0 }
 0x250   :  { %v1680_v12 = vadd.f32 %v8998_v24, %v1679_v18  ;;  %v5544_v4 = vpop.f32.mrb[79].mxu0  ;;  %v1760_v10 = vmax.f32 %v1677_v11, 0.0 }
 0x252   :  { %v1761_v9 = vmax.f32 %v1680_v12, 0.0 }
 0x254   :  { %v9078_v8 = vpack.c.bf16 %v1761_v9, %v1760_v10 }
 0x255   :  { %v1684_v7 = vpop.f32.mrb[80].mxu0 }
 0x256   :  { %10460 = vst [vmem:[#allocation389_spill] sm:$0xff] %v9078_v8  ;;  %v1685_v21 = vadd.f32 %v8998_v24, %v1684_v7  ;;  %v5547_v5 = vpop.f32.mrb[81].mxu0 }
 0x257   :  { %v1687_v17 = vpop.f32.mrb[82].mxu0 }
 0x258   :  { %v1688_v15 = vadd.f32 %v8998_v24, %v1687_v17  ;;  %v5548_v19 = vpop.f32.mrb[83].mxu0  ;;  %v1762_v22 = vmax.f32 %v1685_v21, 0.0 }
 0x25a   :  { %v1763_v16 = vmax.f32 %v1688_v15, 0.0 }
 0x25c   :  { %v9082_v14 = vpack.c.bf16 %v1763_v16, %v1762_v22 }
 0x25d   :  { %v1692_v6 = vpop.f32.mrb[84].mxu0 }
 0x25e   :  { %10461 = vst [vmem:[#allocation390_spill] sm:$0xff] %v9082_v14  ;;  %v1693_v18 = vadd.f32 %v8998_v24, %v1692_v6  ;;  %v5551_v4 = vpop.f32.mrb[85].mxu0 }
 0x25f   :  { %v1695_v11 = vpop.f32.mrb[86].mxu0 }
 0x260   :  { %v1696_v9 = vadd.f32 %v8998_v24, %v1695_v11  ;;  %v5552_v12 = vpop.f32.mrb[87].mxu0  ;;  %v1764_v10 = vmax.f32 %v1693_v18, 0.0 }
 0x262   :  { %v1765_v8 = vmax.f32 %v1696_v9, 0.0 }
 0x264   :  { %v9086_v7 = vpack.c.bf16 %v1765_v8, %v1764_v10 }
 0x265   :  { %v1700_v5 = vpop.f32.mrb[88].mxu0 }
 0x266   :  { %10462 = vst [vmem:[#allocation391_spill] sm:$0xff] %v9086_v7  ;;  %v1701_v17 = vadd.f32 %v8998_v24, %v1700_v5  ;;  %v5555_v19 = vpop.f32.mrb[89].mxu0 }
 0x267   :  { %v1703_v21 = vpop.f32.mrb[90].mxu0 }
 0x268   :  { %v1704_v16 = vadd.f32 %v8998_v24, %v1703_v21  ;;  %v5556_v15 = vpop.f32.mrb[91].mxu0  ;;  %v1766_v22 = vmax.f32 %v1701_v17, 0.0 }
 0x26a   :  { %v1767_v14 = vmax.f32 %v1704_v16, 0.0 }
 0x26c   :  { %v9090_v6 = vpack.c.bf16 %v1767_v14, %v1766_v22 }
 0x26d   :  { %v1708_v4 = vpop.f32.mrb[92].mxu0 }
 0x26e   :  { %10463 = vst [vmem:[#allocation392_spill] sm:$0xff] %v9090_v6  ;;  %v1709_v11 = vadd.f32 %v8998_v24, %v1708_v4  ;;  %v5559_v12 = vpop.f32.mrb[93].mxu0  ;;  %v10464_v6 = vmov 0.0  }
 0x26f   :  { %v1711_v18 = vpop.f32.mrb[94].mxu0  ;;  %5565 = vmatprep.subr.bf16.mxu0 %v10464_v6  ;;  %5581 = vmatprep.mubr.msk.bf16.mxu0 %vm6827_vm0, %v10464_v6 }
 0x270   :  { %v1712_v8 = vadd.f32 %v8998_v24, %v1711_v18  ;;  %v5560_v9 = vpop.f32.mrb[95].mxu0  ;;  %v1768_v10 = vmax.f32 %v1709_v11, 0.0 }
 0x272   :  { %v1769_v7 = vmax.f32 %v1712_v8, 0.0 }
 0x274   :  { %v9094_v5 = vpack.c.bf16 %v1769_v7, %v1768_v10 }
 0x275   :  { %v1716_v19 = vpop.f32.mrb[96].mxu0 }
 0x276   :  { %v1717_v21 = vadd.f32 %v8998_v24, %v1716_v19  ;;  %v5563_v15 = vpop.f32.mrb[97].mxu0 }
 0x277   :  { %v1719_v17 = vpop.f32.mrb[98].mxu0 }
 0x278   :  { %v1770_v16 = vmax.f32 %v1717_v21, 0.0  ;;  %v5564_v14 = vpop.f32.mrb[99].mxu0 }
 0x27a   :  { %v9097_v22 = vpack.c.bf16 %v1770_v16, %v1770_v16 }
 0x27b   :  { %6810 = dma.done.wait [#allocation4], 7168 }
 0x27c   :  { %6811 = vsyncadd [#allocation4], 4294960128  ;;  %5566 = vmatpush3.bf16.msra.mxu0 %v6991_v33  ;;  %v1819_v33 = vrot.slane %v9002_v13, 4 }
 0x27d   :  { %5567 = vmatprep.subr.bf16.mxu0 %v10464_v6 }
 0x280   :  { %5568 = vmatpush3.bf16.msra.mxu0 %v6996_v34  ;;  %v10471_v34 = vld [vmem:[#allocation30_spill] sm:$0xff] }
 0x281   :  { %5569 = vmatprep.subr.bf16.mxu0 %v10464_v6 }
 0x284   :  { %5570 = vmatpush3.bf16.msra.mxu0 %v7001_v35  ;;  %v10472_v35 = vld [vmem:[#allocation31_spill] sm:$0xff] }
 0x285   :  { %5571 = vmatprep.subr.bf16.mxu0 %v10464_v6 }
 0x288   :  { %5572 = vmatpush3.bf16.msra.mxu0 %v7006_v36  ;;  %v10473_v36 = vld [vmem:[#allocation32_spill] sm:$0xff] }
 0x289   :  { %5573 = vmatprep.subr.bf16.mxu0 %v10464_v6 }
 0x28c   :  { %5574 = vmatpush3.bf16.msra.mxu0 %v7011_v37  ;;  %v10474_v37 = vld [vmem:[#allocation33_spill] sm:$0xff] }
 0x28d   :  { %5575 = vmatprep.subr.bf16.mxu0 %v10464_v6 }
 0x290   :  { %5576 = vmatpush3.bf16.msra.mxu0 %v7016_v38  ;;  %v10475_v38 = vld [vmem:[#allocation34_spill] sm:$0xff] }
 0x291   :  { %5577 = vmatprep.subr.bf16.mxu0 %v10464_v6 }
 0x294   :  { %5578 = vmatpush3.bf16.msra.mxu0 %v7021_v39  ;;  %v10476_v39 = vld [vmem:[#allocation35_spill] sm:$0xff] }
 0x295   :  { %5579 = vmatprep.subr.bf16.mxu0 %v10464_v6 }
 0x298   :  { %5580 = vmatpush3.bf16.msra.mxu0 %v7026_v40  ;;  %v10477_v40 = vld [vmem:[#allocation36_spill] sm:$0xff] }
 0x299   :  { %5585 = vmatprep.subr.bf16.mxu0 %v10464_v6 }
 0x29b   :  { %5582 = vmatmul.mubr.bf16.vlgmr.msra.gmra.mrb[100].mxu0 %v1819_v33 }
 0x29c   :  { %5586 = vmatpush3.bf16.msra.mxu0 %v6951_v25  ;;  %5601 = vmatprep.mubr.msk.bf16.mxu0 %vm6827_vm0, %v10464_v6  ;;  %v1961_v25 = vrot.slane %v9006_v20, 4 }
 0x29d   :  { %5587 = vmatprep.subr.bf16.mxu0 %v10464_v6 }
 0x2a0   :  { %5588 = vmatpush3.bf16.msra.mxu0 %v6956_v26  ;;  %v10465_v26 = vld [vmem:[#allocation24_spill] sm:$0xff] }
 0x2a1   :  { %5589 = vmatprep.subr.bf16.mxu0 %v10464_v6 }
 0x2a4   :  { %5590 = vmatpush3.bf16.msra.mxu0 %v6961_v27  ;;  %v10466_v27 = vld [vmem:[#allocation25_spill] sm:$0xff] }
 0x2a5   :  { %5591 = vmatprep.subr.bf16.mxu0 %v10464_v6 }
 0x2a8   :  { %5592 = vmatpush3.bf16.msra.mxu0 %v6966_v28  ;;  %v10467_v28 = vld [vmem:[#allocation26_spill] sm:$0xff] }
 0x2a9   :  { %5593 = vmatprep.subr.bf16.mxu0 %v10464_v6 }
 0x2ac   :  { %5594 = vmatpush3.bf16.msra.mxu0 %v6971_v29  ;;  %v10468_v29 = vld [vmem:[#allocation27_spill] sm:$0xff] }
 0x2ad   :  { %5595 = vmatprep.subr.bf16.mxu0 %v10464_v6 }
 0x2b0   :  { %5596 = vmatpush3.bf16.msra.mxu0 %v6976_v30  ;;  %v2064_v30 = vrot.slane %v9010_v23, 4 }
 0x2b1   :  { %5597 = vmatprep.subr.bf16.mxu0 %v10464_v6 }
 0x2b4   :  { %5598 = vmatpush3.bf16.msra.mxu0 %v6981_v31  ;;  %v10469_v31 = vld [vmem:[#allocation28_spill] sm:$0xff] }
 0x2b5   :  { %5599 = vmatprep.subr.bf16.mxu0 %v10464_v6 }
 0x2b8   :  { %5600 = vmatpush3.bf16.msra.mxu0 %v6986_v32  ;;  %v10470_v32 = vld [vmem:[#allocation29_spill] sm:$0xff] }
 0x2b9   :  { %5605 = vmatprep.subr.bf16.mxu0 %v10464_v6 }
 0x2bb   :  { %5602 = vmatmul.mubr.bf16.vlgmr.msra.gmra.mrb[100].mxu0 %v9002_v13 }
 0x2bc   :  { %5606 = vmatpush3.bf16.msra.mxu0 %v7031_v41  ;;  %5621 = vmatprep.mubr.msk.bf16.mxu0 %vm6827_vm0, %v10464_v6  ;;  %v10478_v41 = vld [vmem:[#allocation373_spill] sm:$0xff] }
 0x2bd   :  { %5607 = vmatprep.subr.bf16.mxu0 %v10464_v6 }
 0x2c0   :  { %5608 = vmatpush3.bf16.msra.mxu0 %v7036_v42 }
 0x2c1   :  { %5609 = vmatprep.subr.bf16.mxu0 %v10464_v6 }
 0x2c4   :  { %5610 = vmatpush3.bf16.msra.mxu0 %v7041_v43 }
 0x2c5   :  { %5611 = vmatprep.subr.bf16.mxu0 %v10464_v6 }
 0x2c8   :  { %5612 = vmatpush3.bf16.msra.mxu0 %v7046_v44 }
 0x2c9   :  { %5613 = vmatprep.subr.bf16.mxu0 %v10464_v6 }
 0x2cc   :  { %5614 = vmatpush3.bf16.msra.mxu0 %v7051_v45 }
 0x2cd   :  { %5615 = vmatprep.subr.bf16.mxu0 %v10464_v6 }
 0x2d0   :  { %5616 = vmatpush3.bf16.msra.mxu0 %v7056_v46 }
 0x2d1   :  { %5617 = vmatprep.subr.bf16.mxu0 %v10464_v6 }
 0x2d4   :  { %5618 = vmatpush3.bf16.msra.mxu0 %v7061_v47 }
 0x2d5   :  { %5619 = vmatprep.subr.bf16.mxu0 %v10464_v6 }
 0x2d8   :  { %5620 = vmatpush3.bf16.msra.mxu0 %v7066_v48 }
 0x2d9   :  { %5625 = vmatprep.subr.bf16.mxu0 %v10464_v6 }
 0x2db   :  { %5622 = vmatmul.mubr.bf16.vlgmr.msra.gmra.mrb[100].mxu0 %v9006_v20 }
 0x2dc   :  { %5626 = vmatpush3.bf16.msra.mxu0 %v7071_v49  ;;  %5641 = vmatprep.mubr.msk.bf16.mxu0 %vm6827_vm0, %v10464_v6 }
 0x2dd   :  { %5627 = vmatprep.subr.bf16.mxu0 %v10464_v6 }
 0x2e0   :  { %5628 = vmatpush3.bf16.msra.mxu0 %v7076_v50 }
 0x2e1   :  { %5629 = vmatprep.subr.bf16.mxu0 %v10464_v6 }
 0x2e4   :  { %5630 = vmatpush3.bf16.msra.mxu0 %v7081_v51 }
 0x2e5   :  { %5631 = vmatprep.subr.bf16.mxu0 %v10464_v6 }
 0x2e8   :  { %5632 = vmatpush3.bf16.msra.mxu0 %v7086_v52 }
 0x2e9   :  { %5633 = vmatprep.subr.bf16.mxu0 %v10464_v6 }
 0x2ec   :  { %5634 = vmatpush3.bf16.msra.mxu0 %v7091_v53 }
 0x2ed   :  { %5635 = vmatprep.subr.bf16.mxu0 %v10464_v6 }
 0x2f0   :  { %5636 = vmatpush3.bf16.msra.mxu0 %v7096_v54 }
 0x2f1   :  { %5637 = vmatprep.subr.bf16.mxu0 %v10464_v6 }
 0x2f4   :  { %5638 = vmatpush3.bf16.msra.mxu0 %v7101_v55 }
 0x2f5   :  { %5639 = vmatprep.subr.bf16.mxu0 %v10464_v6 }
 0x2f8   :  { %5640 = vmatpush3.bf16.msra.mxu0 %v7106_v56 }
 0x2f9   :  { %5645 = vmatprep.subr.bf16.mxu0 %v10464_v6 }
 0x2fb   :  { %5642 = vmatmul.mubr.bf16.vlgmr.msra.gmra.mrb[100].mxu0 %v1961_v25 }
 0x2fc   :  { %5646 = vmatpush3.bf16.msra.mxu0 %v7111_v57  ;;  %5661 = vmatprep.mubr.msk.bf16.mxu0 %vm6827_vm0, %v10464_v6 }
 0x2fd   :  { %5647 = vmatprep.subr.bf16.mxu0 %v10464_v6 }
 0x300   :  { %5648 = vmatpush3.bf16.msra.mxu0 %v7116_v58 }
 0x301   :  { %5649 = vmatprep.subr.bf16.mxu0 %v10464_v6 }
 0x304   :  { %5650 = vmatpush3.bf16.msra.mxu0 %v7121_v59 }
 0x305   :  { %5651 = vmatprep.subr.bf16.mxu0 %v10464_v6 }
 0x308   :  { %5652 = vmatpush3.bf16.msra.mxu0 %v7126_v60 }
 0x309   :  { %5653 = vmatprep.subr.bf16.mxu0 %v10464_v6 }
 0x30c   :  { %5654 = vmatpush3.bf16.msra.mxu0 %v7131_v61 }
 0x30d   :  { %5655 = vmatprep.subr.bf16.mxu0 %v10464_v6 }
 0x310   :  { %5656 = vmatpush3.bf16.msra.mxu0 %v7136_v62 }
 0x311   :  { %5657 = vmatprep.subr.bf16.mxu0 %v10464_v6 }
 0x314   :  { %5658 = vmatpush3.bf16.msra.mxu0 %v7141_v63 }
 0x315   :  { %5659 = vmatprep.subr.bf16.mxu0 %v10464_v6 }
 0x318   :  { %5660 = vmatpush3.bf16.msra.mxu0 %v7146_v0 }
 0x319   :  { %5665 = vmatprep.subr.bf16.mxu0 %v10464_v6 }
 0x31b   :  { %5662 = vmatmul.mubr.bf16.vlgmr.msra.gmra.mrb[100].mxu0 %v9010_v23 }
 0x31c   :  { %5666 = vmatpush3.bf16.msra.mxu0 %v7151_v1  ;;  %5681 = vmatprep.mubr.msk.bf16.mxu0 %vm6827_vm0, %v10464_v6 }
 0x31d   :  { %5667 = vmatprep.subr.bf16.mxu0 %v10464_v6 }
 0x320   :  { %5668 = vmatpush3.bf16.msra.mxu0 %v7156_v2 }
 0x321   :  { %5669 = vmatprep.subr.bf16.mxu0 %v10464_v6 }
 0x324   :  { %5670 = vmatpush3.bf16.msra.mxu0 %v7161_v3 }
 0x325   :  { %5671 = vmatprep.subr.bf16.mxu0 %v10464_v6 }
 0x328   :  { %5672 = vmatpush3.bf16.msra.mxu0 %v10465_v26 }
 0x329   :  { %5673 = vmatprep.subr.bf16.mxu0 %v10464_v6 }
 0x32c   :  { %5674 = vmatpush3.bf16.msra.mxu0 %v10466_v27 }
 0x32d   :  { %5675 = vmatprep.subr.bf16.mxu0 %v10464_v6 }
 0x330   :  { %5676 = vmatpush3.bf16.msra.mxu0 %v10467_v28 }
 0x331   :  { %5677 = vmatprep.subr.bf16.mxu0 %v10464_v6 }
 0x334   :  { %5678 = vmatpush3.bf16.msra.mxu0 %v10468_v29 }
 0x335   :  { %5679 = vmatprep.subr.bf16.mxu0 %v10464_v6 }
 0x338   :  { %5680 = vmatpush3.bf16.msra.mxu0 %v10469_v31 }
 0x339   :  { %5685 = vmatprep.subr.bf16.mxu0 %v10464_v6 }
 0x33b   :  { %5682 = vmatmul.mubr.bf16.vlgmr.msra.gmra.mrb[100].mxu0 %v2064_v30 }
 0x33c   :  { %5686 = vmatpush3.bf16.msra.mxu0 %v10470_v32  ;;  %5701 = vmatprep.mubr.msk.bf16.mxu0 %vm6827_vm0, %v10464_v6 }
 0x33d   :  { %5687 = vmatprep.subr.bf16.mxu0 %v10464_v6 }
 0x340   :  { %5688 = vmatpush3.bf16.msra.mxu0 %v10471_v34 }
 0x341   :  { %5689 = vmatprep.subr.bf16.mxu0 %v10464_v6 }
 0x344   :  { %5690 = vmatpush3.bf16.msra.mxu0 %v10472_v35 }
 0x345   :  { %5691 = vmatprep.subr.bf16.mxu0 %v10464_v6 }
 0x348   :  { %5692 = vmatpush3.bf16.msra.mxu0 %v10473_v36 }
 0x349   :  { %5693 = vmatprep.subr.bf16.mxu0 %v10464_v6 }
 0x34c   :  { %5694 = vmatpush3.bf16.msra.mxu0 %v10474_v37 }
 0x34d   :  { %5695 = vmatprep.subr.bf16.mxu0 %v10464_v6 }
 0x350   :  { %5696 = vmatpush3.bf16.msra.mxu0 %v10475_v38 }
 0x351   :  { %5697 = vmatprep.subr.bf16.mxu0 %v10464_v6 }
 0x354   :  { %5698 = vmatpush3.bf16.msra.mxu0 %v10476_v39 }
 0x355   :  { %5699 = vmatprep.subr.bf16.mxu0 %v10464_v6 }
 0x358   :  { %5700 = vmatpush3.bf16.msra.mxu0 %v10477_v40 }
 0x359   :  { %5705 = vmatprep.subr.bf16.mxu0 %v10464_v6 }
 0x35b   :  { %5702 = vmatmul.mubr.bf16.vlgmr.msra.gmra.mrb[100].mxu0 %v10478_v41 }
 0x35c   :  { %5721 = vmatprep.mubr.msk.bf16.mxu0 %vm6827_vm0, %v10464_v6 }
 0x35d   :  { %6812 = dma.done.wait [#allocation4 + $0x1], 7168 }
 0x35e   :  { %6813 = vsyncadd [#allocation4 + $0x1], 4294960128  ;;  %v10479_v42 = vld [vmem:[#allocation37_spill] sm:$0xff]  ;;  %v10480_v43 = vld [vmem:[#allocation38_spill] sm:$0xff]  ;;  %v2168_v49 = vrot.slane %v10478_v41, 4 }
 0x35f   :  { %5706 = vmatpush3.bf16.msra.mxu0 %v10479_v42  ;;  %v10481_v44 = vld [vmem:[#allocation39_spill] sm:$0xff]  ;;  %v10482_v45 = vld [vmem:[#allocation40_spill] sm:$0xff]  ;;  %v10483_v46 = vld [vmem:[#allocation41_spill] sm:$0xff] }
 0x360   :  { %5707 = vmatprep.subr.bf16.mxu0 %v10464_v6  ;;  %v10484_v47 = vld [vmem:[#allocation42_spill] sm:$0xff]  ;;  %v10485_v48 = vld [vmem:[#allocation43_spill] sm:$0xff]  ;;  %v10486_v50 = vld [vmem:[#allocation44_spill] sm:$0xff] }
 0x361   :  { %v10487_v51 = vld [vmem:[#allocation45_spill] sm:$0xff]  ;;  %v10488_v52 = vld [vmem:[#allocation46_spill] sm:$0xff]  ;;  %v10489_v53 = vld [vmem:[#allocation47_spill] sm:$0xff] }
 0x362   :  { %v10490_v54 = vld [vmem:[#allocation48_spill] sm:$0xff]  ;;  %v10491_v55 = vld [vmem:[#allocation49_spill] sm:$0xff]  ;;  %v10492_v56 = vld [vmem:[#allocation50_spill] sm:$0xff] }
 0x363   :  { %5708 = vmatpush3.bf16.msra.mxu0 %v10480_v43  ;;  %v10493_v57 = vld [vmem:[#allocation51_spill] sm:$0xff]  ;;  %v10494_v58 = vld [vmem:[#allocation52_spill] sm:$0xff]  ;;  %v10495_v59 = vld [vmem:[#allocation374_spill] sm:$0xff] }
 0x364   :  { %5709 = vmatprep.subr.bf16.mxu0 %v10464_v6  ;;  %v10496_v60 = vld [vmem:[#allocation53_spill] sm:$0xff]  ;;  %v10497_v61 = vld [vmem:[#allocation54_spill] sm:$0xff]  ;;  %v10498_v62 = vld [vmem:[#allocation55_spill] sm:$0xff]  ;;  %v2271_v3 = vrot.slane %v10495_v59, 4 }
 0x365   :  { %v10499_v63 = vld [vmem:[#allocation56_spill] sm:$0xff]  ;;  %v10500_v0 = vld [vmem:[#allocation57_spill] sm:$0xff]  ;;  %v10501_v1 = vld [vmem:[#allocation58_spill] sm:$0xff] }
 0x366   :  { %v10502_v2 = vld [vmem:[#allocation59_spill] sm:$0xff]  ;;  %v10503_v13 = vld [vmem:[#allocation60_spill] sm:$0xff]  ;;  %v10504_v24 = vld [vmem:[#allocation61_spill] sm:$0xff] }
 0x367   :  { %5710 = vmatpush3.bf16.msra.mxu0 %v10481_v44  ;;  %v10505_v20 = vld [vmem:[#allocation62_spill] sm:$0xff]  ;;  %v10506_v23 = vld [vmem:[#allocation63_spill] sm:$0xff]  ;;  %v10507_v7 = vld [vmem:[#allocation64_spill] sm:$0xff] }
 0x368   :  { %5711 = vmatprep.subr.bf16.mxu0 %v10464_v6  ;;  %v10508_v4 = vld [vmem:[#allocation65_spill] sm:$0xff]  ;;  %v10509_v11 = vld [vmem:[#allocation66_spill] sm:$0xff]  ;;  %v10510_v12 = vld [vmem:[#allocation67_spill] sm:$0xff] }
 0x369   :  { %v10511_v18 = vld [vmem:[#allocation68_spill] sm:$0xff]  ;;  %v10512_v8 = vld [vmem:[#allocation375_spill] sm:$0xff]  ;;  %v10513_v9 = vld [vmem:[#allocation69_spill] sm:$0xff] }
 0x36a   :  { %v10514_v10 = vld [vmem:[#allocation70_spill] sm:$0xff]  ;;  %v10515_v19 = vld [vmem:[#allocation71_spill] sm:$0xff]  ;;  %v10516_v21 = vld [vmem:[#allocation72_spill] sm:$0xff]  ;;  %v2374_v14 = vrot.slane %v10512_v8, 4 }
 0x36b   :  { %5712 = vmatpush3.bf16.msra.mxu0 %v10482_v45  ;;  %v10517_v15 = vld [vmem:[#allocation73_spill] sm:$0xff]  ;;  %v10518_v17 = vld [vmem:[#allocation74_spill] sm:$0xff]  ;;  %v10519_v16 = vld [vmem:[#allocation75_spill] sm:$0xff] }
 0x36c   :  { %5713 = vmatprep.subr.bf16.mxu0 %v10464_v6  ;;  %v10520_v33 = vld [vmem:[#allocation76_spill] sm:$0xff]  ;;  %v10521_v25 = vld [vmem:[#allocation77_spill] sm:$0xff]  ;;  %v10522_v26 = vld [vmem:[#allocation78_spill] sm:$0xff] }
 0x36d   :  { %v10523_v27 = vld [vmem:[#allocation79_spill] sm:$0xff]  ;;  %v10524_v28 = vld [vmem:[#allocation80_spill] sm:$0xff]  ;;  %v10525_v29 = vld [vmem:[#allocation81_spill] sm:$0xff] }
 0x36e   :  { %v10526_v30 = vld [vmem:[#allocation82_spill] sm:$0xff]  ;;  %v10527_v31 = vld [vmem:[#allocation83_spill] sm:$0xff]  ;;  %v10528_v32 = vld [vmem:[#allocation84_spill] sm:$0xff] }
 0x36f   :  { %5714 = vmatpush3.bf16.msra.mxu0 %v10483_v46  ;;  %v10529_v34 = vld [vmem:[#allocation376_spill] sm:$0xff]  ;;  %v10530_v35 = vld [vmem:[#allocation85_spill] sm:$0xff]  ;;  %v10531_v36 = vld [vmem:[#allocation86_spill] sm:$0xff] }
 0x370   :  { %5715 = vmatprep.subr.bf16.mxu0 %v10464_v6  ;;  %v10532_v37 = vld [vmem:[#allocation87_spill] sm:$0xff]  ;;  %v10533_v38 = vld [vmem:[#allocation88_spill] sm:$0xff]  ;;  %v10534_v39 = vld [vmem:[#allocation89_spill] sm:$0xff]  ;;  %v2477_v42 = vrot.slane %v10529_v34, 4 }
 0x371   :  { %v10535_v40 = vld [vmem:[#allocation90_spill] sm:$0xff]  ;;  %v10536_v41 = vld [vmem:[#allocation91_spill] sm:$0xff]  ;;  %v10537_v43 = vld [vmem:[#allocation92_spill] sm:$0xff] }
 0x373   :  { %5716 = vmatpush3.bf16.msra.mxu0 %v10484_v47 }
 0x374   :  { %5717 = vmatprep.subr.bf16.mxu0 %v10464_v6 }
 0x377   :  { %5718 = vmatpush3.bf16.msra.mxu0 %v10485_v48 }
 0x378   :  { %5719 = vmatprep.subr.bf16.mxu0 %v10464_v6 }
 0x37b   :  { %5720 = vmatpush3.bf16.msra.mxu0 %v10486_v50 }
 0x37c   :  { %5725 = vmatprep.subr.bf16.mxu0 %v10464_v6 }
 0x37e   :  { %5722 = vmatmul.mubr.bf16.vlgmr.msra.gmra.mrb[100].mxu0 %v2168_v49 }
 0x37f   :  { %5726 = vmatpush3.bf16.msra.mxu0 %v10487_v51  ;;  %5741 = vmatprep.mubr.msk.bf16.mxu0 %vm6827_vm0, %v10464_v6 }
 0x380   :  { %5727 = vmatprep.subr.bf16.mxu0 %v10464_v6 }
 0x383   :  { %5728 = vmatpush3.bf16.msra.mxu0 %v10488_v52 }
 0x384   :  { %5729 = vmatprep.subr.bf16.mxu0 %v10464_v6 }
 0x387   :  { %5730 = vmatpush3.bf16.msra.mxu0 %v10489_v53 }
 0x388   :  { %5731 = vmatprep.subr.bf16.mxu0 %v10464_v6 }
 0x38b   :  { %5732 = vmatpush3.bf16.msra.mxu0 %v10490_v54 }
 0x38c   :  { %5733 = vmatprep.subr.bf16.mxu0 %v10464_v6 }
 0x38f   :  { %5734 = vmatpush3.bf16.msra.mxu0 %v10491_v55 }
 0x390   :  { %5735 = vmatprep.subr.bf16.mxu0 %v10464_v6 }
 0x393   :  { %5736 = vmatpush3.bf16.msra.mxu0 %v10492_v56 }
 0x394   :  { %5737 = vmatprep.subr.bf16.mxu0 %v10464_v6 }
 0x397   :  { %5738 = vmatpush3.bf16.msra.mxu0 %v10493_v57 }
 0x398   :  { %5739 = vmatprep.subr.bf16.mxu0 %v10464_v6 }
 0x39b   :  { %5740 = vmatpush3.bf16.msra.mxu0 %v10494_v58 }
 0x39c   :  { %5745 = vmatprep.subr.bf16.mxu0 %v10464_v6 }
 0x39e   :  { %5742 = vmatmul.mubr.bf16.vlgmr.msra.gmra.mrb[100].mxu0 %v10495_v59 }
 0x39f   :  { %5746 = vmatpush3.bf16.msra.mxu0 %v10496_v60  ;;  %5761 = vmatprep.mubr.msk.bf16.mxu0 %vm6827_vm0, %v10464_v6 }
 0x3a0   :  { %5747 = vmatprep.subr.bf16.mxu0 %v10464_v6 }
 0x3a3   :  { %5748 = vmatpush3.bf16.msra.mxu0 %v10497_v61 }
 0x3a4   :  { %5749 = vmatprep.subr.bf16.mxu0 %v10464_v6 }
 0x3a7   :  { %5750 = vmatpush3.bf16.msra.mxu0 %v10498_v62 }
 0x3a8   :  { %5751 = vmatprep.subr.bf16.mxu0 %v10464_v6 }
 0x3ab   :  { %5752 = vmatpush3.bf16.msra.mxu0 %v10499_v63 }
 0x3ac   :  { %5753 = vmatprep.subr.bf16.mxu0 %v10464_v6 }
 0x3af   :  { %5754 = vmatpush3.bf16.msra.mxu0 %v10500_v0 }
 0x3b0   :  { %5755 = vmatprep.subr.bf16.mxu0 %v10464_v6 }
 0x3b3   :  { %5756 = vmatpush3.bf16.msra.mxu0 %v10501_v1 }
 0x3b4   :  { %5757 = vmatprep.subr.bf16.mxu0 %v10464_v6 }
 0x3b7   :  { %5758 = vmatpush3.bf16.msra.mxu0 %v10502_v2 }
 0x3b8   :  { %5759 = vmatprep.subr.bf16.mxu0 %v10464_v6 }
 0x3bb   :  { %5760 = vmatpush3.bf16.msra.mxu0 %v10503_v13 }
 0x3bc   :  { %5765 = vmatprep.subr.bf16.mxu0 %v10464_v6 }
 0x3be   :  { %5762 = vmatmul.mubr.bf16.vlgmr.msra.gmra.mrb[100].mxu0 %v2271_v3 }
 0x3bf   :  { %5766 = vmatpush3.bf16.msra.mxu0 %v10504_v24  ;;  %5781 = vmatprep.mubr.msk.bf16.mxu0 %vm6827_vm0, %v10464_v6 }
 0x3c0   :  { %5767 = vmatprep.subr.bf16.mxu0 %v10464_v6 }
 0x3c3   :  { %5768 = vmatpush3.bf16.msra.mxu0 %v10505_v20 }
 0x3c4   :  { %5769 = vmatprep.subr.bf16.mxu0 %v10464_v6 }
 0x3c7   :  { %5770 = vmatpush3.bf16.msra.mxu0 %v10506_v23 }
 0x3c8   :  { %5771 = vmatprep.subr.bf16.mxu0 %v10464_v6 }
 0x3cb   :  { %5772 = vmatpush3.bf16.msra.mxu0 %v10507_v7 }
 0x3cc   :  { %5773 = vmatprep.subr.bf16.mxu0 %v10464_v6 }
 0x3cf   :  { %5774 = vmatpush3.bf16.msra.mxu0 %v10508_v4 }
 0x3d0   :  { %5775 = vmatprep.subr.bf16.mxu0 %v10464_v6 }
 0x3d3   :  { %5776 = vmatpush3.bf16.msra.mxu0 %v10509_v11 }
 0x3d4   :  { %5777 = vmatprep.subr.bf16.mxu0 %v10464_v6 }
 0x3d7   :  { %5778 = vmatpush3.bf16.msra.mxu0 %v10510_v12 }
 0x3d8   :  { %5779 = vmatprep.subr.bf16.mxu0 %v10464_v6 }
 0x3db   :  { %5780 = vmatpush3.bf16.msra.mxu0 %v10511_v18 }
 0x3dc   :  { %5785 = vmatprep.subr.bf16.mxu0 %v10464_v6 }
 0x3de   :  { %5782 = vmatmul.mubr.bf16.vlgmr.msra.gmra.mrb[100].mxu0 %v10512_v8 }
 0x3df   :  { %5786 = vmatpush3.bf16.msra.mxu0 %v10513_v9  ;;  %5801 = vmatprep.mubr.msk.bf16.mxu0 %vm6827_vm0, %v10464_v6 }
 0x3e0   :  { %5787 = vmatprep.subr.bf16.mxu0 %v10464_v6 }
 0x3e3   :  { %5788 = vmatpush3.bf16.msra.mxu0 %v10514_v10 }
 0x3e4   :  { %5789 = vmatprep.subr.bf16.mxu0 %v10464_v6 }
 0x3e7   :  { %5790 = vmatpush3.bf16.msra.mxu0 %v10515_v19 }
 0x3e8   :  { %5791 = vmatprep.subr.bf16.mxu0 %v10464_v6 }
 0x3eb   :  { %5792 = vmatpush3.bf16.msra.mxu0 %v10516_v21 }
 0x3ec   :  { %5793 = vmatprep.subr.bf16.mxu0 %v10464_v6 }
 0x3ef   :  { %5794 = vmatpush3.bf16.msra.mxu0 %v10517_v15 }
 0x3f0   :  { %5795 = vmatprep.subr.bf16.mxu0 %v10464_v6 }
 0x3f3   :  { %5796 = vmatpush3.bf16.msra.mxu0 %v10518_v17 }
 0x3f4   :  { %5797 = vmatprep.subr.bf16.mxu0 %v10464_v6 }
 0x3f7   :  { %5798 = vmatpush3.bf16.msra.mxu0 %v10519_v16 }
 0x3f8   :  { %5799 = vmatprep.subr.bf16.mxu0 %v10464_v6 }
 0x3fb   :  { %5800 = vmatpush3.bf16.msra.mxu0 %v10520_v33 }
 0x3fc   :  { %5805 = vmatprep.subr.bf16.mxu0 %v10464_v6 }
 0x3fe   :  { %5802 = vmatmul.mubr.bf16.vlgmr.msra.gmra.mrb[100].mxu0 %v2374_v14 }
 0x3ff   :  { %5806 = vmatpush3.bf16.msra.mxu0 %v10521_v25  ;;  %5821 = vmatprep.mubr.msk.bf16.mxu0 %vm6827_vm0, %v10464_v6 }
 0x400   :  { %5807 = vmatprep.subr.bf16.mxu0 %v10464_v6 }
 0x403   :  { %5808 = vmatpush3.bf16.msra.mxu0 %v10522_v26 }
 0x404   :  { %5809 = vmatprep.subr.bf16.mxu0 %v10464_v6 }
 0x407   :  { %5810 = vmatpush3.bf16.msra.mxu0 %v10523_v27 }
 0x408   :  { %5811 = vmatprep.subr.bf16.mxu0 %v10464_v6 }
 0x40b   :  { %5812 = vmatpush3.bf16.msra.mxu0 %v10524_v28 }
 0x40c   :  { %5813 = vmatprep.subr.bf16.mxu0 %v10464_v6 }
 0x40f   :  { %5814 = vmatpush3.bf16.msra.mxu0 %v10525_v29 }
 0x410   :  { %5815 = vmatprep.subr.bf16.mxu0 %v10464_v6 }
 0x413   :  { %5816 = vmatpush3.bf16.msra.mxu0 %v10526_v30 }
 0x414   :  { %5817 = vmatprep.subr.bf16.mxu0 %v10464_v6 }
 0x417   :  { %5818 = vmatpush3.bf16.msra.mxu0 %v10527_v31 }
 0x418   :  { %5819 = vmatprep.subr.bf16.mxu0 %v10464_v6 }
 0x41b   :  { %5820 = vmatpush3.bf16.msra.mxu0 %v10528_v32 }
 0x41c   :  { %5825 = vmatprep.subr.bf16.mxu0 %v10464_v6 }
 0x41e   :  { %5822 = vmatmul.mubr.bf16.vlgmr.msra.gmra.mrb[100].mxu0 %v10529_v34 }
 0x41f   :  { %5826 = vmatpush3.bf16.msra.mxu0 %v10530_v35  ;;  %5841 = vmatprep.mubr.msk.bf16.mxu0 %vm6827_vm0, %v10464_v6 }
 0x420   :  { %5827 = vmatprep.subr.bf16.mxu0 %v10464_v6 }
 0x423   :  { %5828 = vmatpush3.bf16.msra.mxu0 %v10531_v36 }
 0x424   :  { %5829 = vmatprep.subr.bf16.mxu0 %v10464_v6 }
 0x427   :  { %5830 = vmatpush3.bf16.msra.mxu0 %v10532_v37 }
 0x428   :  { %5831 = vmatprep.subr.bf16.mxu0 %v10464_v6 }
 0x42b   :  { %5832 = vmatpush3.bf16.msra.mxu0 %v10533_v38 }
 0x42c   :  { %5833 = vmatprep.subr.bf16.mxu0 %v10464_v6 }
 0x42f   :  { %5834 = vmatpush3.bf16.msra.mxu0 %v10534_v39 }
 0x430   :  { %5835 = vmatprep.subr.bf16.mxu0 %v10464_v6 }
 0x433   :  { %5836 = vmatpush3.bf16.msra.mxu0 %v10535_v40 }
 0x434   :  { %5837 = vmatprep.subr.bf16.mxu0 %v10464_v6 }
 0x437   :  { %5838 = vmatpush3.bf16.msra.mxu0 %v10536_v41 }
 0x438   :  { %5839 = vmatprep.subr.bf16.mxu0 %v10464_v6 }
 0x43b   :  { %5840 = vmatpush3.bf16.msra.mxu0 %v10537_v43 }
 0x43c   :  { %5845 = vmatprep.subr.bf16.mxu0 %v10464_v6 }
 0x43e   :  { %5842 = vmatmul.mubr.bf16.vlgmr.msra.gmra.mrb[100].mxu0 %v2477_v42 }
 0x43f   :  { %5861 = vmatprep.mubr.msk.bf16.mxu0 %vm6827_vm0, %v10464_v6 }
 0x440   :  { %6814 = dma.done.wait [#allocation4 + $0x2], 7168 }
 0x441   :  { %6815 = vsyncadd [#allocation4 + $0x2], 4294960128  ;;  %v10538_v44 = vld [vmem:[#allocation93_spill] sm:$0xff]  ;;  %v10539_v45 = vld [vmem:[#allocation94_spill] sm:$0xff] }
 0x442   :  { %5846 = vmatpush3.bf16.msra.mxu0 %v10538_v44  ;;  %v10540_v46 = vld [vmem:[#allocation95_spill] sm:$0xff]  ;;  %v10541_v47 = vld [vmem:[#allocation96_spill] sm:$0xff]  ;;  %v10542_v48 = vld [vmem:[#allocation97_spill] sm:$0xff] }
 0x443   :  { %5847 = vmatprep.subr.bf16.mxu0 %v10464_v6  ;;  %v10543_v49 = vld [vmem:[#allocation98_spill] sm:$0xff]  ;;  %v10544_v50 = vld [vmem:[#allocation99_spill] sm:$0xff]  ;;  %v10545_v51 = vld [vmem:[#allocation100_spill] sm:$0xff] }
 0x444   :  { %v10546_v52 = vld [vmem:[#allocation377_spill] sm:$0xff]  ;;  %v10548_v54 = vld [vmem:[#allocation102_spill] sm:$0xff]  ;;  %v10549_v55 = vld [vmem:[#allocation103_spill] sm:$0xff] }
 0x445   :  { %v10547_v53 = vld [vmem:[#allocation101_spill] sm:$0xff]  ;;  %v10550_v56 = vld [vmem:[#allocation104_spill] sm:$0xff]  ;;  %v10552_v58 = vld [vmem:[#allocation106_spill] sm:$0xff]  ;;  %v2581_v60 = vrot.slane %v10546_v52, 4 }
 0x446   :  { %5848 = vmatpush3.bf16.msra.mxu0 %v10539_v45  ;;  %v10551_v57 = vld [vmem:[#allocation105_spill] sm:$0xff]  ;;  %v10553_v59 = vld [vmem:[#allocation107_spill] sm:$0xff]  ;;  %v10554_v61 = vld [vmem:[#allocation108_spill] sm:$0xff] }
 0x447   :  { %5849 = vmatprep.subr.bf16.mxu0 %v10464_v6  ;;  %v10555_v62 = vld [vmem:[#allocation109_spill] sm:$0xff]  ;;  %v10556_v63 = vld [vmem:[#allocation110_spill] sm:$0xff]  ;;  %v10557_v0 = vld [vmem:[#allocation111_spill] sm:$0xff] }
 0x448   :  { %v10558_v1 = vld [vmem:[#allocation112_spill] sm:$0xff]  ;;  %v10559_v2 = vld [vmem:[#allocation113_spill] sm:$0xff]  ;;  %v10560_v3 = vld [vmem:[#allocation114_spill] sm:$0xff] }
 0x449   :  { %v10561_v13 = vld [vmem:[#allocation115_spill] sm:$0xff]  ;;  %v10562_v24 = vld [vmem:[#allocation116_spill] sm:$0xff]  ;;  %v10563_v20 = vld [vmem:[#allocation378_spill] sm:$0xff] }
 0x44a   :  { %5850 = vmatpush3.bf16.msra.mxu0 %v10540_v46  ;;  %v10564_v23 = vld [vmem:[#allocation117_spill] sm:$0xff]  ;;  %v10565_v7 = vld [vmem:[#allocation118_spill] sm:$0xff]  ;;  %v10566_v4 = vld [vmem:[#allocation119_spill] sm:$0xff]  ;;  %v2684_v9 = vrot.slane %v10563_v20, 4 }
 0x44b   :  { %5851 = vmatprep.subr.bf16.mxu0 %v10464_v6  ;;  %v10567_v11 = vld [vmem:[#allocation120_spill] sm:$0xff]  ;;  %v10568_v12 = vld [vmem:[#allocation121_spill] sm:$0xff]  ;;  %v10569_v18 = vld [vmem:[#allocation122_spill] sm:$0xff] }
 0x44c   :  { %v10570_v8 = vld [vmem:[#allocation123_spill] sm:$0xff]  ;;  %v10571_v10 = vld [vmem:[#allocation124_spill] sm:$0xff]  ;;  %v10572_v19 = vld [vmem:[#allocation125_spill] sm:$0xff] }
 0x44d   :  { %v10573_v21 = vld [vmem:[#allocation126_spill] sm:$0xff]  ;;  %v10574_v15 = vld [vmem:[#allocation127_spill] sm:$0xff]  ;;  %v10575_v17 = vld [vmem:[#allocation128_spill] sm:$0xff] }
 0x44e   :  { %5852 = vmatpush3.bf16.msra.mxu0 %v10541_v47  ;;  %v10576_v16 = vld [vmem:[#allocation129_spill] sm:$0xff]  ;;  %v10577_v14 = vld [vmem:[#allocation130_spill] sm:$0xff]  ;;  %v10578_v33 = vld [vmem:[#allocation131_spill] sm:$0xff] }
 0x44f   :  { %5853 = vmatprep.subr.bf16.mxu0 %v10464_v6  ;;  %v10579_v25 = vld [vmem:[#allocation132_spill] sm:$0xff]  ;;  %v10580_v26 = vld [vmem:[#allocation379_spill] sm:$0xff]  ;;  %v10581_v27 = vld [vmem:[#allocation133_spill] sm:$0xff] }
 0x450   :  { %v10582_v28 = vld [vmem:[#allocation134_spill] sm:$0xff]  ;;  %v10583_v29 = vld [vmem:[#allocation135_spill] sm:$0xff]  ;;  %v10584_v30 = vld [vmem:[#allocation136_spill] sm:$0xff]  ;;  %v2787_v35 = vrot.slane %v10580_v26, 4 }
 0x451   :  { %v10585_v31 = vld [vmem:[#allocation137_spill] sm:$0xff]  ;;  %v10586_v32 = vld [vmem:[#allocation138_spill] sm:$0xff]  ;;  %v10587_v34 = vld [vmem:[#allocation139_spill] sm:$0xff] }
 0x452   :  { %5854 = vmatpush3.bf16.msra.mxu0 %v10542_v48  ;;  %v10588_v36 = vld [vmem:[#allocation140_spill] sm:$0xff]  ;;  %v10589_v37 = vld [vmem:[#allocation141_spill] sm:$0xff]  ;;  %v10590_v38 = vld [vmem:[#allocation142_spill] sm:$0xff] }
 0x453   :  { %5855 = vmatprep.subr.bf16.mxu0 %v10464_v6  ;;  %v10591_v39 = vld [vmem:[#allocation143_spill] sm:$0xff]  ;;  %v10592_v40 = vld [vmem:[#allocation144_spill] sm:$0xff]  ;;  %v10593_v41 = vld [vmem:[#allocation145_spill] sm:$0xff] }
 0x454   :  { %v10594_v42 = vld [vmem:[#allocation146_spill] sm:$0xff]  ;;  %v10595_v43 = vld [vmem:[#allocation147_spill] sm:$0xff]  ;;  %v10596_v44 = vld [vmem:[#allocation148_spill] sm:$0xff] }
 0x455   :  { %v10597_v45 = vld [vmem:[#allocation380_spill] sm:$0xff] }
 0x456   :  { %5856 = vmatpush3.bf16.msra.mxu0 %v10543_v49 }
 0x457   :  { %5857 = vmatprep.subr.bf16.mxu0 %v10464_v6 }
 0x45a   :  { %5858 = vmatpush3.bf16.msra.mxu0 %v10544_v50 }
 0x45b   :  { %5859 = vmatprep.subr.bf16.mxu0 %v10464_v6 }
 0x45e   :  { %5860 = vmatpush3.bf16.msra.mxu0 %v10545_v51 }
 0x45f   :  { %5865 = vmatprep.subr.bf16.mxu0 %v10464_v6 }
 0x461   :  { %5862 = vmatmul.mubr.bf16.vlgmr.msra.gmra.mrb[100].mxu0 %v10546_v52 }
 0x462   :  { %5866 = vmatpush3.bf16.msra.mxu0 %v10547_v53  ;;  %5881 = vmatprep.mubr.msk.bf16.mxu0 %vm6827_vm0, %v10464_v6 }
 0x463   :  { %5867 = vmatprep.subr.bf16.mxu0 %v10464_v6 }
 0x466   :  { %5868 = vmatpush3.bf16.msra.mxu0 %v10548_v54 }
 0x467   :  { %5869 = vmatprep.subr.bf16.mxu0 %v10464_v6 }
 0x46a   :  { %5870 = vmatpush3.bf16.msra.mxu0 %v10549_v55 }
 0x46b   :  { %5871 = vmatprep.subr.bf16.mxu0 %v10464_v6 }
 0x46e   :  { %5872 = vmatpush3.bf16.msra.mxu0 %v10550_v56 }
 0x46f   :  { %5873 = vmatprep.subr.bf16.mxu0 %v10464_v6 }
 0x472   :  { %5874 = vmatpush3.bf16.msra.mxu0 %v10551_v57 }
 0x473   :  { %5875 = vmatprep.subr.bf16.mxu0 %v10464_v6 }
 0x476   :  { %5876 = vmatpush3.bf16.msra.mxu0 %v10552_v58 }
 0x477   :  { %5877 = vmatprep.subr.bf16.mxu0 %v10464_v6 }
 0x47a   :  { %5878 = vmatpush3.bf16.msra.mxu0 %v10553_v59 }
 0x47b   :  { %5879 = vmatprep.subr.bf16.mxu0 %v10464_v6 }
 0x47e   :  { %5880 = vmatpush3.bf16.msra.mxu0 %v10554_v61 }
 0x47f   :  { %5885 = vmatprep.subr.bf16.mxu0 %v10464_v6 }
 0x481   :  { %5882 = vmatmul.mubr.bf16.vlgmr.msra.gmra.mrb[100].mxu0 %v2581_v60 }
 0x482   :  { %5886 = vmatpush3.bf16.msra.mxu0 %v10555_v62  ;;  %5901 = vmatprep.mubr.msk.bf16.mxu0 %vm6827_vm0, %v10464_v6 }
 0x483   :  { %5887 = vmatprep.subr.bf16.mxu0 %v10464_v6 }
 0x486   :  { %5888 = vmatpush3.bf16.msra.mxu0 %v10556_v63 }
 0x487   :  { %5889 = vmatprep.subr.bf16.mxu0 %v10464_v6 }
 0x48a   :  { %5890 = vmatpush3.bf16.msra.mxu0 %v10557_v0 }
 0x48b   :  { %5891 = vmatprep.subr.bf16.mxu0 %v10464_v6 }
 0x48e   :  { %5892 = vmatpush3.bf16.msra.mxu0 %v10558_v1 }
 0x48f   :  { %5893 = vmatprep.subr.bf16.mxu0 %v10464_v6 }
 0x492   :  { %5894 = vmatpush3.bf16.msra.mxu0 %v10559_v2 }
 0x493   :  { %5895 = vmatprep.subr.bf16.mxu0 %v10464_v6 }
 0x496   :  { %5896 = vmatpush3.bf16.msra.mxu0 %v10560_v3 }
 0x497   :  { %5897 = vmatprep.subr.bf16.mxu0 %v10464_v6 }
 0x49a   :  { %5898 = vmatpush3.bf16.msra.mxu0 %v10561_v13 }
 0x49b   :  { %5899 = vmatprep.subr.bf16.mxu0 %v10464_v6 }
 0x49e   :  { %5900 = vmatpush3.bf16.msra.mxu0 %v10562_v24 }
 0x49f   :  { %5905 = vmatprep.subr.bf16.mxu0 %v10464_v6 }
 0x4a1   :  { %5902 = vmatmul.mubr.bf16.vlgmr.msra.gmra.mrb[100].mxu0 %v10563_v20 }
 0x4a2   :  { %5906 = vmatpush3.bf16.msra.mxu0 %v10564_v23  ;;  %5921 = vmatprep.mubr.msk.bf16.mxu0 %vm6827_vm0, %v10464_v6 }
 0x4a3   :  { %5907 = vmatprep.subr.bf16.mxu0 %v10464_v6 }
 0x4a6   :  { %5908 = vmatpush3.bf16.msra.mxu0 %v10565_v7 }
 0x4a7   :  { %5909 = vmatprep.subr.bf16.mxu0 %v10464_v6 }
 0x4aa   :  { %5910 = vmatpush3.bf16.msra.mxu0 %v10566_v4 }
 0x4ab   :  { %5911 = vmatprep.subr.bf16.mxu0 %v10464_v6 }
 0x4ae   :  { %5912 = vmatpush3.bf16.msra.mxu0 %v10567_v11 }
 0x4af   :  { %5913 = vmatprep.subr.bf16.mxu0 %v10464_v6 }
 0x4b2   :  { %5914 = vmatpush3.bf16.msra.mxu0 %v10568_v12 }
 0x4b3   :  { %5915 = vmatprep.subr.bf16.mxu0 %v10464_v6 }
 0x4b6   :  { %5916 = vmatpush3.bf16.msra.mxu0 %v10569_v18 }
 0x4b7   :  { %5917 = vmatprep.subr.bf16.mxu0 %v10464_v6 }
 0x4ba   :  { %5918 = vmatpush3.bf16.msra.mxu0 %v10570_v8 }
 0x4bb   :  { %5919 = vmatprep.subr.bf16.mxu0 %v10464_v6 }
 0x4be   :  { %5920 = vmatpush3.bf16.msra.mxu0 %v10571_v10 }
 0x4bf   :  { %5925 = vmatprep.subr.bf16.mxu0 %v10464_v6 }
 0x4c1   :  { %5922 = vmatmul.mubr.bf16.vlgmr.msra.gmra.mrb[100].mxu0 %v2684_v9 }
 0x4c2   :  { %5926 = vmatpush3.bf16.msra.mxu0 %v10572_v19  ;;  %5941 = vmatprep.mubr.msk.bf16.mxu0 %vm6827_vm0, %v10464_v6 }
 0x4c3   :  { %5927 = vmatprep.subr.bf16.mxu0 %v10464_v6 }
 0x4c6   :  { %5928 = vmatpush3.bf16.msra.mxu0 %v10573_v21 }
 0x4c7   :  { %5929 = vmatprep.subr.bf16.mxu0 %v10464_v6 }
 0x4ca   :  { %5930 = vmatpush3.bf16.msra.mxu0 %v10574_v15 }
 0x4cb   :  { %5931 = vmatprep.subr.bf16.mxu0 %v10464_v6 }
 0x4ce   :  { %5932 = vmatpush3.bf16.msra.mxu0 %v10575_v17 }
 0x4cf   :  { %5933 = vmatprep.subr.bf16.mxu0 %v10464_v6 }
 0x4d2   :  { %5934 = vmatpush3.bf16.msra.mxu0 %v10576_v16 }
 0x4d3   :  { %5935 = vmatprep.subr.bf16.mxu0 %v10464_v6 }
 0x4d6   :  { %5936 = vmatpush3.bf16.msra.mxu0 %v10577_v14 }
 0x4d7   :  { %5937 = vmatprep.subr.bf16.mxu0 %v10464_v6 }
 0x4da   :  { %5938 = vmatpush3.bf16.msra.mxu0 %v10578_v33 }
 0x4db   :  { %5939 = vmatprep.subr.bf16.mxu0 %v10464_v6 }
 0x4de   :  { %5940 = vmatpush3.bf16.msra.mxu0 %v10579_v25 }
 0x4df   :  { %5945 = vmatprep.subr.bf16.mxu0 %v10464_v6 }
 0x4e1   :  { %5942 = vmatmul.mubr.bf16.vlgmr.msra.gmra.mrb[100].mxu0 %v10580_v26 }
 0x4e2   :  { %5946 = vmatpush3.bf16.msra.mxu0 %v10581_v27  ;;  %5961 = vmatprep.mubr.msk.bf16.mxu0 %vm6827_vm0, %v10464_v6 }
 0x4e3   :  { %5947 = vmatprep.subr.bf16.mxu0 %v10464_v6 }
 0x4e6   :  { %5948 = vmatpush3.bf16.msra.mxu0 %v10582_v28 }
 0x4e7   :  { %5949 = vmatprep.subr.bf16.mxu0 %v10464_v6 }
 0x4ea   :  { %5950 = vmatpush3.bf16.msra.mxu0 %v10583_v29 }
 0x4eb   :  { %5951 = vmatprep.subr.bf16.mxu0 %v10464_v6 }
 0x4ee   :  { %5952 = vmatpush3.bf16.msra.mxu0 %v10584_v30 }
 0x4ef   :  { %5953 = vmatprep.subr.bf16.mxu0 %v10464_v6 }
 0x4f2   :  { %5954 = vmatpush3.bf16.msra.mxu0 %v10585_v31 }
 0x4f3   :  { %5955 = vmatprep.subr.bf16.mxu0 %v10464_v6 }
 0x4f6   :  { %5956 = vmatpush3.bf16.msra.mxu0 %v10586_v32 }
 0x4f7   :  { %5957 = vmatprep.subr.bf16.mxu0 %v10464_v6 }
 0x4fa   :  { %5958 = vmatpush3.bf16.msra.mxu0 %v10587_v34 }
 0x4fb   :  { %5959 = vmatprep.subr.bf16.mxu0 %v10464_v6 }
 0x4fe   :  { %5960 = vmatpush3.bf16.msra.mxu0 %v10588_v36 }
 0x4ff   :  { %5965 = vmatprep.subr.bf16.mxu0 %v10464_v6 }
 0x501   :  { %5962 = vmatmul.mubr.bf16.vlgmr.msra.gmra.mrb[100].mxu0 %v2787_v35 }
 0x502   :  { %5966 = vmatpush3.bf16.msra.mxu0 %v10589_v37  ;;  %5981 = vmatprep.mubr.msk.bf16.mxu0 %vm6827_vm0, %v10464_v6 }
 0x503   :  { %5967 = vmatprep.subr.bf16.mxu0 %v10464_v6 }
 0x506   :  { %5968 = vmatpush3.bf16.msra.mxu0 %v10590_v38 }
 0x507   :  { %5969 = vmatprep.subr.bf16.mxu0 %v10464_v6 }
 0x50a   :  { %5970 = vmatpush3.bf16.msra.mxu0 %v10591_v39 }
 0x50b   :  { %5971 = vmatprep.subr.bf16.mxu0 %v10464_v6 }
 0x50e   :  { %5972 = vmatpush3.bf16.msra.mxu0 %v10592_v40 }
 0x50f   :  { %5973 = vmatprep.subr.bf16.mxu0 %v10464_v6 }
 0x512   :  { %5974 = vmatpush3.bf16.msra.mxu0 %v10593_v41 }
 0x513   :  { %5975 = vmatprep.subr.bf16.mxu0 %v10464_v6 }
 0x516   :  { %5976 = vmatpush3.bf16.msra.mxu0 %v10594_v42 }
 0x517   :  { %5977 = vmatprep.subr.bf16.mxu0 %v10464_v6 }
 0x51a   :  { %5978 = vmatpush3.bf16.msra.mxu0 %v10595_v43 }
 0x51b   :  { %5979 = vmatprep.subr.bf16.mxu0 %v10464_v6 }
 0x51e   :  { %5980 = vmatpush3.bf16.msra.mxu0 %v10596_v44 }
 0x51f   :  { %5985 = vmatprep.subr.bf16.mxu0 %v10464_v6 }
 0x521   :  { %5982 = vmatmul.mubr.bf16.vlgmr.msra.gmra.mrb[100].mxu0 %v10597_v45 }
 0x522   :  { %6001 = vmatprep.mubr.msk.bf16.mxu0 %vm6827_vm0, %v10464_v6 }
 0x523   :  { %6816 = dma.done.wait [#allocation4 + $0x3], 7168 }
 0x524   :  { %6817 = vsyncadd [#allocation4 + $0x3], 4294960128  ;;  %v10598_v46 = vld [vmem:[#allocation149_spill] sm:$0xff]  ;;  %6005 = vmatprep.subr.bf16.mxu1 %v10464_v6  ;;  %6021 = vmatprep.mubr.msk.bf16.mxu1 %vm6827_vm0, %v10464_v6  ;;  %v10600_v48 = vld [vmem:[#allocation150_spill] sm:$0xff]  ;;  %v2891_v60 = vrot.slane %v10597_v45, 4 }
 0x525   :  { %5986 = vmatpush3.bf16.msra.mxu0 %v10598_v46  ;;  %v10599_v47 = vld [vmem:[#allocation157_spill] sm:$0xff]  ;;  %v10601_v49 = vld [vmem:[#allocation158_spill] sm:$0xff]  ;;  %v10602_v50 = vld [vmem:[#allocation151_spill] sm:$0xff] }
 0x526   :  { %5987 = vmatprep.subr.bf16.mxu0 %v10464_v6  ;;  %6006 = vmatpush3.bf16.msra.mxu1 %v10599_v47  ;;  %v10603_v51 = vld [vmem:[#allocation159_spill] sm:$0xff]  ;;  %v10604_v52 = vld [vmem:[#allocation152_spill] sm:$0xff]  ;;  %v10606_v54 = vld [vmem:[#allocation153_spill] sm:$0xff] }
 0x527   :  { %6007 = vmatprep.subr.bf16.mxu1 %v10464_v6  ;;  %v10605_v53 = vld [vmem:[#allocation160_spill] sm:$0xff]  ;;  %v10607_v55 = vld [vmem:[#allocation161_spill] sm:$0xff]  ;;  %v10608_v56 = vld [vmem:[#allocation154_spill] sm:$0xff] }
 0x528   :  { %v10609_v57 = vld [vmem:[#allocation162_spill] sm:$0xff]  ;;  %v10610_v58 = vld [vmem:[#allocation155_spill] sm:$0xff]  ;;  %v10612_v61 = vld [vmem:[#allocation156_spill] sm:$0xff] }
 0x529   :  { %5988 = vmatpush3.bf16.msra.mxu0 %v10600_v48  ;;  %v10611_v59 = vld [vmem:[#allocation163_spill] sm:$0xff]  ;;  %v10613_v62 = vld [vmem:[#allocation164_spill] sm:$0xff]  ;;  %v10614_v63 = vld [vmem:[#allocation381_spill] sm:$0xff] }
 0x52a   :  { %5989 = vmatprep.subr.bf16.mxu0 %v10464_v6  ;;  %6008 = vmatpush3.bf16.msra.mxu1 %v10601_v49  ;;  %v10615_v0 = vld [vmem:[#allocation165_spill] sm:$0xff]  ;;  %v10616_v1 = vld [vmem:[#allocation166_spill] sm:$0xff]  ;;  %v10617_v2 = vld [vmem:[#allocation167_spill] sm:$0xff]  ;;  %v2994_v23 = vrot.slane %v10614_v63, 4 }
 0x52b   :  { %6009 = vmatprep.subr.bf16.mxu1 %v10464_v6  ;;  %v10618_v3 = vld [vmem:[#allocation168_spill] sm:$0xff]  ;;  %v10619_v13 = vld [vmem:[#allocation169_spill] sm:$0xff]  ;;  %v10620_v24 = vld [vmem:[#allocation170_spill] sm:$0xff] }
 0x52c   :  { %v10621_v20 = vld [vmem:[#allocation171_spill] sm:$0xff]  ;;  %v10622_v7 = vld [vmem:[#allocation172_spill] sm:$0xff]  ;;  %v10623_v4 = vld [vmem:[#allocation173_spill] sm:$0xff] }
 0x52d   :  { %5990 = vmatpush3.bf16.msra.mxu0 %v10602_v50  ;;  %v10624_v11 = vld [vmem:[#allocation174_spill] sm:$0xff]  ;;  %v10625_v12 = vld [vmem:[#allocation175_spill] sm:$0xff]  ;;  %v10626_v18 = vld [vmem:[#allocation176_spill] sm:$0xff] }
 0x52e   :  { %5991 = vmatprep.subr.bf16.mxu0 %v10464_v6  ;;  %6010 = vmatpush3.bf16.msra.mxu1 %v10603_v51  ;;  %v10627_v8 = vld [vmem:[#allocation177_spill] sm:$0xff]  ;;  %v10628_v9 = vld [vmem:[#allocation178_spill] sm:$0xff]  ;;  %v10629_v10 = vld [vmem:[#allocation179_spill] sm:$0xff] }
 0x52f   :  { %6011 = vmatprep.subr.bf16.mxu1 %v10464_v6  ;;  %v10630_v19 = vld [vmem:[#allocation180_spill] sm:$0xff]  ;;  %v10631_v21 = vld [vmem:[#allocation382_spill] sm:$0xff]  ;;  %v10632_v15 = vld [vmem:[#allocation181_spill] sm:$0xff] }
 0x530   :  { %v10633_v17 = vld [vmem:[#allocation182_spill] sm:$0xff]  ;;  %v10634_v16 = vld [vmem:[#allocation183_spill] sm:$0xff]  ;;  %v10635_v14 = vld [vmem:[#allocation184_spill] sm:$0xff]  ;;  %v3097_v27 = vrot.slane %v10631_v21, 4 }
 0x531   :  { %5992 = vmatpush3.bf16.msra.mxu0 %v10604_v52  ;;  %v10636_v33 = vld [vmem:[#allocation185_spill] sm:$0xff]  ;;  %v10637_v25 = vld [vmem:[#allocation186_spill] sm:$0xff]  ;;  %v10638_v26 = vld [vmem:[#allocation187_spill] sm:$0xff] }
 0x532   :  { %5993 = vmatprep.subr.bf16.mxu0 %v10464_v6  ;;  %6012 = vmatpush3.bf16.msra.mxu1 %v10605_v53  ;;  %v10639_v28 = vld [vmem:[#allocation188_spill] sm:$0xff]  ;;  %v10640_v29 = vld [vmem:[#allocation189_spill] sm:$0xff]  ;;  %v10641_v30 = vld [vmem:[#allocation190_spill] sm:$0xff] }
 0x533   :  { %6013 = vmatprep.subr.bf16.mxu1 %v10464_v6  ;;  %v10642_v31 = vld [vmem:[#allocation191_spill] sm:$0xff]  ;;  %v10643_v32 = vld [vmem:[#allocation192_spill] sm:$0xff]  ;;  %v10644_v34 = vld [vmem:[#allocation193_spill] sm:$0xff] }
 0x534   :  { %v10645_v35 = vld [vmem:[#allocation194_spill] sm:$0xff]  ;;  %v10646_v36 = vld [vmem:[#allocation195_spill] sm:$0xff]  ;;  %v10647_v37 = vld [vmem:[#allocation196_spill] sm:$0xff] }
 0x535   :  { %5994 = vmatpush3.bf16.msra.mxu0 %v10606_v54  ;;  %v10648_v38 = vld [vmem:[#allocation383_spill] sm:$0xff]  ;;  %v10649_v39 = vld [vmem:[#allocation197_spill] sm:$0xff]  ;;  %v10650_v40 = vld [vmem:[#allocation198_spill] sm:$0xff] }
 0x536   :  { %5995 = vmatprep.subr.bf16.mxu0 %v10464_v6  ;;  %6014 = vmatpush3.bf16.msra.mxu1 %v10607_v55  ;;  %v10651_v41 = vld [vmem:[#allocation199_spill] sm:$0xff]  ;;  %v10652_v42 = vld [vmem:[#allocation200_spill] sm:$0xff]  ;;  %v10653_v43 = vld [vmem:[#allocation201_spill] sm:$0xff]  ;;  %v3200_v46 = vrot.slane %v10648_v38, 4 }
 0x537   :  { %6015 = vmatprep.subr.bf16.mxu1 %v10464_v6  ;;  %v10654_v44 = vld [vmem:[#allocation202_spill] sm:$0xff]  ;;  %v10655_v45 = vld [vmem:[#allocation203_spill] sm:$0xff]  ;;  %v10656_v47 = vld [vmem:[#allocation204_spill] sm:$0xff] }
 0x539   :  { %5996 = vmatpush3.bf16.msra.mxu0 %v10608_v56 }
 0x53a   :  { %5997 = vmatprep.subr.bf16.mxu0 %v10464_v6  ;;  %6016 = vmatpush3.bf16.msra.mxu1 %v10609_v57 }
 0x53b   :  { %6017 = vmatprep.subr.bf16.mxu1 %v10464_v6 }
 0x53d   :  { %5998 = vmatpush3.bf16.msra.mxu0 %v10610_v58 }
 0x53e   :  { %5999 = vmatprep.subr.bf16.mxu0 %v10464_v6  ;;  %6018 = vmatpush3.bf16.msra.mxu1 %v10611_v59 }
 0x53f   :  { %6019 = vmatprep.subr.bf16.mxu1 %v10464_v6 }
 0x541   :  { %6000 = vmatpush3.bf16.msra.mxu0 %v10612_v61 }
 0x542   :  { %6020 = vmatpush3.bf16.msra.mxu1 %v10613_v62 }
 0x543   :  { %6025 = vmatprep.subr.bf16.mxu1 %v10464_v6 }
 0x544   :  { %6002 = vmatmul.mubr.bf16.vlgmr.msra.gmra.mrb[100].mxu0 %v2891_v60 }
 0x545   :  { %6022 = vmatmul.mubr.bf16.vlgmr.msra.gmra.mrb[0].mxu1 %v10614_v63 }
 0x546   :  { %6026 = vmatpush3.bf16.msra.mxu1 %v10615_v0  ;;  %6041 = vmatprep.mubr.msk.bf16.mxu1 %vm6827_vm0, %v10464_v6 }
 0x547   :  { %6027 = vmatprep.subr.bf16.mxu1 %v10464_v6 }
 0x54a   :  { %6028 = vmatpush3.bf16.msra.mxu1 %v10616_v1 }
 0x54b   :  { %6029 = vmatprep.subr.bf16.mxu1 %v10464_v6 }
 0x54e   :  { %6030 = vmatpush3.bf16.msra.mxu1 %v10617_v2 }
 0x54f   :  { %6031 = vmatprep.subr.bf16.mxu1 %v10464_v6 }
 0x552   :  { %6032 = vmatpush3.bf16.msra.mxu1 %v10618_v3 }
 0x553   :  { %6033 = vmatprep.subr.bf16.mxu1 %v10464_v6 }
 0x556   :  { %6034 = vmatpush3.bf16.msra.mxu1 %v10619_v13 }
 0x557   :  { %6035 = vmatprep.subr.bf16.mxu1 %v10464_v6 }
 0x55a   :  { %6036 = vmatpush3.bf16.msra.mxu1 %v10620_v24 }
 0x55b   :  { %6037 = vmatprep.subr.bf16.mxu1 %v10464_v6 }
 0x55e   :  { %6038 = vmatpush3.bf16.msra.mxu1 %v10621_v20 }
 0x55f   :  { %6039 = vmatprep.subr.bf16.mxu1 %v10464_v6 }
 0x562   :  { %6040 = vmatpush3.bf16.msra.mxu1 %v10622_v7 }
 0x563   :  { %6045 = vmatprep.subr.bf16.mxu1 %v10464_v6 }
 0x565   :  { %6042 = vmatmul.mubr.bf16.vlgmr.msra.gmra.mrb[0].mxu1 %v2994_v23 }
 0x566   :  { %6046 = vmatpush3.bf16.msra.mxu1 %v10623_v4  ;;  %6061 = vmatprep.mubr.msk.bf16.mxu1 %vm6827_vm0, %v10464_v6 }
 0x567   :  { %6047 = vmatprep.subr.bf16.mxu1 %v10464_v6 }
 0x56a   :  { %6048 = vmatpush3.bf16.msra.mxu1 %v10624_v11 }
 0x56b   :  { %6049 = vmatprep.subr.bf16.mxu1 %v10464_v6 }
 0x56e   :  { %6050 = vmatpush3.bf16.msra.mxu1 %v10625_v12 }
 0x56f   :  { %6051 = vmatprep.subr.bf16.mxu1 %v10464_v6 }
 0x572   :  { %6052 = vmatpush3.bf16.msra.mxu1 %v10626_v18 }
 0x573   :  { %6053 = vmatprep.subr.bf16.mxu1 %v10464_v6 }
 0x576   :  { %6054 = vmatpush3.bf16.msra.mxu1 %v10627_v8 }
 0x577   :  { %6055 = vmatprep.subr.bf16.mxu1 %v10464_v6 }
 0x57a   :  { %6056 = vmatpush3.bf16.msra.mxu1 %v10628_v9 }
 0x57b   :  { %6057 = vmatprep.subr.bf16.mxu1 %v10464_v6 }
 0x57e   :  { %6058 = vmatpush3.bf16.msra.mxu1 %v10629_v10 }
 0x57f   :  { %6059 = vmatprep.subr.bf16.mxu1 %v10464_v6 }
 0x582   :  { %6060 = vmatpush3.bf16.msra.mxu1 %v10630_v19 }
 0x583   :  { %6065 = vmatprep.subr.bf16.mxu1 %v10464_v6 }
 0x585   :  { %6062 = vmatmul.mubr.bf16.vlgmr.msra.gmra.mrb[0].mxu1 %v10631_v21 }
 0x586   :  { %6066 = vmatpush3.bf16.msra.mxu1 %v10632_v15  ;;  %6081 = vmatprep.mubr.msk.bf16.mxu1 %vm6827_vm0, %v10464_v6 }
 0x587   :  { %6067 = vmatprep.subr.bf16.mxu1 %v10464_v6 }
 0x58a   :  { %6068 = vmatpush3.bf16.msra.mxu1 %v10633_v17 }
 0x58b   :  { %6069 = vmatprep.subr.bf16.mxu1 %v10464_v6 }
 0x58e   :  { %6070 = vmatpush3.bf16.msra.mxu1 %v10634_v16 }
 0x58f   :  { %6071 = vmatprep.subr.bf16.mxu1 %v10464_v6 }
 0x592   :  { %6072 = vmatpush3.bf16.msra.mxu1 %v10635_v14 }
 0x593   :  { %6073 = vmatprep.subr.bf16.mxu1 %v10464_v6 }
 0x596   :  { %6074 = vmatpush3.bf16.msra.mxu1 %v10636_v33 }
 0x597   :  { %6075 = vmatprep.subr.bf16.mxu1 %v10464_v6 }
 0x59a   :  { %6076 = vmatpush3.bf16.msra.mxu1 %v10637_v25 }
 0x59b   :  { %6077 = vmatprep.subr.bf16.mxu1 %v10464_v6 }
 0x59e   :  { %6078 = vmatpush3.bf16.msra.mxu1 %v10638_v26 }
 0x59f   :  { %6079 = vmatprep.subr.bf16.mxu1 %v10464_v6 }
 0x5a2   :  { %6080 = vmatpush3.bf16.msra.mxu1 %v10639_v28 }
 0x5a3   :  { %6085 = vmatprep.subr.bf16.mxu1 %v10464_v6 }
 0x5a5   :  { %6082 = vmatmul.mubr.bf16.vlgmr.msra.gmra.mrb[0].mxu1 %v3097_v27 }
 0x5a6   :  { %6086 = vmatpush3.bf16.msra.mxu1 %v10640_v29  ;;  %6101 = vmatprep.mubr.msk.bf16.mxu1 %vm6827_vm0, %v10464_v6 }
 0x5a7   :  { %6087 = vmatprep.subr.bf16.mxu1 %v10464_v6 }
 0x5aa   :  { %6088 = vmatpush3.bf16.msra.mxu1 %v10641_v30 }
 0x5ab   :  { %6089 = vmatprep.subr.bf16.mxu1 %v10464_v6 }
 0x5ae   :  { %6090 = vmatpush3.bf16.msra.mxu1 %v10642_v31 }
 0x5af   :  { %6091 = vmatprep.subr.bf16.mxu1 %v10464_v6 }
 0x5b2   :  { %6092 = vmatpush3.bf16.msra.mxu1 %v10643_v32 }
 0x5b3   :  { %6093 = vmatprep.subr.bf16.mxu1 %v10464_v6 }
 0x5b6   :  { %6094 = vmatpush3.bf16.msra.mxu1 %v10644_v34 }
 0x5b7   :  { %6095 = vmatprep.subr.bf16.mxu1 %v10464_v6 }
 0x5ba   :  { %6096 = vmatpush3.bf16.msra.mxu1 %v10645_v35 }
 0x5bb   :  { %6097 = vmatprep.subr.bf16.mxu1 %v10464_v6 }
 0x5be   :  { %6098 = vmatpush3.bf16.msra.mxu1 %v10646_v36 }
 0x5bf   :  { %6099 = vmatprep.subr.bf16.mxu1 %v10464_v6 }
 0x5c2   :  { %6100 = vmatpush3.bf16.msra.mxu1 %v10647_v37 }
 0x5c3   :  { %6105 = vmatprep.subr.bf16.mxu1 %v10464_v6 }
 0x5c5   :  { %6102 = vmatmul.mubr.bf16.vlgmr.msra.gmra.mrb[0].mxu1 %v10648_v38 }
 0x5c6   :  { %6106 = vmatpush3.bf16.msra.mxu1 %v10649_v39  ;;  %6121 = vmatprep.mubr.msk.bf16.mxu1 %vm6827_vm0, %v10464_v6 }
 0x5c7   :  { %6107 = vmatprep.subr.bf16.mxu1 %v10464_v6 }
 0x5ca   :  { %6108 = vmatpush3.bf16.msra.mxu1 %v10650_v40 }
 0x5cb   :  { %6109 = vmatprep.subr.bf16.mxu1 %v10464_v6 }
 0x5ce   :  { %6110 = vmatpush3.bf16.msra.mxu1 %v10651_v41 }
 0x5cf   :  { %6111 = vmatprep.subr.bf16.mxu1 %v10464_v6 }
 0x5d2   :  { %6112 = vmatpush3.bf16.msra.mxu1 %v10652_v42 }
 0x5d3   :  { %6113 = vmatprep.subr.bf16.mxu1 %v10464_v6 }
 0x5d6   :  { %6114 = vmatpush3.bf16.msra.mxu1 %v10653_v43 }
 0x5d7   :  { %6115 = vmatprep.subr.bf16.mxu1 %v10464_v6 }
 0x5da   :  { %6116 = vmatpush3.bf16.msra.mxu1 %v10654_v44 }
 0x5db   :  { %6117 = vmatprep.subr.bf16.mxu1 %v10464_v6 }
 0x5de   :  { %6118 = vmatpush3.bf16.msra.mxu1 %v10655_v45 }
 0x5df   :  { %6119 = vmatprep.subr.bf16.mxu1 %v10464_v6 }
 0x5e2   :  { %6120 = vmatpush3.bf16.msra.mxu1 %v10656_v47 }
 0x5e3   :  { %6125 = vmatprep.subr.bf16.mxu1 %v10464_v6 }
 0x5e5   :  { %6122 = vmatmul.mubr.bf16.vlgmr.msra.gmra.mrb[0].mxu1 %v3200_v46 }
 0x5e6   :  { %6141 = vmatprep.mubr.msk.bf16.mxu1 %vm6827_vm0, %v10464_v6 }
 0x617   :  { %v9631_v48 = vpop.f32.mrb[100].mxu0 }
 0x618   :  { %v6003_v49 = vpop.f32.mrb[101].mxu0 }
 0x619   :  { %v2930_v50 = vpop.f32.mrb[102].mxu0 }
 0x61a   :  { %v6004_v51 = vpop.f32.mrb[103].mxu0 }
 0x61b   :  { %6818 = dma.done.wait [#allocation4 + $0x4], 7168 }
 0x61c   :  { %6819 = vsyncadd [#allocation4 + $0x4], 4294960128  ;;  %v10657_v52 = vld [vmem:[#allocation205_spill] sm:$0xff]  ;;  %v10658_v53 = vld [vmem:[#allocation206_spill] sm:$0xff] }
 0x61d   :  { %6126 = vmatpush3.bf16.msra.mxu1 %v10657_v52  ;;  %v10659_v54 = vld [vmem:[#allocation207_spill] sm:$0xff]  ;;  %v10660_v55 = vld [vmem:[#allocation208_spill] sm:$0xff]  ;;  %v10661_v56 = vld [vmem:[#allocation209_spill] sm:$0xff] }
 0x61e   :  { %6127 = vmatprep.subr.bf16.mxu1 %v10464_v6  ;;  %v10662_v57 = vld [vmem:[#allocation210_spill] sm:$0xff]  ;;  %v10663_v58 = vld [vmem:[#allocation211_spill] sm:$0xff]  ;;  %v10664_v59 = vld [vmem:[#allocation212_spill] sm:$0xff] }
 0x61f   :  { %v10665_v60 = vld [vmem:[#allocation384_spill] sm:$0xff]  ;;  %v10666_v61 = vld [vmem:[#allocation213_spill] sm:$0xff]  ;;  %v10667_v62 = vld [vmem:[#allocation214_spill] sm:$0xff] }
 0x620   :  { %v10668_v63 = vld [vmem:[#allocation215_spill] sm:$0xff]  ;;  %v10669_v0 = vld [vmem:[#allocation216_spill] sm:$0xff]  ;;  %v10670_v1 = vld [vmem:[#allocation217_spill] sm:$0xff]  ;;  %v3304_v13 = vrot.slane %v10665_v60, 4 }
 0x621   :  { %6128 = vmatpush3.bf16.msra.mxu1 %v10658_v53  ;;  %v10671_v2 = vld [vmem:[#allocation218_spill] sm:$0xff]  ;;  %v10672_v3 = vld [vmem:[#allocation219_spill] sm:$0xff]  ;;  %v10673_v24 = vld [vmem:[#allocation220_spill] sm:$0xff] }
 0x622   :  { %6129 = vmatprep.subr.bf16.mxu1 %v10464_v6  ;;  %v10674_v20 = vld [vmem:[#allocation221_spill] sm:$0xff]  ;;  %v10675_v23 = vld [vmem:[#allocation222_spill] sm:$0xff]  ;;  %v10676_v7 = vld [vmem:[#allocation223_spill] sm:$0xff] }
 0x623   :  { %v10677_v4 = vld [vmem:[#allocation224_spill] sm:$0xff]  ;;  %v10678_v11 = vld [vmem:[#allocation225_spill] sm:$0xff]  ;;  %v10679_v12 = vld [vmem:[#allocation226_spill] sm:$0xff] }
 0x624   :  { %v10680_v18 = vld [vmem:[#allocation227_spill] sm:$0xff]  ;;  %v10681_v8 = vld [vmem:[#allocation228_spill] sm:$0xff]  ;;  %v10682_v9 = vld [vmem:[#allocation385_spill] sm:$0xff] }
 0x625   :  { %6130 = vmatpush3.bf16.msra.mxu1 %v10659_v54  ;;  %v10683_v10 = vld [vmem:[#allocation229_spill] sm:$0xff]  ;;  %v10684_v19 = vld [vmem:[#allocation230_spill] sm:$0xff]  ;;  %v10685_v21 = vld [vmem:[#allocation231_spill] sm:$0xff]  ;;  %v3407_v33 = vrot.slane %v10682_v9, 4 }
 0x626   :  { %6131 = vmatprep.subr.bf16.mxu1 %v10464_v6  ;;  %v10686_v15 = vld [vmem:[#allocation232_spill] sm:$0xff]  ;;  %v10687_v17 = vld [vmem:[#allocation233_spill] sm:$0xff]  ;;  %v10688_v16 = vld [vmem:[#allocation234_spill] sm:$0xff] }
 0x627   :  { %v10689_v14 = vld [vmem:[#allocation235_spill] sm:$0xff]  ;;  %v10690_v25 = vld [vmem:[#allocation236_spill] sm:$0xff]  ;;  %v10691_v26 = vld [vmem:[#allocation237_spill] sm:$0xff] }
 0x628   :  { %v10692_v27 = vld [vmem:[#allocation238_spill] sm:$0xff]  ;;  %v10693_v28 = vld [vmem:[#allocation239_spill] sm:$0xff]  ;;  %v10694_v29 = vld [vmem:[#allocation240_spill] sm:$0xff] }
 0x629   :  { %6132 = vmatpush3.bf16.msra.mxu1 %v10660_v55  ;;  %v10695_v30 = vld [vmem:[#allocation241_spill] sm:$0xff]  ;;  %v10696_v31 = vld [vmem:[#allocation242_spill] sm:$0xff]  ;;  %v10697_v32 = vld [vmem:[#allocation243_spill] sm:$0xff] }
 0x62a   :  { %6133 = vmatprep.subr.bf16.mxu1 %v10464_v6  ;;  %v10698_v34 = vld [vmem:[#allocation244_spill] sm:$0xff]  ;;  %v10699_v35 = vld [vmem:[#allocation386_spill] sm:$0xff]  ;;  %v10700_v36 = vld [vmem:[#allocation245_spill] sm:$0xff] }
 0x62b   :  { %v10701_v37 = vld [vmem:[#allocation246_spill] sm:$0xff]  ;;  %v10702_v38 = vld [vmem:[#allocation247_spill] sm:$0xff]  ;;  %v10703_v39 = vld [vmem:[#allocation248_spill] sm:$0xff]  ;;  %v3510_v43 = vrot.slane %v10699_v35, 4 }
 0x62c   :  { %v10704_v40 = vld [vmem:[#allocation249_spill] sm:$0xff]  ;;  %v10705_v41 = vld [vmem:[#allocation250_spill] sm:$0xff]  ;;  %v10706_v42 = vld [vmem:[#allocation251_spill] sm:$0xff] }
 0x62d   :  { %6134 = vmatpush3.bf16.msra.mxu1 %v10661_v56  ;;  %v10707_v44 = vld [vmem:[#allocation252_spill] sm:$0xff]  ;;  %v10708_v45 = vld [vmem:[#allocation253_spill] sm:$0xff]  ;;  %v10709_v46 = vld [vmem:[#allocation254_spill] sm:$0xff] }
 0x62e   :  { %6135 = vmatprep.subr.bf16.mxu1 %v10464_v6  ;;  %v10710_v47 = vld [vmem:[#allocation255_spill] sm:$0xff]  ;;  %v10711_v49 = vld [vmem:[#allocation256_spill] sm:$0xff]  ;;  %v10712_v50 = vld [vmem:[#allocation257_spill] sm:$0xff] }
 0x62f   :  { %v10713_v51 = vld [vmem:[#allocation258_spill] sm:$0xff]  ;;  %v10714_v52 = vld [vmem:[#allocation259_spill] sm:$0xff]  ;;  %v10715_v53 = vld [vmem:[#allocation260_spill] sm:$0xff] }
 0x630   :  { %v10716_v54 = vld [vmem:[#allocation387_spill] sm:$0xff] }
 0x631   :  { %6136 = vmatpush3.bf16.msra.mxu1 %v10662_v57 }
 0x632   :  { %6137 = vmatprep.subr.bf16.mxu1 %v10464_v6 }
 0x635   :  { %6138 = vmatpush3.bf16.msra.mxu1 %v10663_v58 }
 0x636   :  { %6139 = vmatprep.subr.bf16.mxu1 %v10464_v6 }
 0x639   :  { %6140 = vmatpush3.bf16.msra.mxu1 %v10664_v59 }
 0x63a   :  { %6145 = vmatprep.subr.bf16.mxu1 %v10464_v6 }
 0x63c   :  { %6142 = vmatmul.mubr.bf16.vlgmr.msra.gmra.mrb[0].mxu1 %v10665_v60 }
 0x63d   :  { %6146 = vmatpush3.bf16.msra.mxu1 %v10666_v61  ;;  %6161 = vmatprep.mubr.msk.bf16.mxu1 %vm6827_vm0, %v10464_v6 }
 0x63e   :  { %6147 = vmatprep.subr.bf16.mxu1 %v10464_v6 }
 0x641   :  { %6148 = vmatpush3.bf16.msra.mxu1 %v10667_v62 }
 0x642   :  { %6149 = vmatprep.subr.bf16.mxu1 %v10464_v6 }
 0x645   :  { %6150 = vmatpush3.bf16.msra.mxu1 %v10668_v63 }
 0x646   :  { %6151 = vmatprep.subr.bf16.mxu1 %v10464_v6 }
 0x649   :  { %6152 = vmatpush3.bf16.msra.mxu1 %v10669_v0 }
 0x64a   :  { %6153 = vmatprep.subr.bf16.mxu1 %v10464_v6 }
 0x64d   :  { %6154 = vmatpush3.bf16.msra.mxu1 %v10670_v1 }
 0x64e   :  { %6155 = vmatprep.subr.bf16.mxu1 %v10464_v6 }
 0x651   :  { %6156 = vmatpush3.bf16.msra.mxu1 %v10671_v2 }
 0x652   :  { %6157 = vmatprep.subr.bf16.mxu1 %v10464_v6 }
 0x655   :  { %6158 = vmatpush3.bf16.msra.mxu1 %v10672_v3 }
 0x656   :  { %6159 = vmatprep.subr.bf16.mxu1 %v10464_v6 }
 0x659   :  { %6160 = vmatpush3.bf16.msra.mxu1 %v10673_v24 }
 0x65a   :  { %6165 = vmatprep.subr.bf16.mxu1 %v10464_v6 }
 0x65c   :  { %6162 = vmatmul.mubr.bf16.vlgmr.msra.gmra.mrb[0].mxu1 %v3304_v13 }
 0x65d   :  { %6166 = vmatpush3.bf16.msra.mxu1 %v10674_v20  ;;  %6181 = vmatprep.mubr.msk.bf16.mxu1 %vm6827_vm0, %v10464_v6 }
 0x65e   :  { %6167 = vmatprep.subr.bf16.mxu1 %v10464_v6 }
 0x661   :  { %6168 = vmatpush3.bf16.msra.mxu1 %v10675_v23 }
 0x662   :  { %6169 = vmatprep.subr.bf16.mxu1 %v10464_v6 }
 0x665   :  { %6170 = vmatpush3.bf16.msra.mxu1 %v10676_v7 }
 0x666   :  { %6171 = vmatprep.subr.bf16.mxu1 %v10464_v6 }
 0x669   :  { %6172 = vmatpush3.bf16.msra.mxu1 %v10677_v4 }
 0x66a   :  { %6173 = vmatprep.subr.bf16.mxu1 %v10464_v6 }
 0x66d   :  { %6174 = vmatpush3.bf16.msra.mxu1 %v10678_v11 }
 0x66e   :  { %6175 = vmatprep.subr.bf16.mxu1 %v10464_v6 }
 0x671   :  { %6176 = vmatpush3.bf16.msra.mxu1 %v10679_v12 }
 0x672   :  { %6177 = vmatprep.subr.bf16.mxu1 %v10464_v6 }
 0x675   :  { %6178 = vmatpush3.bf16.msra.mxu1 %v10680_v18 }
 0x676   :  { %6179 = vmatprep.subr.bf16.mxu1 %v10464_v6 }
 0x679   :  { %6180 = vmatpush3.bf16.msra.mxu1 %v10681_v8 }
 0x67a   :  { %6185 = vmatprep.subr.bf16.mxu1 %v10464_v6 }
 0x67c   :  { %6182 = vmatmul.mubr.bf16.vlgmr.msra.gmra.mrb[0].mxu1 %v10682_v9 }
 0x67d   :  { %6186 = vmatpush3.bf16.msra.mxu1 %v10683_v10  ;;  %6201 = vmatprep.mubr.msk.bf16.mxu1 %vm6827_vm0, %v10464_v6 }
 0x67e   :  { %6187 = vmatprep.subr.bf16.mxu1 %v10464_v6 }
 0x681   :  { %6188 = vmatpush3.bf16.msra.mxu1 %v10684_v19 }
 0x682   :  { %6189 = vmatprep.subr.bf16.mxu1 %v10464_v6 }
 0x685   :  { %6190 = vmatpush3.bf16.msra.mxu1 %v10685_v21 }
 0x686   :  { %6191 = vmatprep.subr.bf16.mxu1 %v10464_v6 }
 0x689   :  { %6192 = vmatpush3.bf16.msra.mxu1 %v10686_v15 }
 0x68a   :  { %6193 = vmatprep.subr.bf16.mxu1 %v10464_v6 }
 0x68d   :  { %6194 = vmatpush3.bf16.msra.mxu1 %v10687_v17 }
 0x68e   :  { %6195 = vmatprep.subr.bf16.mxu1 %v10464_v6 }
 0x691   :  { %6196 = vmatpush3.bf16.msra.mxu1 %v10688_v16 }
 0x692   :  { %6197 = vmatprep.subr.bf16.mxu1 %v10464_v6 }
 0x695   :  { %6198 = vmatpush3.bf16.msra.mxu1 %v10689_v14 }
 0x696   :  { %6199 = vmatprep.subr.bf16.mxu1 %v10464_v6 }
 0x699   :  { %6200 = vmatpush3.bf16.msra.mxu1 %v10690_v25 }
 0x69a   :  { %6205 = vmatprep.subr.bf16.mxu1 %v10464_v6 }
 0x69c   :  { %6202 = vmatmul.mubr.bf16.vlgmr.msra.gmra.mrb[0].mxu1 %v3407_v33 }
 0x69d   :  { %6206 = vmatpush3.bf16.msra.mxu1 %v10691_v26  ;;  %6221 = vmatprep.mubr.msk.bf16.mxu1 %vm6827_vm0, %v10464_v6 }
 0x69e   :  { %6207 = vmatprep.subr.bf16.mxu1 %v10464_v6 }
 0x6a1   :  { %6208 = vmatpush3.bf16.msra.mxu1 %v10692_v27 }
 0x6a2   :  { %6209 = vmatprep.subr.bf16.mxu1 %v10464_v6 }
 0x6a5   :  { %6210 = vmatpush3.bf16.msra.mxu1 %v10693_v28 }
 0x6a6   :  { %6211 = vmatprep.subr.bf16.mxu1 %v10464_v6 }
 0x6a9   :  { %6212 = vmatpush3.bf16.msra.mxu1 %v10694_v29 }
 0x6aa   :  { %6213 = vmatprep.subr.bf16.mxu1 %v10464_v6 }
 0x6ad   :  { %6214 = vmatpush3.bf16.msra.mxu1 %v10695_v30 }
 0x6ae   :  { %6215 = vmatprep.subr.bf16.mxu1 %v10464_v6 }
 0x6b1   :  { %6216 = vmatpush3.bf16.msra.mxu1 %v10696_v31 }
 0x6b2   :  { %6217 = vmatprep.subr.bf16.mxu1 %v10464_v6 }
 0x6b5   :  { %6218 = vmatpush3.bf16.msra.mxu1 %v10697_v32 }
 0x6b6   :  { %6219 = vmatprep.subr.bf16.mxu1 %v10464_v6 }
 0x6b9   :  { %6220 = vmatpush3.bf16.msra.mxu1 %v10698_v34 }
 0x6ba   :  { %6225 = vmatprep.subr.bf16.mxu1 %v10464_v6 }
 0x6bc   :  { %6222 = vmatmul.mubr.bf16.vlgmr.msra.gmra.mrb[0].mxu1 %v10699_v35 }
 0x6bd   :  { %6226 = vmatpush3.bf16.msra.mxu1 %v10700_v36  ;;  %6241 = vmatprep.mubr.msk.bf16.mxu1 %vm6827_vm0, %v10464_v6 }
 0x6be   :  { %6227 = vmatprep.subr.bf16.mxu1 %v10464_v6 }
 0x6c1   :  { %6228 = vmatpush3.bf16.msra.mxu1 %v10701_v37 }
 0x6c2   :  { %6229 = vmatprep.subr.bf16.mxu1 %v10464_v6 }
 0x6c5   :  { %6230 = vmatpush3.bf16.msra.mxu1 %v10702_v38 }
 0x6c6   :  { %6231 = vmatprep.subr.bf16.mxu1 %v10464_v6 }
 0x6c9   :  { %6232 = vmatpush3.bf16.msra.mxu1 %v10703_v39 }
 0x6ca   :  { %6233 = vmatprep.subr.bf16.mxu1 %v10464_v6 }
 0x6cd   :  { %6234 = vmatpush3.bf16.msra.mxu1 %v10704_v40 }
 0x6ce   :  { %6235 = vmatprep.subr.bf16.mxu1 %v10464_v6 }
 0x6d1   :  { %6236 = vmatpush3.bf16.msra.mxu1 %v10705_v41 }
 0x6d2   :  { %6237 = vmatprep.subr.bf16.mxu1 %v10464_v6 }
 0x6d5   :  { %6238 = vmatpush3.bf16.msra.mxu1 %v10706_v42 }
 0x6d6   :  { %6239 = vmatprep.subr.bf16.mxu1 %v10464_v6 }
 0x6d9   :  { %6240 = vmatpush3.bf16.msra.mxu1 %v10707_v44 }
 0x6da   :  { %6245 = vmatprep.subr.bf16.mxu1 %v10464_v6 }
 0x6dc   :  { %6242 = vmatmul.mubr.bf16.vlgmr.msra.gmra.mrb[0].mxu1 %v3510_v43 }
 0x6dd   :  { %6246 = vmatpush3.bf16.msra.mxu1 %v10708_v45  ;;  %6261 = vmatprep.mubr.msk.bf16.mxu1 %vm6827_vm0, %v10464_v6 }
 0x6de   :  { %6247 = vmatprep.subr.bf16.mxu1 %v10464_v6 }
 0x6e1   :  { %6248 = vmatpush3.bf16.msra.mxu1 %v10709_v46 }
 0x6e2   :  { %6249 = vmatprep.subr.bf16.mxu1 %v10464_v6 }
 0x6e5   :  { %6250 = vmatpush3.bf16.msra.mxu1 %v10710_v47 }
 0x6e6   :  { %6251 = vmatprep.subr.bf16.mxu1 %v10464_v6 }
 0x6e9   :  { %6252 = vmatpush3.bf16.msra.mxu1 %v10711_v49 }
 0x6ea   :  { %6253 = vmatprep.subr.bf16.mxu1 %v10464_v6 }
 0x6ed   :  { %6254 = vmatpush3.bf16.msra.mxu1 %v10712_v50 }
 0x6ee   :  { %6255 = vmatprep.subr.bf16.mxu1 %v10464_v6 }
 0x6f1   :  { %6256 = vmatpush3.bf16.msra.mxu1 %v10713_v51 }
 0x6f2   :  { %6257 = vmatprep.subr.bf16.mxu1 %v10464_v6 }
 0x6f5   :  { %6258 = vmatpush3.bf16.msra.mxu1 %v10714_v52 }
 0x6f6   :  { %6259 = vmatprep.subr.bf16.mxu1 %v10464_v6 }
 0x6f9   :  { %6260 = vmatpush3.bf16.msra.mxu1 %v10715_v53 }
 0x6fa   :  { %6265 = vmatprep.subr.bf16.mxu1 %v10464_v6 }
 0x6fc   :  { %6262 = vmatmul.mubr.bf16.vlgmr.msra.gmra.mrb[0].mxu1 %v10716_v54 }
 0x6fd   :  { %6281 = vmatprep.mubr.msk.bf16.mxu1 %vm6827_vm0, %v10464_v6 }
 0x6fe   :  { %6820 = dma.done.wait [#allocation4 + $0x5], 7168 }
 0x6ff   :  { %6821 = vsyncadd [#allocation4 + $0x5], 4294960128  ;;  %v10717_v55 = vld [vmem:[#allocation261_spill] sm:$0xff]  ;;  %v10718_v56 = vld [vmem:[#allocation262_spill] sm:$0xff]  ;;  %v3614_v62 = vrot.slane %v10716_v54, 4 }
 0x700   :  { %6266 = vmatpush3.bf16.msra.mxu1 %v10717_v55  ;;  %v10719_v57 = vld [vmem:[#allocation263_spill] sm:$0xff]  ;;  %v10720_v58 = vld [vmem:[#allocation264_spill] sm:$0xff]  ;;  %v10721_v59 = vld [vmem:[#allocation265_spill] sm:$0xff] }
 0x701   :  { %6267 = vmatprep.subr.bf16.mxu1 %v10464_v6  ;;  %v10722_v60 = vld [vmem:[#allocation266_spill] sm:$0xff]  ;;  %v10723_v61 = vld [vmem:[#allocation267_spill] sm:$0xff]  ;;  %v10724_v63 = vld [vmem:[#allocation268_spill] sm:$0xff] }
 0x702   :  { %v10725_v0 = vld [vmem:[#allocation269_spill] sm:$0xff]  ;;  %v10726_v1 = vld [vmem:[#allocation270_spill] sm:$0xff]  ;;  %v10727_v2 = vld [vmem:[#allocation271_spill] sm:$0xff] }
 0x703   :  { %v10728_v3 = vld [vmem:[#allocation272_spill] sm:$0xff]  ;;  %v10729_v13 = vld [vmem:[#allocation273_spill] sm:$0xff]  ;;  %v10730_v24 = vld [vmem:[#allocation274_spill] sm:$0xff] }
 0x704   :  { %6268 = vmatpush3.bf16.msra.mxu1 %v10718_v56  ;;  %v10731_v20 = vld [vmem:[#allocation275_spill] sm:$0xff]  ;;  %v10732_v23 = vld [vmem:[#allocation276_spill] sm:$0xff]  ;;  %v10734_v4 = vld [vmem:[#allocation277_spill] sm:$0xff] }
 0x705   :  { %6269 = vmatprep.subr.bf16.mxu1 %v10464_v6  ;;  %v10733_v7 = vld [vmem:[#allocation388_spill] sm:$0xff]  ;;  %v10735_v11 = vld [vmem:[#allocation278_spill] sm:$0xff]  ;;  %v10736_v12 = vld [vmem:[#allocation279_spill] sm:$0xff] }
 0x706   :  { %v10737_v18 = vld [vmem:[#allocation280_spill] sm:$0xff]  ;;  %v10738_v8 = vld [vmem:[#allocation281_spill] sm:$0xff]  ;;  %v10739_v9 = vld [vmem:[#allocation282_spill] sm:$0xff]  ;;  %v3717_v19 = vrot.slane %v10733_v7, 4 }
 0x707   :  { %v10740_v10 = vld [vmem:[#allocation283_spill] sm:$0xff]  ;;  %v10741_v21 = vld [vmem:[#allocation284_spill] sm:$0xff]  ;;  %v10742_v15 = vld [vmem:[#allocation285_spill] sm:$0xff] }
 0x708   :  { %6270 = vmatpush3.bf16.msra.mxu1 %v10719_v57  ;;  %v10743_v17 = vld [vmem:[#allocation286_spill] sm:$0xff]  ;;  %v10744_v16 = vld [vmem:[#allocation287_spill] sm:$0xff]  ;;  %v10745_v14 = vld [vmem:[#allocation288_spill] sm:$0xff] }
 0x709   :  { %6271 = vmatprep.subr.bf16.mxu1 %v10464_v6  ;;  %v10746_v33 = vld [vmem:[#allocation289_spill] sm:$0xff]  ;;  %v10747_v25 = vld [vmem:[#allocation290_spill] sm:$0xff]  ;;  %v10748_v26 = vld [vmem:[#allocation291_spill] sm:$0xff] }
 0x70a   :  { %v10749_v27 = vld [vmem:[#allocation292_spill] sm:$0xff]  ;;  %v10750_v28 = vld [vmem:[#allocation389_spill] sm:$0xff]  ;;  %v10752_v30 = vld [vmem:[#allocation294_spill] sm:$0xff] }
 0x70b   :  { %v10751_v29 = vld [vmem:[#allocation293_spill] sm:$0xff]  ;;  %v10753_v31 = vld [vmem:[#allocation295_spill] sm:$0xff]  ;;  %v10754_v32 = vld [vmem:[#allocation296_spill] sm:$0xff]  ;;  %v3820_v37 = vrot.slane %v10750_v28, 4 }
 0x70c   :  { %6272 = vmatpush3.bf16.msra.mxu1 %v10720_v58  ;;  %v10755_v34 = vld [vmem:[#allocation297_spill] sm:$0xff]  ;;  %v10756_v35 = vld [vmem:[#allocation298_spill] sm:$0xff]  ;;  %v10757_v36 = vld [vmem:[#allocation299_spill] sm:$0xff] }
 0x70d   :  { %6273 = vmatprep.subr.bf16.mxu1 %v10464_v6  ;;  %v10758_v38 = vld [vmem:[#allocation300_spill] sm:$0xff]  ;;  %v10759_v39 = vld [vmem:[#allocation301_spill] sm:$0xff]  ;;  %v10760_v40 = vld [vmem:[#allocation302_spill] sm:$0xff] }
 0x70e   :  { %v10761_v41 = vld [vmem:[#allocation303_spill] sm:$0xff]  ;;  %v10762_v42 = vld [vmem:[#allocation304_spill] sm:$0xff]  ;;  %v10763_v43 = vld [vmem:[#allocation305_spill] sm:$0xff] }
 0x70f   :  { %v10764_v44 = vld [vmem:[#allocation306_spill] sm:$0xff]  ;;  %v10765_v45 = vld [vmem:[#allocation307_spill] sm:$0xff]  ;;  %v10766_v46 = vld [vmem:[#allocation308_spill] sm:$0xff] }
 0x710   :  { %6274 = vmatpush3.bf16.msra.mxu1 %v10721_v59  ;;  %v10767_v47 = vld [vmem:[#allocation390_spill] sm:$0xff]  ;;  %v10768_v49 = vld [vmem:[#allocation309_spill] sm:$0xff]  ;;  %v10770_v51 = vld [vmem:[#allocation311_spill] sm:$0xff] }
 0x711   :  { %6275 = vmatprep.subr.bf16.mxu1 %v10464_v6  ;;  %v10769_v50 = vld [vmem:[#allocation310_spill] sm:$0xff]  ;;  %v10771_v52 = vld [vmem:[#allocation312_spill] sm:$0xff]  ;;  %v10772_v53 = vld [vmem:[#allocation313_spill] sm:$0xff]  ;;  %v3923_v56 = vrot.slane %v10767_v47, 4 }
 0x712   :  { %v10773_v54 = vld [vmem:[#allocation314_spill] sm:$0xff]  ;;  %v10774_v55 = vld [vmem:[#allocation315_spill] sm:$0xff]  ;;  %v10775_v57 = vld [vmem:[#allocation316_spill] sm:$0xff] }
 0x714   :  { %6276 = vmatpush3.bf16.msra.mxu1 %v10722_v60 }
 0x715   :  { %6277 = vmatprep.subr.bf16.mxu1 %v10464_v6 }
 0x718   :  { %6278 = vmatpush3.bf16.msra.mxu1 %v10723_v61 }
 0x719   :  { %6279 = vmatprep.subr.bf16.mxu1 %v10464_v6 }
 0x71c   :  { %6280 = vmatpush3.bf16.msra.mxu1 %v10724_v63 }
 0x71d   :  { %6285 = vmatprep.subr.bf16.mxu1 %v10464_v6 }
 0x71f   :  { %6282 = vmatmul.mubr.bf16.vlgmr.msra.gmra.mrb[0].mxu1 %v3614_v62 }
 0x720   :  { %6286 = vmatpush3.bf16.msra.mxu1 %v10725_v0  ;;  %6301 = vmatprep.mubr.msk.bf16.mxu1 %vm6827_vm0, %v10464_v6 }
 0x721   :  { %6287 = vmatprep.subr.bf16.mxu1 %v10464_v6 }
 0x724   :  { %6288 = vmatpush3.bf16.msra.mxu1 %v10726_v1 }
 0x725   :  { %6289 = vmatprep.subr.bf16.mxu1 %v10464_v6 }
 0x728   :  { %6290 = vmatpush3.bf16.msra.mxu1 %v10727_v2 }
 0x729   :  { %6291 = vmatprep.subr.bf16.mxu1 %v10464_v6 }
 0x72c   :  { %6292 = vmatpush3.bf16.msra.mxu1 %v10728_v3 }
 0x72d   :  { %6293 = vmatprep.subr.bf16.mxu1 %v10464_v6 }
 0x730   :  { %6294 = vmatpush3.bf16.msra.mxu1 %v10729_v13 }
 0x731   :  { %6295 = vmatprep.subr.bf16.mxu1 %v10464_v6 }
 0x734   :  { %6296 = vmatpush3.bf16.msra.mxu1 %v10730_v24 }
 0x735   :  { %6297 = vmatprep.subr.bf16.mxu1 %v10464_v6 }
 0x738   :  { %6298 = vmatpush3.bf16.msra.mxu1 %v10731_v20 }
 0x739   :  { %6299 = vmatprep.subr.bf16.mxu1 %v10464_v6 }
 0x73c   :  { %6300 = vmatpush3.bf16.msra.mxu1 %v10732_v23 }
 0x73d   :  { %6305 = vmatprep.subr.bf16.mxu1 %v10464_v6 }
 0x73f   :  { %6302 = vmatmul.mubr.bf16.vlgmr.msra.gmra.mrb[0].mxu1 %v10733_v7 }
 0x740   :  { %6306 = vmatpush3.bf16.msra.mxu1 %v10734_v4  ;;  %6321 = vmatprep.mubr.msk.bf16.mxu1 %vm6827_vm0, %v10464_v6 }
 0x741   :  { %6307 = vmatprep.subr.bf16.mxu1 %v10464_v6 }
 0x744   :  { %6308 = vmatpush3.bf16.msra.mxu1 %v10735_v11 }
 0x745   :  { %6309 = vmatprep.subr.bf16.mxu1 %v10464_v6 }
 0x748   :  { %6310 = vmatpush3.bf16.msra.mxu1 %v10736_v12 }
 0x749   :  { %6311 = vmatprep.subr.bf16.mxu1 %v10464_v6 }
 0x74c   :  { %6312 = vmatpush3.bf16.msra.mxu1 %v10737_v18 }
 0x74d   :  { %6313 = vmatprep.subr.bf16.mxu1 %v10464_v6 }
 0x750   :  { %6314 = vmatpush3.bf16.msra.mxu1 %v10738_v8 }
 0x751   :  { %6315 = vmatprep.subr.bf16.mxu1 %v10464_v6 }
 0x754   :  { %6316 = vmatpush3.bf16.msra.mxu1 %v10739_v9 }
 0x755   :  { %6317 = vmatprep.subr.bf16.mxu1 %v10464_v6 }
 0x758   :  { %6318 = vmatpush3.bf16.msra.mxu1 %v10740_v10 }
 0x759   :  { %6319 = vmatprep.subr.bf16.mxu1 %v10464_v6 }
 0x75c   :  { %6320 = vmatpush3.bf16.msra.mxu1 %v10741_v21 }
 0x75d   :  { %6325 = vmatprep.subr.bf16.mxu1 %v10464_v6 }
 0x75f   :  { %6322 = vmatmul.mubr.bf16.vlgmr.msra.gmra.mrb[0].mxu1 %v3717_v19 }
 0x760   :  { %6326 = vmatpush3.bf16.msra.mxu1 %v10742_v15  ;;  %6341 = vmatprep.mubr.msk.bf16.mxu1 %vm6827_vm0, %v10464_v6 }
 0x761   :  { %6327 = vmatprep.subr.bf16.mxu1 %v10464_v6 }
 0x764   :  { %6328 = vmatpush3.bf16.msra.mxu1 %v10743_v17 }
 0x765   :  { %6329 = vmatprep.subr.bf16.mxu1 %v10464_v6 }
 0x768   :  { %6330 = vmatpush3.bf16.msra.mxu1 %v10744_v16 }
 0x769   :  { %6331 = vmatprep.subr.bf16.mxu1 %v10464_v6 }
 0x76c   :  { %6332 = vmatpush3.bf16.msra.mxu1 %v10745_v14 }
 0x76d   :  { %6333 = vmatprep.subr.bf16.mxu1 %v10464_v6 }
 0x770   :  { %6334 = vmatpush3.bf16.msra.mxu1 %v10746_v33 }
 0x771   :  { %6335 = vmatprep.subr.bf16.mxu1 %v10464_v6 }
 0x774   :  { %6336 = vmatpush3.bf16.msra.mxu1 %v10747_v25 }
 0x775   :  { %6337 = vmatprep.subr.bf16.mxu1 %v10464_v6 }
 0x778   :  { %6338 = vmatpush3.bf16.msra.mxu1 %v10748_v26 }
 0x779   :  { %6339 = vmatprep.subr.bf16.mxu1 %v10464_v6 }
 0x77c   :  { %6340 = vmatpush3.bf16.msra.mxu1 %v10749_v27 }
 0x77d   :  { %6345 = vmatprep.subr.bf16.mxu1 %v10464_v6 }
 0x77f   :  { %6342 = vmatmul.mubr.bf16.vlgmr.msra.gmra.mrb[0].mxu1 %v10750_v28 }
 0x780   :  { %6346 = vmatpush3.bf16.msra.mxu1 %v10751_v29  ;;  %6361 = vmatprep.mubr.msk.bf16.mxu1 %vm6827_vm0, %v10464_v6 }
 0x781   :  { %6347 = vmatprep.subr.bf16.mxu1 %v10464_v6 }
 0x784   :  { %6348 = vmatpush3.bf16.msra.mxu1 %v10752_v30 }
 0x785   :  { %6349 = vmatprep.subr.bf16.mxu1 %v10464_v6 }
 0x788   :  { %6350 = vmatpush3.bf16.msra.mxu1 %v10753_v31 }
 0x789   :  { %6351 = vmatprep.subr.bf16.mxu1 %v10464_v6 }
 0x78c   :  { %6352 = vmatpush3.bf16.msra.mxu1 %v10754_v32 }
 0x78d   :  { %6353 = vmatprep.subr.bf16.mxu1 %v10464_v6 }
 0x790   :  { %6354 = vmatpush3.bf16.msra.mxu1 %v10755_v34 }
 0x791   :  { %6355 = vmatprep.subr.bf16.mxu1 %v10464_v6 }
 0x794   :  { %6356 = vmatpush3.bf16.msra.mxu1 %v10756_v35 }
 0x795   :  { %6357 = vmatprep.subr.bf16.mxu1 %v10464_v6 }
 0x798   :  { %6358 = vmatpush3.bf16.msra.mxu1 %v10757_v36 }
 0x799   :  { %6359 = vmatprep.subr.bf16.mxu1 %v10464_v6 }
 0x79c   :  { %6360 = vmatpush3.bf16.msra.mxu1 %v10758_v38 }
 0x79d   :  { %6365 = vmatprep.subr.bf16.mxu1 %v10464_v6 }
 0x79f   :  { %6362 = vmatmul.mubr.bf16.vlgmr.msra.gmra.mrb[0].mxu1 %v3820_v37 }
 0x7a0   :  { %6366 = vmatpush3.bf16.msra.mxu1 %v10759_v39  ;;  %6381 = vmatprep.mubr.msk.bf16.mxu1 %vm6827_vm0, %v10464_v6 }
 0x7a1   :  { %6367 = vmatprep.subr.bf16.mxu1 %v10464_v6 }
 0x7a4   :  { %6368 = vmatpush3.bf16.msra.mxu1 %v10760_v40 }
 0x7a5   :  { %6369 = vmatprep.subr.bf16.mxu1 %v10464_v6 }
 0x7a8   :  { %6370 = vmatpush3.bf16.msra.mxu1 %v10761_v41 }
 0x7a9   :  { %6371 = vmatprep.subr.bf16.mxu1 %v10464_v6 }
 0x7ac   :  { %6372 = vmatpush3.bf16.msra.mxu1 %v10762_v42 }
 0x7ad   :  { %6373 = vmatprep.subr.bf16.mxu1 %v10464_v6 }
 0x7b0   :  { %6374 = vmatpush3.bf16.msra.mxu1 %v10763_v43 }
 0x7b1   :  { %6375 = vmatprep.subr.bf16.mxu1 %v10464_v6 }
 0x7b4   :  { %6376 = vmatpush3.bf16.msra.mxu1 %v10764_v44 }
 0x7b5   :  { %6377 = vmatprep.subr.bf16.mxu1 %v10464_v6 }
 0x7b8   :  { %6378 = vmatpush3.bf16.msra.mxu1 %v10765_v45 }
 0x7b9   :  { %6379 = vmatprep.subr.bf16.mxu1 %v10464_v6 }
 0x7bc   :  { %6380 = vmatpush3.bf16.msra.mxu1 %v10766_v46 }
 0x7bd   :  { %6385 = vmatprep.subr.bf16.mxu1 %v10464_v6 }
 0x7bf   :  { %6382 = vmatmul.mubr.bf16.vlgmr.msra.gmra.mrb[0].mxu1 %v10767_v47 }
 0x7c0   :  { %6386 = vmatpush3.bf16.msra.mxu1 %v10768_v49  ;;  %6401 = vmatprep.mubr.msk.bf16.mxu1 %vm6827_vm0, %v10464_v6 }
 0x7c1   :  { %6387 = vmatprep.subr.bf16.mxu1 %v10464_v6 }
 0x7c4   :  { %6388 = vmatpush3.bf16.msra.mxu1 %v10769_v50 }
 0x7c5   :  { %6389 = vmatprep.subr.bf16.mxu1 %v10464_v6 }
 0x7c8   :  { %6390 = vmatpush3.bf16.msra.mxu1 %v10770_v51 }
 0x7c9   :  { %6391 = vmatprep.subr.bf16.mxu1 %v10464_v6 }
 0x7cc   :  { %6392 = vmatpush3.bf16.msra.mxu1 %v10771_v52 }
 0x7cd   :  { %6393 = vmatprep.subr.bf16.mxu1 %v10464_v6 }
 0x7d0   :  { %6394 = vmatpush3.bf16.msra.mxu1 %v10772_v53 }
 0x7d1   :  { %6395 = vmatprep.subr.bf16.mxu1 %v10464_v6 }
 0x7d4   :  { %6396 = vmatpush3.bf16.msra.mxu1 %v10773_v54 }
 0x7d5   :  { %6397 = vmatprep.subr.bf16.mxu1 %v10464_v6 }
 0x7d8   :  { %6398 = vmatpush3.bf16.msra.mxu1 %v10774_v55 }
 0x7d9   :  { %6399 = vmatprep.subr.bf16.mxu1 %v10464_v6 }
 0x7dc   :  { %6400 = vmatpush3.bf16.msra.mxu1 %v10775_v57 }
 0x7dd   :  { %6405 = vmatprep.subr.bf16.mxu1 %v10464_v6 }
 0x7df   :  { %6402 = vmatmul.mubr.bf16.vlgmr.msra.gmra.mrb[0].mxu1 %v3923_v56 }
 0x7e0   :  { %6421 = vmatprep.mubr.msk.bf16.mxu1 %vm6827_vm0, %v10464_v6 }
 0x7e1   :  { %6822 = dma.done.wait [#allocation4 + $0x6], 7168 }
 0x7e2   :  { %6823 = vsyncadd [#allocation4 + $0x6], 4294960128  ;;  %v10776_v58 = vld [vmem:[#allocation317_spill] sm:$0xff]  ;;  %v10777_v59 = vld [vmem:[#allocation318_spill] sm:$0xff]  ;;  %v4233_v49 = vrot.slane %v9094_v5, 4  ;;  %s6829_s10 = smov 32  }
 0x7e3   :  { %6406 = vmatpush3.bf16.msra.mxu1 %v10776_v58  ;;  %v10778_v60 = vld [vmem:[#allocation319_spill] sm:$0xff]  ;;  %v10779_v61 = vld [vmem:[#allocation320_spill] sm:$0xff]  ;;  %v10780_v62 = vld [vmem:[#allocation321_spill] sm:$0xff]  ;;  %v6828_v58 = vmov 0.0|0.0   ;;  %s6830_s11 = smov 96   ;;  %s6831_s0 = smov 64  }
 0x7e4   :  { %6407 = vmatprep.subr.bf16.mxu1 %v10464_v6  ;;  %v10781_v63 = vld [vmem:[#allocation322_spill] sm:$0xff]  ;;  %v10782_v0 = vld [vmem:[#allocation323_spill] sm:$0xff]  ;;  %v10783_v1 = vld [vmem:[#allocation324_spill] sm:$0xff]  ;;  %vm4362_vm3 = vcmask 261120   ;;  %s6832_s15 = smov [#allocation5]   ;;  %vm4436_vm4 = vcmask 25600  }
 0x7e5   :  { %v10784_v2 = vld [vmem:[#allocation391_spill] sm:$0xff]  ;;  %v10785_v3 = vld [vmem:[#allocation325_spill] sm:$0xff]  ;;  %v10786_v13 = vld [vmem:[#allocation326_spill] sm:$0xff]  ;;  %s4444_s16 = sshll.u32 %s6832_s15, 4  ;;  %s4445_s16 = int_to_ptr.vmem [resolvable:$true] %s4444_s16 }
 0x7e6   :  { %v10787_v24 = vld [vmem:[#allocation327_spill] sm:$0xff]  ;;  %v10788_v20 = vld [vmem:[#allocation328_spill] sm:$0xff]  ;;  %v10789_v23 = vld [vmem:[#allocation329_spill] sm:$0xff]  ;;  %v4027_v11 = vrot.slane %v10784_v2, 4  ;;  %s6786_s17 = scalar_lea.vmem %s4445_s16, 32  ;;  %p6791_p1 = scmp.lt.s32.totalorder %s4445_s16, %s4445_s16 }
 0x7e7   :  { %6408 = vmatpush3.bf16.msra.mxu1 %v10777_v59  ;;  %v10790_v7 = vld [vmem:[#allocation330_spill] sm:$0xff]  ;;  %v10791_v4 = vld [vmem:[#allocation331_spill] sm:$0xff]  ;;  %v10792_v12 = vld [vmem:[#allocation332_spill] sm:$0xff]  ;;  %p6787_p0 = scmp.ne.s32.totalorder %s4445_s16, %s6786_s17  ;;  %p6792_p2 = scmp.lt.s32.totalorder %s6786_s17, %s6786_s17 }
 0x7e8   :  { %6409 = vmatprep.subr.bf16.mxu1 %v10464_v6  ;;  %v10793_v18 = vld [vmem:[#allocation333_spill] sm:$0xff]  ;;  %v10794_v8 = vld [vmem:[#allocation334_spill] sm:$0xff]  ;;  %v10795_v9 = vld [vmem:[#allocation335_spill] sm:$0xff] }
 0x7e9   :  { %v10796_v10 = vld [vmem:[#allocation336_spill] sm:$0xff]  ;;  %v10797_v19 = vld [vmem:[#allocation337_spill] sm:$0xff]  ;;  %v10798_v21 = vld [vmem:[#allocation338_spill] sm:$0xff]  ;;  %p6793_p3 = por %p6792_p2, %p6791_p1 }
 0x7ea   :  { %v10799_v15 = vld [vmem:[#allocation339_spill] sm:$0xff]  ;;  %v10800_v17 = vld [vmem:[#allocation340_spill] sm:$0xff]  ;;  %v10802_v14 = vld [vmem:[#allocation341_spill] sm:$0xff] }
 0x7eb   :  { %6410 = vmatpush3.bf16.msra.mxu1 %v10778_v60  ;;  %v10801_v16 = vld [vmem:[#allocation392_spill] sm:$0xff]  ;;  %v10803_v33 = vld [vmem:[#allocation342_spill] sm:$0xff]  ;;  %v10804_v25 = vld [vmem:[#allocation343_spill] sm:$0xff]  ;;  %p6794_p4 = pnand %p6793_p3, %p6787_p0 }
 0x7ec   :  { %6411 = vmatprep.subr.bf16.mxu1 %v10464_v6  ;;  %v10805_v26 = vld [vmem:[#allocation344_spill] sm:$0xff]  ;;  %v10806_v27 = vld [vmem:[#allocation345_spill] sm:$0xff]  ;;  %v10807_v28 = vld [vmem:[#allocation346_spill] sm:$0xff]  ;;  %v4130_v30 = vrot.slane %v10801_v16, 4 }
 0x7ed   :  { %v10808_v29 = vld [vmem:[#allocation347_spill] sm:$0xff]  ;;  %v10809_v31 = vld [vmem:[#allocation348_spill] sm:$0xff]  ;;  %v10810_v32 = vld [vmem:[#allocation349_spill] sm:$0xff] }
 0x7ee   :  { %v10811_v34 = vld [vmem:[#allocation350_spill] sm:$0xff]  ;;  %v10812_v35 = vld [vmem:[#allocation351_spill] sm:$0xff]  ;;  %v10813_v36 = vld [vmem:[#allocation352_spill] sm:$0xff] }
 0x7ef   :  { %6412 = vmatpush3.bf16.msra.mxu1 %v10779_v61  ;;  %v10814_v37 = vld [vmem:[#allocation353_spill] sm:$0xff]  ;;  %v10815_v38 = vld [vmem:[#allocation354_spill] sm:$0xff]  ;;  %v10816_v39 = vld [vmem:[#allocation355_spill] sm:$0xff] }
 0x7f0   :  { %6413 = vmatprep.subr.bf16.mxu1 %v10464_v6  ;;  %v10817_v40 = vld [vmem:[#allocation356_spill] sm:$0xff]  ;;  %v10818_v41 = vld [vmem:[#allocation357_spill] sm:$0xff]  ;;  %v10819_v42 = vld [vmem:[#allocation358_spill] sm:$0xff] }
 0x7f1   :  { %v10820_v43 = vld [vmem:[#allocation359_spill] sm:$0xff]  ;;  %v10821_v44 = vld [vmem:[#allocation360_spill] sm:$0xff]  ;;  %v10822_v45 = vld [vmem:[#allocation361_spill] sm:$0xff] }
 0x7f2   :  { %v10823_v46 = vld [vmem:[#allocation362_spill] sm:$0xff]  ;;  %v10824_v47 = vld [vmem:[#allocation363_spill] sm:$0xff]  ;;  %v10825_v50 = vld [vmem:[#allocation364_spill] sm:$0xff] }
 0x7f3   :  { %6414 = vmatpush3.bf16.msra.mxu1 %v10780_v62  ;;  %v10826_v51 = vld [vmem:[#allocation365_spill] sm:$0xff]  ;;  %v10827_v52 = vld [vmem:[#allocation366_spill] sm:$0xff]  ;;  %v10828_v53 = vld [vmem:[#allocation367_spill] sm:$0xff] }
 0x7f4   :  { %6415 = vmatprep.subr.bf16.mxu1 %v10464_v6  ;;  %v10830_v54 = vld [vmem:[#allocation369_spill] sm:$0xff]  ;;  %v10831_v55 = vld [vmem:[#allocation370_spill] sm:$0xff]  ;;  %v10832_v56 = vld [vmem:[#allocation371_spill] sm:$0xff] }
 0x7f5   :  { %v10833_v57 = vld [vmem:[#allocation372_spill] sm:$0xff] }
 0x7f6   :  { %v4351_v59 = vld [vmem:[%s10070_s5] sm:$0xff]  ;;  %v4352_v60 = vld [vmem:[%s10070_s5 + $0x8] sm:$0xff] }
 0x7f7   :  { %6416 = vmatpush3.bf16.msra.mxu1 %v10781_v63  ;;  %v6557_v61 = vpack.c.bf16 %v4352_v60, %v4351_v59 }
 0x7f8   :  { %6417 = vmatprep.subr.bf16.mxu1 %v10464_v6 }
 0x7fb   :  { %6418 = vmatpush3.bf16.msra.mxu1 %v10782_v0 }
 0x7fc   :  { %6419 = vmatprep.subr.bf16.mxu1 %v10464_v6 }
 0x7ff   :  { %6420 = vmatpush3.bf16.msra.mxu1 %v10783_v1 }
 0x800   :  { %6425 = vmatprep.subr.bf16.mxu1 %v10464_v6 }
 0x802   :  { %6422 = vmatmul.mubr.bf16.vlgmr.msra.gmra.mrb[0].mxu1 %v10784_v2 }
 0x803   :  { %6426 = vmatpush3.bf16.msra.mxu1 %v10785_v3  ;;  %6441 = vmatprep.mubr.msk.bf16.mxu1 %vm6827_vm0, %v10464_v6 }
 0x804   :  { %6427 = vmatprep.subr.bf16.mxu1 %v10464_v6 }
 0x807   :  { %6428 = vmatpush3.bf16.msra.mxu1 %v10786_v13 }
 0x808   :  { %6429 = vmatprep.subr.bf16.mxu1 %v10464_v6 }
 0x80b   :  { %6430 = vmatpush3.bf16.msra.mxu1 %v10787_v24 }
 0x80c   :  { %6431 = vmatprep.subr.bf16.mxu1 %v10464_v6 }
 0x80f   :  { %6432 = vmatpush3.bf16.msra.mxu1 %v10788_v20 }
 0x810   :  { %6433 = vmatprep.subr.bf16.mxu1 %v10464_v6 }
 0x813   :  { %6434 = vmatpush3.bf16.msra.mxu1 %v10789_v23 }
 0x814   :  { %6435 = vmatprep.subr.bf16.mxu1 %v10464_v6 }
 0x817   :  { %6436 = vmatpush3.bf16.msra.mxu1 %v10790_v7 }
 0x818   :  { %6437 = vmatprep.subr.bf16.mxu1 %v10464_v6 }
 0x81b   :  { %6438 = vmatpush3.bf16.msra.mxu1 %v10791_v4 }
 0x81c   :  { %6439 = vmatprep.subr.bf16.mxu1 %v10464_v6 }
 0x81f   :  { %6440 = vmatpush3.bf16.msra.mxu1 %v10792_v12 }
 0x820   :  { %6445 = vmatprep.subr.bf16.mxu1 %v10464_v6 }
 0x822   :  { %6442 = vmatmul.mubr.bf16.vlgmr.msra.gmra.mrb[0].mxu1 %v4027_v11 }
 0x823   :  { %6446 = vmatpush3.bf16.msra.mxu1 %v10793_v18  ;;  %6461 = vmatprep.mubr.msk.bf16.mxu1 %vm6827_vm0, %v10464_v6 }
 0x824   :  { %6447 = vmatprep.subr.bf16.mxu1 %v10464_v6 }
 0x827   :  { %6448 = vmatpush3.bf16.msra.mxu1 %v10794_v8 }
 0x828   :  { %6449 = vmatprep.subr.bf16.mxu1 %v10464_v6 }
 0x82b   :  { %6450 = vmatpush3.bf16.msra.mxu1 %v10795_v9 }
 0x82c   :  { %6451 = vmatprep.subr.bf16.mxu1 %v10464_v6 }
 0x82f   :  { %6452 = vmatpush3.bf16.msra.mxu1 %v10796_v10  ;;  %v4975_v10 = vld [vmem:[%s10071_s6] ss:$0 sm:$0xff] }
 0x830   :  { %6453 = vmatprep.subr.bf16.mxu1 %v10464_v6 }
 0x833   :  { %6454 = vmatpush3.bf16.msra.mxu1 %v10797_v19 }
 0x834   :  { %6455 = vmatprep.subr.bf16.mxu1 %v10464_v6 }
 0x837   :  { %6456 = vmatpush3.bf16.msra.mxu1 %v10798_v21 }
 0x838   :  { %6457 = vmatprep.subr.bf16.mxu1 %v10464_v6 }
 0x83b   :  { %6458 = vmatpush3.bf16.msra.mxu1 %v10799_v15 }
 0x83c   :  { %6459 = vmatprep.subr.bf16.mxu1 %v10464_v6 }
 0x83f   :  { %6460 = vmatpush3.bf16.msra.mxu1 %v10800_v17 }
 0x840   :  { %6465 = vmatprep.subr.bf16.mxu1 %v10464_v6 }
 0x842   :  { %6462 = vmatmul.mubr.bf16.vlgmr.msra.gmra.mrb[0].mxu1 %v10801_v16 }
 0x843   :  { %6466 = vmatpush3.bf16.msra.mxu1 %v10802_v14  ;;  %6481 = vmatprep.mubr.msk.bf16.mxu1 %vm6827_vm0, %v10464_v6 }
 0x844   :  { %6467 = vmatprep.subr.bf16.mxu1 %v10464_v6 }
 0x847   :  { %6468 = vmatpush3.bf16.msra.mxu1 %v10803_v33 }
 0x848   :  { %6469 = vmatprep.subr.bf16.mxu1 %v10464_v6 }
 0x84b   :  { %6470 = vmatpush3.bf16.msra.mxu1 %v10804_v25 }
 0x84c   :  { %6471 = vmatprep.subr.bf16.mxu1 %v10464_v6 }
 0x84f   :  { %6472 = vmatpush3.bf16.msra.mxu1 %v10805_v26 }
 0x850   :  { %6473 = vmatprep.subr.bf16.mxu1 %v10464_v6 }
 0x853   :  { %6474 = vmatpush3.bf16.msra.mxu1 %v10806_v27 }
 0x854   :  { %6475 = vmatprep.subr.bf16.mxu1 %v10464_v6 }
 0x857   :  { %6476 = vmatpush3.bf16.msra.mxu1 %v10807_v28 }
 0x858   :  { %6477 = vmatprep.subr.bf16.mxu1 %v10464_v6 }
 0x85b   :  { %6478 = vmatpush3.bf16.msra.mxu1 %v10808_v29 }
 0x85c   :  { %6479 = vmatprep.subr.bf16.mxu1 %v10464_v6 }
 0x85f   :  { %6480 = vmatpush3.bf16.msra.mxu1 %v10809_v31 }
 0x860   :  { %6485 = vmatprep.subr.bf16.mxu1 %v10464_v6 }
 0x862   :  { %6482 = vmatmul.mubr.bf16.vlgmr.msra.gmra.mrb[0].mxu1 %v4130_v30 }
 0x863   :  { %6486 = vmatpush3.bf16.msra.mxu1 %v10810_v32  ;;  %6501 = vmatprep.mubr.msk.bf16.mxu1 %vm6827_vm0, %v10464_v6 }
 0x864   :  { %6487 = vmatprep.subr.bf16.mxu1 %v10464_v6 }
 0x867   :  { %6488 = vmatpush3.bf16.msra.mxu1 %v10811_v34 }
 0x868   :  { %6489 = vmatprep.subr.bf16.mxu1 %v10464_v6 }
 0x86b   :  { %6490 = vmatpush3.bf16.msra.mxu1 %v10812_v35 }
 0x86c   :  { %6491 = vmatprep.subr.bf16.mxu1 %v10464_v6 }
 0x86f   :  { %6492 = vmatpush3.bf16.msra.mxu1 %v10813_v36 }
 0x870   :  { %6493 = vmatprep.subr.bf16.mxu1 %v10464_v6 }
 0x873   :  { %6494 = vmatpush3.bf16.msra.mxu1 %v10814_v37 }
 0x874   :  { %6495 = vmatprep.subr.bf16.mxu1 %v10464_v6 }
 0x877   :  { %6496 = vmatpush3.bf16.msra.mxu1 %v10815_v38 }
 0x878   :  { %6497 = vmatprep.subr.bf16.mxu1 %v10464_v6 }
 0x87b   :  { %6498 = vmatpush3.bf16.msra.mxu1 %v10816_v39 }
 0x87c   :  { %6499 = vmatprep.subr.bf16.mxu1 %v10464_v6 }
 0x87f   :  { %6500 = vmatpush3.bf16.msra.mxu1 %v10817_v40 }
 0x880   :  { %6505 = vmatprep.subr.bf16.mxu1 %v10464_v6 }
 0x882   :  { %6502 = vmatmul.mubr.bf16.vlgmr.msra.gmra.mrb[0].mxu1 %v9094_v5  ;;  %v10829_v5 = vld [vmem:[#allocation368_spill] sm:$0xff] }
 0x883   :  { %6506 = vmatpush3.bf16.msra.mxu1 %v10818_v41  ;;  %6521 = vmatprep.mubr.msk.bf16.mxu1 %vm6827_vm0, %v10464_v6 }
 0x884   :  { %6507 = vmatprep.subr.bf16.mxu1 %v10464_v6 }
 0x887   :  { %6508 = vmatpush3.bf16.msra.mxu1 %v10819_v42 }
 0x888   :  { %6509 = vmatprep.subr.bf16.mxu1 %v10464_v6 }
 0x88b   :  { %6510 = vmatpush3.bf16.msra.mxu1 %v10820_v43 }
 0x88c   :  { %6511 = vmatprep.subr.bf16.mxu1 %v10464_v6 }
 0x88f   :  { %6512 = vmatpush3.bf16.msra.mxu1 %v10821_v44 }
 0x890   :  { %6513 = vmatprep.subr.bf16.mxu1 %v10464_v6 }
 0x893   :  { %6514 = vmatpush3.bf16.msra.mxu1 %v10822_v45 }
 0x894   :  { %6515 = vmatprep.subr.bf16.mxu1 %v10464_v6 }
 0x897   :  { %6516 = vmatpush3.bf16.msra.mxu1 %v10823_v46 }
 0x898   :  { %6517 = vmatprep.subr.bf16.mxu1 %v10464_v6 }
 0x89b   :  { %6518 = vmatpush3.bf16.msra.mxu1 %v10824_v47 }
 0x89c   :  { %6519 = vmatprep.subr.bf16.mxu1 %v10464_v6 }
 0x89f   :  { %6520 = vmatpush3.bf16.msra.mxu1 %v10825_v50 }
 0x8a0   :  { %6525 = vmatprep.subr.bf16.mxu1 %v10464_v6 }
 0x8a2   :  { %6522 = vmatmul.mubr.bf16.vlgmr.msra.gmra.mrb[0].mxu1 %v4233_v49 }
 0x8a3   :  { %6526 = vmatpush3.bf16.msra.mxu1 %v10826_v51  ;;  %6541 = vmatprep.mubr.msk.bf16.mxu1 %vm6827_vm0, %v10464_v6 }
 0x8a4   :  { %6527 = vmatprep.subr.bf16.mxu1 %v10464_v6 }
 0x8a7   :  { %6528 = vmatpush3.bf16.msra.mxu1 %v10827_v52 }
 0x8a8   :  { %6529 = vmatprep.subr.bf16.mxu1 %v10464_v6 }
 0x8ab   :  { %6530 = vmatpush3.bf16.msra.mxu1 %v10828_v53 }
 0x8ac   :  { %6531 = vmatprep.subr.bf16.mxu1 %v10464_v6 }
 0x8af   :  { %6532 = vmatpush3.bf16.msra.mxu1 %v10829_v5 }
 0x8b0   :  { %6533 = vmatprep.subr.bf16.mxu1 %v10464_v6 }
 0x8b3   :  { %6534 = vmatpush3.bf16.msra.mxu1 %v10830_v54 }
 0x8b4   :  { %6535 = vmatprep.subr.bf16.mxu1 %v10464_v6 }
 0x8b7   :  { %6536 = vmatpush3.bf16.msra.mxu1 %v10831_v55 }
 0x8b8   :  { %6537 = vmatprep.subr.bf16.mxu1 %v10464_v6 }
 0x8bb   :  { %6538 = vmatpush3.bf16.msra.mxu1 %v10832_v56 }
 0x8bc   :  { %6539 = vmatprep.subr.bf16.mxu1 %v10464_v6 }
 0x8bf   :  { %6540 = vmatpush3.bf16.msra.mxu1 %v10833_v57 }
 0x8c0   :  { %6556 = vmatprep.subr.bf16.mxu1 %v6828_v58 }
 0x8c2   :  { %6542 = vmatmul.mubr.bf16.vlgmr.msra.gmra.mrb[0].mxu1 %v9097_v22  ;;  %v4353_v22 = vld [vmem:[%s10070_s5 + $0x10] sm:$0xff] }
 0x8c3   :  { %6553 = vmatprep.mubr.msk.f32.mxu1 %vm6827_vm0, %v10464_v6  ;;  %6558 = vmatpush3.bf16.msra.mxu1 %v6557_v61  ;;  %v4354_v6 = vld [vmem:[%s10070_s5 + $0x18] sm:$0xff] }
 0x8c4   :  { %6559 = vmatprep.subr.bf16.mxu1 %v6828_v58  ;;  %v6560_v62 = vpack.c.bf16 %v4354_v6, %v4353_v22 }
 0x8c7   :  { %6561 = vmatpush3.bf16.msra.mxu1 %v6560_v62 }
 0x995   :  { %v4319_v63 = vpop.f32.mrb[0].mxu1 }
 0x996   :  { %v6562_v0 = vadd.f32 %v4319_v63, %v9631_v48  ;;  %v6543_v1 = vpop.f32.mrb[1].mxu1  ;;  %v4974_v48 = vld [vmem:[%s10069_s4] ss:$0 sm:$0xff] }
 0x997   :  { %v4322_v2 = vpop.f32.mrb[2].mxu1 }
 0x998   :  { %v6544_v3 = vpop.f32.mrb[3].mxu1  ;;  %v4337_v13 = vrot.slane %v6562_v0, 6  ;;  %v4327_v24 = vrot.slane %v6562_v0, 2  ;;  %v4332_v20 = vrot.slane %v6562_v0, 4 }
 0x99a   :  { %4338 = vrot.lane.b32.xlu1 %v4337_v13, %s6829_s10  ;;  %4328 = vrot.lane.b32.xlu0 %v4327_v24, %s6830_s11 }
 0x99e   :  { %4333 = vrot.lane.b32.xlu0 %v4332_v20, %s6831_s0 }
 0xa0c   :  { %v4329_v23 = vpop.permute.xlu0 %4328  ;;  %v4339_v12 = vpop.permute.xlu1 %4338 }
 0xa0d   :  { %v4331_v7 = vadd.f32 %v6562_v0, %v4329_v23 }
 0xa10   :  { %v4334_v4 = vpop.permute.xlu0 %4333 }
 0xa11   :  { %v4336_v11 = vadd.f32 %v4334_v4, %v4331_v7 }
 0xa13   :  { %v4341_v18 = vadd.f32 %v4339_v12, %v4336_v11 }
 0xa15   :  { %v4349_v8 = vadd.f32 %v4974_v48, %v4341_v18 }
 0xa17   :  { %v4350_v9 = vmax.f32 %v4349_v8, 0.0 }
 0xa19   :  { %6554 = vmatmul.mubr.msk.f32.vlgmr.msra.gmra.mrb[4].mxu1 %vm4362_vm3, %v4350_v9 }
 0xaec   :  { %v4432_v19 = vpop.f32.mrb[4].mxu1 }
 0xaed   :  { %v4433_v21 = vadd.f32 %v4975_v10, %v4432_v19  ;;  %v6555_v15 = vpop.f32.mrb[5].mxu1 }
 0xaef   :  { %4437 = vst.msk [vmem:[#allocation5] sm:$0x3] %vm4436_vm4, %v4433_v21 }
 0xaf0   :  { %6797 = shalt.err (!%p6794_p4)
}
 0xaf1   :  { %s6798_s19 = scalar_lea.hbm %s10072_s7, 32 }
 0xaf2   :  { %p6799_p5 = scmp.ne.s32.totalorder %s10072_s7, %s6798_s19  ;;  %p6802_p6 = scmp.lt.u32.totalorder %s6798_s19, %s10072_s7 }
 0xaf4   :  { %p6804_p7 = pnand %p6802_p6, %p6799_p5 }
 0xaf6   :  { %6807 = shalt.err (!%p6804_p7)
}
 0xaf7   :  { %4447 = dma.vmem_to_hbm [thread:$0]  %s4445_s16, 32, %s10072_s7, [#allocation6]  }
 0xaf8   :  { %6824 = dma.done.wait [#allocation6], 32  }
 0xaf9   :  { %6825 = vsyncadd [#allocation6], 4294967264 }
 0xafa   :  { %4451 = vsyncpa [#allocation6], 1 }
 0xafb   :  { %4452 = vsyncmov [#allocation4] }
 0xafe   :  { %s4453_s24 = vpop.sfrf %4452 }
 0xaff   :  { %p4977_p8 = scmp.ne.s32.totalorder %s4453_s24, 0 }
 0xb01   :  { %4457 = shalt.err (%p4977_p8)  }
 0xb02   :  { %4459 = vsyncmov [#allocation4 + $0x1] }
 0xb05   :  { %s4460_s1 = vpop.sfrf %4459 }
 0xb06   :  { %p4978_p9 = scmp.ne.s32.totalorder %s4460_s1, 0 }
 0xb08   :  { %4464 = shalt.err (%p4978_p9)  }
 0xb09   :  { %4466 = vsyncmov [#allocation4 + $0x2] }
 0xb0c   :  { %s4467_s25 = vpop.sfrf %4466 }
 0xb0d   :  { %p4979_p10 = scmp.ne.s32.totalorder %s4467_s25, 0 }
 0xb0f   :  { %4471 = shalt.err (%p4979_p10)  }
 0xb10   :  { %4473 = vsyncmov [#allocation4 + $0x3] }
 0xb13   :  { %s4474_s2 = vpop.sfrf %4473 }
 0xb14   :  { %p4980_p11 = scmp.ne.s32.totalorder %s4474_s2, 0 }
 0xb16   :  { %4478 = shalt.err (%p4980_p11)  }
 0xb17   :  { %4480 = vsyncmov [#allocation4 + $0x4] }
 0xb1a   :  { %s4481_s7 = vpop.sfrf %4480 }
 0xb1b   :  { %p4981_p12 = scmp.ne.s32.totalorder %s4481_s7, 0 }
 0xb1d   :  { %4485 = shalt.err (%p4981_p12)  }
 0xb1e   :  { %4487 = vsyncmov [#allocation4 + $0x5] }
 0xb21   :  { %s4488_s26 = vpop.sfrf %4487 }
 0xb22   :  { %p4982_p13 = scmp.ne.s32.totalorder %s4488_s26, 0 }
 0xb24   :  { %4492 = shalt.err (%p4982_p13)  }
 0xb25   :  { %4494 = vsyncmov [#allocation4 + $0x6] }
 0xb28   :  { %s4495_s27 = vpop.sfrf %4494 }
 0xb29   :  { %p4983_p0 = scmp.ne.s32.totalorder %s4495_s27, 0 }
 0xb2b   :  { %4499 = shalt.err (%p4983_p0)  }
 0xb2c   :  { %4501 = vsyncmov [#allocation4 + $0x7] }
 0xb2f   :  { %s4502_s28 = vpop.sfrf %4501 }
 0xb30   :  { %p4984_p1 = scmp.ne.s32.totalorder %s4502_s28, 0 }
 0xb32   :  { %4506 = shalt.err (%p4984_p1)  }

</bundles_post_ra>
